<compile_context>
chip_gen: v7x
topology: tpu7x:2x2x1
jax: 0.10.0
libtpu: 0.0.40
codegen_flags: <defaults>
</compile_context>

<pallas_src>
import functools
import math

import jax
import jax.numpy as jnp
from jax.experimental import pallas as pl
from jax.experimental.pallas import tpu as pltpu

NEG_INF = -1e9


# --------------------------- in-kernel helpers -----------------------------

def _layer_norm(x, g, b, eps=1e-5):
    """x: [T, E] f32, g/b: [1, E] f32."""
    mu = jnp.mean(x, axis=-1, keepdims=True)
    xc = x - mu
    var = jnp.mean(xc * xc, axis=-1, keepdims=True)
    return xc * jax.lax.rsqrt(var + eps) * g + b


def _heads_attention(q_ref, k_ref, v_ref, q0, k0, v0, bias,
                     num_heads, head_dim, out_ref):
    """Multi-head scaled-dot-product attention on VMEM-resident projections.

    q_ref / k_ref / v_ref: 2-D f32 scratch refs; head h of Q lives in columns
    [q0 + h*head_dim, q0 + (h+1)*head_dim), similarly for K / V.
    bias: additive f32 mask, [1, Tk] or [Tq, Tk].
    Writes the concatenated head outputs [Tq, num_heads*head_dim] to out_ref.

    TODO(synk): at realistic sizes pack heads so the MXU sees >=128-wide
    contraction/lane dims instead of per-head Dh-wide matmuls.
    """
    scale = 1.0 / math.sqrt(head_dim)
    for h in range(num_heads):
        qh = q_ref[:, q0 + h * head_dim: q0 + (h + 1) * head_dim]
        kh = k_ref[:, k0 + h * head_dim: k0 + (h + 1) * head_dim]
        vh = v_ref[:, v0 + h * head_dim: v0 + (h + 1) * head_dim]
        s = jax.lax.dot_general(
            qh.astype(jnp.bfloat16), kh.astype(jnp.bfloat16),
            (((1,), (1,)), ((), ())),
            preferred_element_type=jnp.float32) * scale
        s = s + bias                                        # f32 mask add
        m = jnp.max(s, axis=-1, keepdims=True)
        p = jnp.exp(s - m)
        denom = jnp.sum(p, axis=-1, keepdims=True)
        p = p * pl.reciprocal(denom, approx=True)
        oh = jnp.dot(p.astype(jnp.bfloat16), vh.astype(jnp.bfloat16),
                     preferred_element_type=jnp.float32)
        out_ref[:, h * head_dim:(h + 1) * head_dim] = oh


# ------------------------------ encoder kernel ------------------------------

def _encoder_kernel(x_ref, kb_ref,
                    wqkv_ref, bqkv_ref, wo_ref, bo_ref, g1_ref, be1_ref,
                    w1_ref, b1_ref, w2_ref, b2_ref, g2_ref, be2_ref,
                    o_ref,
                    xs, qkv_s, at_s, *, num_heads):
    l = pl.program_id(1)

    @pl.when(l == 0)
    def _init():
        xs[...] = x_ref[0]                      # load embeddings once per b

    E = xs.shape[-1]
    head_dim = E // num_heads
    x = xs[...]                                 # [Ts, E] f32, VMEM-resident
    kbias = kb_ref[0]                           # [1, Ts] key-padding bias

    # ---- self-attention sublayer (fused QKV + out-proj + residual + LN) ----
    qkv_s[...] = jnp.dot(x.astype(jnp.bfloat16), wqkv_ref[0],
                         preferred_element_type=jnp.float32) + bqkv_ref[0]
    _heads_attention(qkv_s, qkv_s, qkv_s, 0, E, 2 * E, kbias,
                     num_heads, head_dim, at_s)
    attn_out = jnp.dot(at_s[...].astype(jnp.bfloat16), wo_ref[0],
                       preferred_element_type=jnp.float32) + bo_ref[0]
    x = _layer_norm(x + attn_out, g1_ref[0], be1_ref[0])

    # ---- FFN sublayer (fc1 + ReLU + fc2 + residual + LN) ----
    h1 = jnp.maximum(
        jnp.dot(x.astype(jnp.bfloat16), w1_ref[0],
                preferred_element_type=jnp.float32) + b1_ref[0], 0.0)
    ffn_out = jnp.dot(h1.astype(jnp.bfloat16), w2_ref[0],
                      preferred_element_type=jnp.float32) + b2_ref[0]
    x = _layer_norm(x + ffn_out, g2_ref[0], be2_ref[0])

    xs[...] = x

    @pl.when(l == pl.num_programs(1) - 1)
    def _out():
        o_ref[0] = x.astype(o_ref.dtype)


# ------------------------------ decoder kernel ------------------------------

def _decoder_kernel(y_ref, enc_ref, tkb_ref, skb_ref,
                    wqkv_ref, bqkv_ref, wo1_ref, bo1_ref, g1_ref, be1_ref,
                    wq_ref, bq_ref, wkv_ref, bkv_ref, wo2_ref, bo2_ref,
                    g2_ref, be2_ref,
                    w1_ref, b1_ref, w2_ref, b2_ref, g3_ref, be3_ref,
                    wout_ref, bout_ref,
                    logits_ref,
                    xs, qkv_s, kv_s, at_s, *, num_heads):
    l = pl.program_id(1)

    @pl.when(l == 0)
    def _init():
        xs[...] = y_ref[0]

    Tq = xs.shape[0]
    E = xs.shape[-1]
    head_dim = E // num_heads
    x = xs[...]                                 # [Tt, E] f32, VMEM-resident

    # In-kernel causal + key-padding biases (free VPU work, no HBM tensor).
    # TODO(synk): original build_decoder passes ffn_embed_dim as
    # self_attn_policy (upstream bug); we use standard causal masking.
    rows = jax.lax.broadcasted_iota(jnp.int32, (Tq, Tq), 0)
    cols = jax.lax.broadcasted_iota(jnp.int32, (Tq, Tq), 1)
    causal = jnp.where(cols > rows, NEG_INF, 0.0).astype(jnp.float32)
    self_bias = causal + tkb_ref[0]             # [Tq,Tq] + [1,Tq]
    cross_bias = skb_ref[0]                     # [1, Ts]

    # ---- masked self-attention sublayer ----
    qkv_s[...] = jnp.dot(x.astype(jnp.bfloat16), wqkv_ref[0],
                         preferred_element_type=jnp.float32) + bqkv_ref[0]
    _heads_attention(qkv_s, qkv_s, qkv_s, 0, E, 2 * E, self_bias,
                     num_heads, head_dim, at_s)
    attn_out = jnp.dot(at_s[...].astype(jnp.bfloat16), wo1_ref[0],
                       preferred_element_type=jnp.float32) + bo1_ref[0]
    x = _layer_norm(x + attn_out, g1_ref[0], be1_ref[0])

    # ---- cross-attention sublayer (fused KV projection of encoder feats) ----
    qkv_s[:, :E] = jnp.dot(x.astype(jnp.bfloat16), wq_ref[0],
                           preferred_element_type=jnp.float32) + bq_ref[0]
    kv_s[...] = jnp.dot(enc_ref[0].astype(jnp.bfloat16), wkv_ref[0],
                        preferred_element_type=jnp.float32) + bkv_ref[0]
    _heads_attention(qkv_s, kv_s, kv_s, 0, 0, E, cross_bias,
                     num_heads, head_dim, at_s)
    attn_out = jnp.dot(at_s[...].astype(jnp.bfloat16), wo2_ref[0],
                       preferred_element_type=jnp.float32) + bo2_ref[0]
    x = _layer_norm(x + attn_out, g2_ref[0], be2_ref[0])

    # ---- FFN sublayer ----
    h1 = jnp.maximum(
        jnp.dot(x.astype(jnp.bfloat16), w1_ref[0],
                preferred_element_type=jnp.float32) + b1_ref[0], 0.0)
    ffn_out = jnp.dot(h1.astype(jnp.bfloat16), w2_ref[0],
                      preferred_element_type=jnp.float32) + b2_ref[0]
    x = _layer_norm(x + ffn_out, g3_ref[0], be3_ref[0])

    xs[...] = x

    # ---- fused embed2token on the last layer ----
    # TODO(synk): for realistic vocab sizes, tile this projection over V
    # (grid over N with 256-wide tiles) instead of a whole-array matmul.
    @pl.when(l == pl.num_programs(1) - 1)
    def _out():
        logits_ref[0] = (jnp.dot(x.astype(jnp.bfloat16), wout_ref[...],
                                 preferred_element_type=jnp.float32)
                         + bout_ref[...]).astype(logits_ref.dtype)


# ------------------------------- forward pass -------------------------------

def transformer_forward(params, src_tokens, tgt_tokens, *, num_heads, pad_idx):
    # ---- matches Transformer.forward(src_tokens, tgt_tokens) ----
    tgt_in = tgt_tokens[:, :-1]
    B, Ts = src_tokens.shape
    Tt = tgt_in.shape[1]
    E = params["tok_emb"].shape[1]
    V = params["wout"].shape[-1]
    emb_scale = math.sqrt(E)

    # key-padding biases as tiny [B, 1, T] vectors (expanded in-kernel)
    src_kbias = jnp.where(src_tokens == pad_idx, NEG_INF, 0.0
                          ).astype(jnp.float32)[:, None, :]
    tgt_kbias = jnp.where(tgt_in == pad_idx, NEG_INF, 0.0
                          ).astype(jnp.float32)[:, None, :]

    # TODO(synk): embedding gather stays in XLA (no clean small-Pallas gather).
    x_emb = params["tok_emb"][src_tokens] * emb_scale \
        + params["enc_pos"][:Ts][None, :, :]
    y_emb = params["tok_emb"][tgt_in] * emb_scale \
        + params["dec_pos"][:Tt][None, :, :]

    enc_p = params["enc"]
    dec_p = params["dec"]
    L_enc = enc_p["wqkv"].shape[0]
    L_dec = dec_p["wqkv"].shape[0]
    F = enc_p["w1"].shape[-1]

    def b_spec(t1, t2):          # per-batch block, resident across layers
        return pl.BlockSpec((1, t1, t2), lambda b, l: (b, 0, 0))

    def l_spec(t1, t2):          # per-layer stacked weight block
        return pl.BlockSpec((1, t1, t2), lambda b, l: (l, 0, 0))

    def c_spec(t1, t2):          # constant 2-D block
        return pl.BlockSpec((t1, t2), lambda b, l: (0, 0))

    # ----------------------------- encoder -----------------------------
    enc_in_specs = [
        b_spec(Ts, E), b_spec(1, Ts),
        l_spec(E, 3 * E), l_spec(1, 3 * E),
        l_spec(E, E), l_spec(1, E), l_spec(1, E), l_spec(1, E),
        l_spec(E, F), l_spec(1, F),
        l_spec(F, E), l_spec(1, E), l_spec(1, E), l_spec(1, E),
    ]
    enc_feats = pl.pallas_call(
        functools.partial(_encoder_kernel, num_heads=num_heads),
        out_shape=jax.ShapeDtypeStruct((B, Ts, E), jnp.float32),
        grid_spec=pltpu.PrefetchScalarGridSpec(
            num_scalar_prefetch=0,
            grid=(B, L_enc),
            in_specs=enc_in_specs,
            out_specs=b_spec(Ts, E),
            scratch_shapes=[pltpu.VMEM((Ts, E), jnp.float32),
                            pltpu.VMEM((Ts, 3 * E), jnp.float32),
                            pltpu.VMEM((Ts, E), jnp.float32)]),
        compiler_params=pltpu.CompilerParams(
            dimension_semantics=("parallel", "arbitrary")),
    )(x_emb, src_kbias,
      enc_p["wqkv"], enc_p["bqkv"], enc_p["wo"], enc_p["bo"],
      enc_p["ln1_g"], enc_p["ln1_b"],
      enc_p["w1"], enc_p["b1"], enc_p["w2"], enc_p["b2"],
      enc_p["ln2_g"], enc_p["ln2_b"])

    # ------------------- decoder (+ fused embed2token) -------------------
    dec_in_specs = [
        b_spec(Tt, E), b_spec(Ts, E), b_spec(1, Tt), b_spec(1, Ts),
        l_spec(E, 3 * E), l_spec(1, 3 * E),
        l_spec(E, E), l_spec(1, E), l_spec(1, E), l_spec(1, E),
        l_spec(E, E), l_spec(1, E),
        l_spec(E, 2 * E), l_spec(1, 2 * E),
        l_spec(E, E), l_spec(1, E), l_spec(1, E), l_spec(1, E),
        l_spec(E, F), l_spec(1, F),
        l_spec(F, E), l_spec(1, E), l_spec(1, E), l_spec(1, E),
        c_spec(E, V), c_spec(1, V),
    ]
    logits = pl.pallas_call(
        functools.partial(_decoder_kernel, num_heads=num_heads),
        out_shape=jax.ShapeDtypeStruct((B, Tt, V), jnp.float32),
        grid_spec=pltpu.PrefetchScalarGridSpec(
            num_scalar_prefetch=0,
            grid=(B, L_dec),
            in_specs=dec_in_specs,
            out_specs=b_spec(Tt, V),
            scratch_shapes=[pltpu.VMEM((Tt, E), jnp.float32),
                            pltpu.VMEM((Tt, 3 * E), jnp.float32),
                            pltpu.VMEM((Ts, 2 * E), jnp.float32),
                            pltpu.VMEM((Tt, E), jnp.float32)]),
        compiler_params=pltpu.CompilerParams(
            dimension_semantics=("parallel", "arbitrary")),
    )(y_emb, enc_feats, tgt_kbias, src_kbias,
      dec_p["wqkv"], dec_p["bqkv"], dec_p["wo1"], dec_p["bo1"],
      dec_p["ln1_g"], dec_p["ln1_b"],
      dec_p["wq"], dec_p["bq"], dec_p["wkv"], dec_p["bkv"],
      dec_p["wo2"], dec_p["bo2"], dec_p["ln2_g"], dec_p["ln2_b"],
      dec_p["w1"], dec_p["b1"], dec_p["w2"], dec_p["b2"],
      dec_p["ln3_g"], dec_p["ln3_b"],
      params["wout"], params["bout"])
    return logits


# ------------------------------- parameters --------------------------------

def init_params(key, vocab, E, ffn_dim, num_layers, max_len, pad_idx):
    keys = iter(jax.random.split(key, 64))

    def w(shape):
        return jax.random.normal(next(keys), shape, jnp.float32) * 0.02

    def stack_w(shape):                       # per-layer stacked bf16 weights
        return w((num_layers,) + shape).astype(jnp.bfloat16)

    def zeros(shape):
        return jnp.zeros((num_layers,) + shape, jnp.float32)

    def ones(shape):
        return jnp.ones((num_layers,) + shape, jnp.float32)

    tok_emb = w((vocab, E)).at[pad_idx].set(0.0)   # nn.Embedding padding_idx

    enc = {
        "wqkv": stack_w((E, 3 * E)), "bqkv": zeros((1, 3 * E)),
        "wo": stack_w((E, E)), "bo": zeros((1, E)),
        "ln1_g": ones((1, E)), "ln1_b": zeros((1, E)),
        "w1": stack_w((E, ffn_dim)), "b1": zeros((1, ffn_dim)),
        "w2": stack_w((ffn_dim, E)), "b2": zeros((1, E)),
        "ln2_g": ones((1, E)), "ln2_b": zeros((1, E)),
    }
    dec = {
        "wqkv": stack_w((E, 3 * E)), "bqkv": zeros((1, 3 * E)),
        "wo1": stack_w((E, E)), "bo1": zeros((1, E)),
        "ln1_g": ones((1, E)), "ln1_b": zeros((1, E)),
        "wq": stack_w((E, E)), "bq": zeros((1, E)),
        "wkv": stack_w((E, 2 * E)), "bkv": zeros((1, 2 * E)),
        "wo2": stack_w((E, E)), "bo2": zeros((1, E)),
        "ln2_g": ones((1, E)), "ln2_b": zeros((1, E)),
        "w1": stack_w((E, ffn_dim)), "b1": zeros((1, ffn_dim)),
        "w2": stack_w((ffn_dim, E)), "b2": zeros((1, E)),
        "ln3_g": ones((1, E)), "ln3_b": zeros((1, E)),
    }
    return {
        "tok_emb": tok_emb,                       # shared enc/dec embedding
        "enc_pos": w((max_len, E)),               # learned positional emb
        "dec_pos": w((max_len, E)),
        "enc": enc,
        "dec": dec,
        "wout": w((E, vocab)).astype(jnp.bfloat16),   # embed2token (bias=True)
        "bout": jnp.zeros((1, vocab), jnp.float32),
    }


# ---------------------------------- main ------------------------------------

if __name__ == "__main__":
    VOCAB, EMBED, FFN, HEADS, LAYERS = 32, 32, 64, 4, 2
    MAX_LEN = 16
    B, T_SRC, T_TGT = 2, 8, 8
    PAD = 1

    root = jax.random.PRNGKey(0)
    k_par, k_src, k_tgt = jax.random.split(root, 3)

    params = init_params(k_par, VOCAB, EMBED, FFN, LAYERS, MAX_LEN, PAD)

    src_tokens = jax.random.randint(k_src, (B, T_SRC), 4, VOCAB, jnp.int32)
    src_tokens = src_tokens.at[0, -2:].set(PAD)   # some source padding
    tgt_tokens = jax.random.randint(k_tgt, (B, T_TGT), 4, VOCAB, jnp.int32)

    fwd = jax.jit(functools.partial(transformer_forward,
                                    num_heads=HEADS, pad_idx=PAD))
    logits = fwd(params, src_tokens, tgt_tokens)
    logits = jax.block_until_ready(logits)

    assert logits.shape == (B, T_TGT - 1, VOCAB), logits.shape
    assert bool(jnp.all(jnp.isfinite(logits)))
    print("KERNEL_OK")
</pallas_src>

<mosaic_0001>
module attributes {stable_mosaic.version = 11 : i64} {
  func.func @_encoder_kernel(%arg0: i32, %arg1: i32, %arg2: memref<1x8x32xf32, #tpu.memory_space<vmem>>, %arg3: memref<1x1x8xf32, #tpu.memory_space<vmem>>, %arg4: memref<1x32x96xbf16, #tpu.memory_space<vmem>>, %arg5: memref<1x1x96xf32, #tpu.memory_space<vmem>>, %arg6: memref<1x32x32xbf16, #tpu.memory_space<vmem>>, %arg7: memref<1x1x32xf32, #tpu.memory_space<vmem>>, %arg8: memref<1x1x32xf32, #tpu.memory_space<vmem>>, %arg9: memref<1x1x32xf32, #tpu.memory_space<vmem>>, %arg10: memref<1x32x64xbf16, #tpu.memory_space<vmem>>, %arg11: memref<1x1x64xf32, #tpu.memory_space<vmem>>, %arg12: memref<1x64x32xbf16, #tpu.memory_space<vmem>>, %arg13: memref<1x1x32xf32, #tpu.memory_space<vmem>>, %arg14: memref<1x1x32xf32, #tpu.memory_space<vmem>>, %arg15: memref<1x1x32xf32, #tpu.memory_space<vmem>>, %arg16: memref<1x8x32xf32, #tpu.memory_space<vmem>>, %arg17: memref<8x32xf32, #tpu.memory_space<vmem>>, %arg18: memref<8x96xf32, #tpu.memory_space<vmem>>, %arg19: memref<8x32xf32, #tpu.memory_space<vmem>>) attributes {dimension_semantics = [#tpu.dimension_semantics<parallel>, #tpu.dimension_semantics<arbitrary>], iteration_bounds = array<i64: 2, 2>, scalar_prefetch = 0 : i64, scratch_operands = 3 : i64, tpu.core_type = #tpu.core_type<tc>, window_params = [{transform_indices = @transform_0, window_bounds = array<i64: 1, 8, 32>}, {transform_indices = @transform_1, window_bounds = array<i64: 1, 1, 8>}, {transform_indices = @transform_2, window_bounds = array<i64: 1, 32, 96>}, {transform_indices = @transform_3, window_bounds = array<i64: 1, 1, 96>}, {transform_indices = @transform_4, window_bounds = array<i64: 1, 32, 32>}, {transform_indices = @transform_5, window_bounds = array<i64: 1, 1, 32>}, {transform_indices = @transform_6, window_bounds = array<i64: 1, 1, 32>}, {transform_indices = @transform_7, window_bounds = array<i64: 1, 1, 32>}, {transform_indices = @transform_8, window_bounds = array<i64: 1, 32, 64>}, {transform_indices = @transform_9, window_bounds = array<i64: 1, 1, 64>}, {transform_indices = @transform_10, window_bounds = array<i64: 1, 64, 32>}, {transform_indices = @transform_11, window_bounds = array<i64: 1, 1, 32>}, {transform_indices = @transform_12, window_bounds = array<i64: 1, 1, 32>}, {transform_indices = @transform_13, window_bounds = array<i64: 1, 1, 32>}, {transform_indices = @transform_14, window_bounds = array<i64: 1, 8, 32>}]} {
    %c0_i32 = arith.constant 0 : i32
    %0 = arith.cmpi eq, %arg1, %c0_i32 : i32
    %1 = arith.extui %0 : i1 to i32
    %c0_i32_0 = arith.constant 0 : i32
    %2 = arith.cmpi ne, %1, %c0_i32_0 : i32
    scf.if %2 {
      %c0_103 = arith.constant 0 : index
      %c0_104 = arith.constant 0 : index
      %c0_105 = arith.constant 0 : index
      %192 = vector.load %arg2[%c0_103, %c0_104, %c0_105] : memref<1x8x32xf32, #tpu.memory_space<vmem>>, vector<1x8x32xf32>
      %193 = vector.shape_cast %192 : vector<1x8x32xf32> to vector<8x32xf32>
      %c0_106 = arith.constant 0 : index
      %c0_107 = arith.constant 0 : index
      %194 = vector.load %arg17[%c0_106, %c0_107] : memref<8x32xf32, #tpu.memory_space<vmem>>, vector<8x32xf32>
      tpu.vector_store %arg17[%c0_106, %c0_107], %193 {strides = array<i32>} : memref<8x32xf32, #tpu.memory_space<vmem>>, vector<8x32xf32>,
    } else {
    }
    %c0 = arith.constant 0 : index
    %c0_1 = arith.constant 0 : index
    %3 = vector.load %arg17[%c0, %c0_1] : memref<8x32xf32, #tpu.memory_space<vmem>>, vector<8x32xf32>
    %c0_2 = arith.constant 0 : index
    %c0_3 = arith.constant 0 : index
    %c0_4 = arith.constant 0 : index
    %4 = vector.load %arg3[%c0_2, %c0_3, %c0_4] : memref<1x1x8xf32, #tpu.memory_space<vmem>>, vector<1x1x8xf32>
    %5 = vector.shape_cast %4 : vector<1x1x8xf32> to vector<1x8xf32>
    %6 = arith.truncf %3 : vector<8x32xf32> to vector<8x32xbf16>
    %c0_5 = arith.constant 0 : index
    %c0_6 = arith.constant 0 : index
    %c0_7 = arith.constant 0 : index
    %7 = vector.load %arg4[%c0_5, %c0_6, %c0_7] : memref<1x32x96xbf16, #tpu.memory_space<vmem>>, vector<1x32x96xbf16>
    %8 = vector.shape_cast %7 : vector<1x32x96xbf16> to vector<32x96xbf16>
    %cst = arith.constant dense<0.000000e+00> : vector<8x96xf32>
    %9 = tpu.matmul %6, %8, %cst {dimension_numbers = #tpu.dot_dimension_numbers<[1], [0], [0], [1], [0, 0, 1, 1], [], []>} : vector<8x32xbf16>, vector<32x96xbf16>, vector<8x96xf32> -> vector<8x96xf32>
    %c0_8 = arith.constant 0 : index
    %c0_9 = arith.constant 0 : index
    %c0_10 = arith.constant 0 : index
    %10 = vector.load %arg5[%c0_8, %c0_9, %c0_10] : memref<1x1x96xf32, #tpu.memory_space<vmem>>, vector<1x1x96xf32>
    %11 = vector.shape_cast %10 : vector<1x1x96xf32> to vector<1x96xf32>
    %12 = vector.broadcast %11 : vector<1x96xf32> to vector<8x96xf32>
    %13 = arith.addf %9, %12 : vector<8x96xf32>
    %c0_11 = arith.constant 0 : index
    %c0_12 = arith.constant 0 : index
    %14 = vector.load %arg18[%c0_11, %c0_12] : memref<8x96xf32, #tpu.memory_space<vmem>>, vector<8x96xf32>
    tpu.vector_store %arg18[%c0_11, %c0_12], %13 {strides = array<i32>} : memref<8x96xf32, #tpu.memory_space<vmem>>, vector<8x96xf32>,
    %c0_13 = arith.constant 0 : index
    %c0_14 = arith.constant 0 : index
    %15 = vector.load %arg18[%c0_13, %c0_14] : memref<8x96xf32, #tpu.memory_space<vmem>>, vector<8x8xf32>
    %c0_15 = arith.constant 0 : index
    %c32 = arith.constant 32 : index
    %16 = vector.load %arg18[%c0_15, %c32] : memref<8x96xf32, #tpu.memory_space<vmem>>, vector<8x8xf32>
    %c0_16 = arith.constant 0 : index
    %c64 = arith.constant 64 : index
    %17 = vector.load %arg18[%c0_16, %c64] : memref<8x96xf32, #tpu.memory_space<vmem>>, vector<8x8xf32>
    %18 = arith.truncf %15 : vector<8x8xf32> to vector<8x8xbf16>
    %19 = arith.truncf %16 : vector<8x8xf32> to vector<8x8xbf16>
    %cst_17 = arith.constant dense<0.000000e+00> : vector<8x8xf32>
    %20 = tpu.matmul %18, %19, %cst_17 {dimension_numbers = #tpu.dot_dimension_numbers<[1], [1], [0], [0], [0, 0, 1, 0], [], []>} : vector<8x8xbf16>, vector<8x8xbf16>, vector<8x8xf32> -> vector<8x8xf32>
    %cst_18 = arith.constant 0.353553385 : f32
    %21 = vector.broadcast %cst_18 : f32 to vector<8x8xf32>
    %22 = arith.mulf %20, %21 : vector<8x8xf32>
    %23 = vector.broadcast %5 : vector<1x8xf32> to vector<8x8xf32>
    %24 = arith.addf %22, %23 : vector<8x8xf32>
    %cst_19 = arith.constant dense<0xFF800000> : vector<8xf32>
    %25 = vector.multi_reduction <maximumf>, %24, %cst_19 [1] : vector<8x8xf32> to vector<8xf32>
    %26 = vector.shape_cast %25 : vector<8xf32> to vector<8x1xf32>
    %27 = vector.broadcast %26 : vector<8x1xf32> to vector<8x8xf32>
    %28 = arith.subf %24, %27 : vector<8x8xf32>
    %29 = math.exp %28 : vector<8x8xf32>
    %cst_20 = arith.constant dense<0.000000e+00> : vector<8xf32>
    %30 = vector.multi_reduction <add>, %29, %cst_20 [1] : vector<8x8xf32> to vector<8xf32>
    %31 = vector.shape_cast %30 : vector<8xf32> to vector<8x1xf32>
    %32 = tpu.reciprocal %31 {approx = true} : vector<8x1xf32> -> vector<8x1xf32>
    %33 = vector.broadcast %32 : vector<8x1xf32> to vector<8x8xf32>
    %34 = arith.mulf %29, %33 : vector<8x8xf32>
    %35 = arith.truncf %34 : vector<8x8xf32> to vector<8x8xbf16>
    %36 = arith.truncf %17 : vector<8x8xf32> to vector<8x8xbf16>
    %cst_21 = arith.constant dense<0.000000e+00> : vector<8x8xf32>
    %37 = tpu.matmul %35, %36, %cst_21 {dimension_numbers = #tpu.dot_dimension_numbers<[1], [0], [0], [1], [0, 0, 1, 1], [], []>} : vector<8x8xbf16>, vector<8x8xbf16>, vector<8x8xf32> -> vector<8x8xf32>
    %c0_22 = arith.constant 0 : index
    %c0_23 = arith.constant 0 : index
    %38 = vector.load %arg19[%c0_22, %c0_23] : memref<8x32xf32, #tpu.memory_space<vmem>>, vector<8x8xf32>
    tpu.vector_store %arg19[%c0_22, %c0_23], %37 {strides = array<i32>} : memref<8x32xf32, #tpu.memory_space<vmem>>, vector<8x8xf32>,
    %c0_24 = arith.constant 0 : index
    %c8 = arith.constant 8 : index
    %39 = vector.load %arg18[%c0_24, %c8] : memref<8x96xf32, #tpu.memory_space<vmem>>, vector<8x8xf32>
    %c0_25 = arith.constant 0 : index
    %c40 = arith.constant 40 : index
    %40 = vector.load %arg18[%c0_25, %c40] : memref<8x96xf32, #tpu.memory_space<vmem>>, vector<8x8xf32>
    %c0_26 = arith.constant 0 : index
    %c72 = arith.constant 72 : index
    %41 = vector.load %arg18[%c0_26, %c72] : memref<8x96xf32, #tpu.memory_space<vmem>>, vector<8x8xf32>
    %42 = arith.truncf %39 : vector<8x8xf32> to vector<8x8xbf16>
    %43 = arith.truncf %40 : vector<8x8xf32> to vector<8x8xbf16>
    %cst_27 = arith.constant dense<0.000000e+00> : vector<8x8xf32>
    %44 = tpu.matmul %42, %43, %cst_27 {dimension_numbers = #tpu.dot_dimension_numbers<[1], [1], [0], [0], [0, 0, 1, 0], [], []>} : vector<8x8xbf16>, vector<8x8xbf16>, vector<8x8xf32> -> vector<8x8xf32>
    %cst_28 = arith.constant 0.353553385 : f32
    %45 = vector.broadcast %cst_28 : f32 to vector<8x8xf32>
    %46 = arith.mulf %44, %45 : vector<8x8xf32>
    %47 = vector.broadcast %5 : vector<1x8xf32> to vector<8x8xf32>
    %48 = arith.addf %46, %47 : vector<8x8xf32>
    %cst_29 = arith.constant dense<0xFF800000> : vector<8xf32>
    %49 = vector.multi_reduction <maximumf>, %48, %cst_29 [1] : vector<8x8xf32> to vector<8xf32>
    %50 = vector.shape_cast %49 : vector<8xf32> to vector<8x1xf32>
    %51 = vector.broadcast %50 : vector<8x1xf32> to vector<8x8xf32>
    %52 = arith.subf %48, %51 : vector<8x8xf32>
    %53 = math.exp %52 : vector<8x8xf32>
    %cst_30 = arith.constant dense<0.000000e+00> : vector<8xf32>
    %54 = vector.multi_reduction <add>, %53, %cst_30 [1] : vector<8x8xf32> to vector<8xf32>
    %55 = vector.shape_cast %54 : vector<8xf32> to vector<8x1xf32>
    %56 = tpu.reciprocal %55 {approx = true} : vector<8x1xf32> -> vector<8x1xf32>
    %57 = vector.broadcast %56 : vector<8x1xf32> to vector<8x8xf32>
    %58 = arith.mulf %53, %57 : vector<8x8xf32>
    %59 = arith.truncf %58 : vector<8x8xf32> to vector<8x8xbf16>
    %60 = arith.truncf %41 : vector<8x8xf32> to vector<8x8xbf16>
    %cst_31 = arith.constant dense<0.000000e+00> : vector<8x8xf32>
    %61 = tpu.matmul %59, %60, %cst_31 {dimension_numbers = #tpu.dot_dimension_numbers<[1], [0], [0], [1], [0, 0, 1, 1], [], []>} : vector<8x8xbf16>, vector<8x8xbf16>, vector<8x8xf32> -> vector<8x8xf32>
    %c0_32 = arith.constant 0 : index
    %c8_33 = arith.constant 8 : index
    %62 = vector.load %arg19[%c0_32, %c8_33] : memref<8x32xf32, #tpu.memory_space<vmem>>, vector<8x8xf32>
    tpu.vector_store %arg19[%c0_32, %c8_33], %61 {strides = array<i32>} : memref<8x32xf32, #tpu.memory_space<vmem>>, vector<8x8xf32>,
    %c0_34 = arith.constant 0 : index
    %c16 = arith.constant 16 : index
    %63 = vector.load %arg18[%c0_34, %c16] : memref<8x96xf32, #tpu.memory_space<vmem>>, vector<8x8xf32>
    %c0_35 = arith.constant 0 : index
    %c48 = arith.constant 48 : index
    %64 = vector.load %arg18[%c0_35, %c48] : memref<8x96xf32, #tpu.memory_space<vmem>>, vector<8x8xf32>
    %c0_36 = arith.constant 0 : index
    %c80 = arith.constant 80 : index
    %65 = vector.load %arg18[%c0_36, %c80] : memref<8x96xf32, #tpu.memory_space<vmem>>, vector<8x8xf32>
    %66 = arith.truncf %63 : vector<8x8xf32> to vector<8x8xbf16>
    %67 = arith.truncf %64 : vector<8x8xf32> to vector<8x8xbf16>
    %cst_37 = arith.constant dense<0.000000e+00> : vector<8x8xf32>
    %68 = tpu.matmul %66, %67, %cst_37 {dimension_numbers = #tpu.dot_dimension_numbers<[1], [1], [0], [0], [0, 0, 1, 0], [], []>} : vector<8x8xbf16>, vector<8x8xbf16>, vector<8x8xf32> -> vector<8x8xf32>
    %cst_38 = arith.constant 0.353553385 : f32
    %69 = vector.broadcast %cst_38 : f32 to vector<8x8xf32>
    %70 = arith.mulf %68, %69 : vector<8x8xf32>
    %71 = vector.broadcast %5 : vector<1x8xf32> to vector<8x8xf32>
    %72 = arith.addf %70, %71 : vector<8x8xf32>
    %cst_39 = arith.constant dense<0xFF800000> : vector<8xf32>
    %73 = vector.multi_reduction <maximumf>, %72, %cst_39 [1] : vector<8x8xf32> to vector<8xf32>
    %74 = vector.shape_cast %73 : vector<8xf32> to vector<8x1xf32>
    %75 = vector.broadcast %74 : vector<8x1xf32> to vector<8x8xf32>
    %76 = arith.subf %72, %75 : vector<8x8xf32>
    %77 = math.exp %76 : vector<8x8xf32>
    %cst_40 = arith.constant dense<0.000000e+00> : vector<8xf32>
    %78 = vector.multi_reduction <add>, %77, %cst_40 [1] : vector<8x8xf32> to vector<8xf32>
    %79 = vector.shape_cast %78 : vector<8xf32> to vector<8x1xf32>
    %80 = tpu.reciprocal %79 {approx = true} : vector<8x1xf32> -> vector<8x1xf32>
    %81 = vector.broadcast %80 : vector<8x1xf32> to vector<8x8xf32>
    %82 = arith.mulf %77, %81 : vector<8x8xf32>
    %83 = arith.truncf %82 : vector<8x8xf32> to vector<8x8xbf16>
    %84 = arith.truncf %65 : vector<8x8xf32> to vector<8x8xbf16>
    %cst_41 = arith.constant dense<0.000000e+00> : vector<8x8xf32>
    %85 = tpu.matmul %83, %84, %cst_41 {dimension_numbers = #tpu.dot_dimension_numbers<[1], [0], [0], [1], [0, 0, 1, 1], [], []>} : vector<8x8xbf16>, vector<8x8xbf16>, vector<8x8xf32> -> vector<8x8xf32>
    %c0_42 = arith.constant 0 : index
    %c16_43 = arith.constant 16 : index
    %86 = vector.load %arg19[%c0_42, %c16_43] : memref<8x32xf32, #tpu.memory_space<vmem>>, vector<8x8xf32>
    tpu.vector_store %arg19[%c0_42, %c16_43], %85 {strides = array<i32>} : memref<8x32xf32, #tpu.memory_space<vmem>>, vector<8x8xf32>,
    %c0_44 = arith.constant 0 : index
    %c24 = arith.constant 24 : index
    %87 = vector.load %arg18[%c0_44, %c24] : memref<8x96xf32, #tpu.memory_space<vmem>>, vector<8x8xf32>
    %c0_45 = arith.constant 0 : index
    %c56 = arith.constant 56 : index
    %88 = vector.load %arg18[%c0_45, %c56] : memref<8x96xf32, #tpu.memory_space<vmem>>, vector<8x8xf32>
    %c0_46 = arith.constant 0 : index
    %c88 = arith.constant 88 : index
    %89 = vector.load %arg18[%c0_46, %c88] : memref<8x96xf32, #tpu.memory_space<vmem>>, vector<8x8xf32>
    %90 = arith.truncf %87 : vector<8x8xf32> to vector<8x8xbf16>
    %91 = arith.truncf %88 : vector<8x8xf32> to vector<8x8xbf16>
    %cst_47 = arith.constant dense<0.000000e+00> : vector<8x8xf32>
    %92 = tpu.matmul %90, %91, %cst_47 {dimension_numbers = #tpu.dot_dimension_numbers<[1], [1], [0], [0], [0, 0, 1, 0], [], []>} : vector<8x8xbf16>, vector<8x8xbf16>, vector<8x8xf32> -> vector<8x8xf32>
    %cst_48 = arith.constant 0.353553385 : f32
    %93 = vector.broadcast %cst_48 : f32 to vector<8x8xf32>
    %94 = arith.mulf %92, %93 : vector<8x8xf32>
    %95 = vector.broadcast %5 : vector<1x8xf32> to vector<8x8xf32>
    %96 = arith.addf %94, %95 : vector<8x8xf32>
    %cst_49 = arith.constant dense<0xFF800000> : vector<8xf32>
    %97 = vector.multi_reduction <maximumf>, %96, %cst_49 [1] : vector<8x8xf32> to vector<8xf32>
    %98 = vector.shape_cast %97 : vector<8xf32> to vector<8x1xf32>
    %99 = vector.broadcast %98 : vector<8x1xf32> to vector<8x8xf32>
    %100 = arith.subf %96, %99 : vector<8x8xf32>
    %101 = math.exp %100 : vector<8x8xf32>
    %cst_50 = arith.constant dense<0.000000e+00> : vector<8xf32>
    %102 = vector.multi_reduction <add>, %101, %cst_50 [1] : vector<8x8xf32> to vector<8xf32>
    %103 = vector.shape_cast %102 : vector<8xf32> to vector<8x1xf32>
    %104 = tpu.reciprocal %103 {approx = true} : vector<8x1xf32> -> vector<8x1xf32>
    %105 = vector.broadcast %104 : vector<8x1xf32> to vector<8x8xf32>
    %106 = arith.mulf %101, %105 : vector<8x8xf32>
    %107 = arith.truncf %106 : vector<8x8xf32> to vector<8x8xbf16>
    %108 = arith.truncf %89 : vector<8x8xf32> to vector<8x8xbf16>
    %cst_51 = arith.constant dense<0.000000e+00> : vector<8x8xf32>
    %109 = tpu.matmul %107, %108, %cst_51 {dimension_numbers = #tpu.dot_dimension_numbers<[1], [0], [0], [1], [0, 0, 1, 1], [], []>} : vector<8x8xbf16>, vector<8x8xbf16>, vector<8x8xf32> -> vector<8x8xf32>
    %c0_52 = arith.constant 0 : index
    %c24_53 = arith.constant 24 : index
    %110 = vector.load %arg19[%c0_52, %c24_53] : memref<8x32xf32, #tpu.memory_space<vmem>>, vector<8x8xf32>
    tpu.vector_store %arg19[%c0_52, %c24_53], %109 {strides = array<i32>} : memref<8x32xf32, #tpu.memory_space<vmem>>, vector<8x8xf32>,
    %c0_54 = arith.constant 0 : index
    %c0_55 = arith.constant 0 : index
    %111 = vector.load %arg19[%c0_54, %c0_55] : memref<8x32xf32, #tpu.memory_space<vmem>>, vector<8x32xf32>
    %112 = arith.truncf %111 : vector<8x32xf32> to vector<8x32xbf16>
    %c0_56 = arith.constant 0 : index
    %c0_57 = arith.constant 0 : index
    %c0_58 = arith.constant 0 : index
    %113 = vector.load %arg6[%c0_56, %c0_57, %c0_58] : memref<1x32x32xbf16, #tpu.memory_space<vmem>>, vector<1x32x32xbf16>
    %114 = vector.shape_cast %113 : vector<1x32x32xbf16> to vector<32x32xbf16>
    %cst_59 = arith.constant dense<0.000000e+00> : vector<8x32xf32>
    %115 = tpu.matmul %112, %114, %cst_59 {dimension_numbers = #tpu.dot_dimension_numbers<[1], [0], [0], [1], [0, 0, 1, 1], [], []>} : vector<8x32xbf16>, vector<32x32xbf16>, vector<8x32xf32> -> vector<8x32xf32>
    %c0_60 = arith.constant 0 : index
    %c0_61 = arith.constant 0 : index
    %c0_62 = arith.constant 0 : index
    %116 = vector.load %arg7[%c0_60, %c0_61, %c0_62] : memref<1x1x32xf32, #tpu.memory_space<vmem>>, vector<1x1x32xf32>
    %117 = vector.shape_cast %116 : vector<1x1x32xf32> to vector<1x32xf32>
    %118 = vector.broadcast %117 : vector<1x32xf32> to vector<8x32xf32>
    %119 = arith.addf %115, %118 : vector<8x32xf32>
    %120 = arith.addf %3, %119 : vector<8x32xf32>
    %c0_63 = arith.constant 0 : index
    %c0_64 = arith.constant 0 : index
    %c0_65 = arith.constant 0 : index
    %121 = vector.load %arg8[%c0_63, %c0_64, %c0_65] : memref<1x1x32xf32, #tpu.memory_space<vmem>>, vector<1x1x32xf32>
    %122 = vector.shape_cast %121 : vector<1x1x32xf32> to vector<1x32xf32>
    %c0_66 = arith.constant 0 : index
    %c0_67 = arith.constant 0 : index
    %c0_68 = arith.constant 0 : index
    %123 = vector.load %arg9[%c0_66, %c0_67, %c0_68] : memref<1x1x32xf32, #tpu.memory_space<vmem>>, vector<1x1x32xf32>
    %124 = vector.shape_cast %123 : vector<1x1x32xf32> to vector<1x32xf32>
    %cst_69 = arith.constant dense<0.000000e+00> : vector<8xf32>
    %125 = vector.multi_reduction <add>, %120, %cst_69 [1] : vector<8x32xf32> to vector<8xf32>
    %126 = vector.shape_cast %125 : vector<8xf32> to vector<8x1xf32>
    %cst_70 = arith.constant 3.200000e+01 : f32
    %127 = vector.broadcast %cst_70 : f32 to vector<8x1xf32>
    %128 = arith.divf %126, %127 : vector<8x1xf32>
    %129 = vector.broadcast %128 : vector<8x1xf32> to vector<8x32xf32>
    %130 = arith.subf %120, %129 : vector<8x32xf32>
    %131 = arith.mulf %130, %130 : vector<8x32xf32>
    %cst_71 = arith.constant dense<0.000000e+00> : vector<8xf32>
    %132 = vector.multi_reduction <add>, %131, %cst_71 [1] : vector<8x32xf32> to vector<8xf32>
    %133 = vector.shape_cast %132 : vector<8xf32> to vector<8x1xf32>
    %cst_72 = arith.constant 3.200000e+01 : f32
    %134 = vector.broadcast %cst_72 : f32 to vector<8x1xf32>
    %135 = arith.divf %133, %134 : vector<8x1xf32>
    %cst_73 = arith.constant 9.99999974E-6 : f32
    %136 = vector.broadcast %cst_73 : f32 to vector<8x1xf32>
    %137 = arith.addf %135, %136 : vector<8x1xf32>
    %138 = math.rsqrt %137 : vector<8x1xf32>
    %139 = vector.broadcast %138 : vector<8x1xf32> to vector<8x32xf32>
    %140 = arith.mulf %130, %139 : vector<8x32xf32>
    %141 = vector.broadcast %122 : vector<1x32xf32> to vector<8x32xf32>
    %142 = arith.mulf %140, %141 : vector<8x32xf32>
    %143 = vector.broadcast %124 : vector<1x32xf32> to vector<8x32xf32>
    %144 = arith.addf %142, %143 : vector<8x32xf32>
    %145 = arith.truncf %144 : vector<8x32xf32> to vector<8x32xbf16>
    %c0_74 = arith.constant 0 : index
    %c0_75 = arith.constant 0 : index
    %c0_76 = arith.constant 0 : index
    %146 = vector.load %arg10[%c0_74, %c0_75, %c0_76] : memref<1x32x64xbf16, #tpu.memory_space<vmem>>, vector<1x32x64xbf16>
    %147 = vector.shape_cast %146 : vector<1x32x64xbf16> to vector<32x64xbf16>
    %cst_77 = arith.constant dense<0.000000e+00> : vector<8x64xf32>
    %148 = tpu.matmul %145, %147, %cst_77 {dimension_numbers = #tpu.dot_dimension_numbers<[1], [0], [0], [1], [0, 0, 1, 1], [], []>} : vector<8x32xbf16>, vector<32x64xbf16>, vector<8x64xf32> -> vector<8x64xf32>
    %c0_78 = arith.constant 0 : index
    %c0_79 = arith.constant 0 : index
    %c0_80 = arith.constant 0 : index
    %149 = vector.load %arg11[%c0_78, %c0_79, %c0_80] : memref<1x1x64xf32, #tpu.memory_space<vmem>>, vector<1x1x64xf32>
    %150 = vector.shape_cast %149 : vector<1x1x64xf32> to vector<1x64xf32>
    %151 = vector.broadcast %150 : vector<1x64xf32> to vector<8x64xf32>
    %152 = arith.addf %148, %151 : vector<8x64xf32>
    %cst_81 = arith.constant 0.000000e+00 : f32
    %153 = vector.broadcast %cst_81 : f32 to vector<8x64xf32>
    %154 = arith.maximumf %152, %153 : vector<8x64xf32>
    %155 = arith.truncf %154 : vector<8x64xf32> to vector<8x64xbf16>
    %c0_82 = arith.constant 0 : index
    %c0_83 = arith.constant 0 : index
    %c0_84 = arith.constant 0 : index
    %156 = vector.load %arg12[%c0_82, %c0_83, %c0_84] : memref<1x64x32xbf16, #tpu.memory_space<vmem>>, vector<1x64x32xbf16>
    %157 = vector.shape_cast %156 : vector<1x64x32xbf16> to vector<64x32xbf16>
    %cst_85 = arith.constant dense<0.000000e+00> : vector<8x32xf32>
    %158 = tpu.matmul %155, %157, %cst_85 {dimension_numbers = #tpu.dot_dimension_numbers<[1], [0], [0], [1], [0, 0, 1, 1], [], []>} : vector<8x64xbf16>, vector<64x32xbf16>, vector<8x32xf32> -> vector<8x32xf32>
    %c0_86 = arith.constant 0 : index
    %c0_87 = arith.constant 0 : index
    %c0_88 = arith.constant 0 : index
    %159 = vector.load %arg13[%c0_86, %c0_87, %c0_88] : memref<1x1x32xf32, #tpu.memory_space<vmem>>, vector<1x1x32xf32>
    %160 = vector.shape_cast %159 : vector<1x1x32xf32> to vector<1x32xf32>
    %161 = vector.broadcast %160 : vector<1x32xf32> to vector<8x32xf32>
    %162 = arith.addf %158, %161 : vector<8x32xf32>
    %163 = arith.addf %144, %162 : vector<8x32xf32>
    %c0_89 = arith.constant 0 : index
    %c0_90 = arith.constant 0 : index
    %c0_91 = arith.constant 0 : index
    %164 = vector.load %arg14[%c0_89, %c0_90, %c0_91] : memref<1x1x32xf32, #tpu.memory_space<vmem>>, vector<1x1x32xf32>
    %165 = vector.shape_cast %164 : vector<1x1x32xf32> to vector<1x32xf32>
    %c0_92 = arith.constant 0 : index
    %c0_93 = arith.constant 0 : index
    %c0_94 = arith.constant 0 : index
    %166 = vector.load %arg15[%c0_92, %c0_93, %c0_94] : memref<1x1x32xf32, #tpu.memory_space<vmem>>, vector<1x1x32xf32>
    %167 = vector.shape_cast %166 : vector<1x1x32xf32> to vector<1x32xf32>
    %cst_95 = arith.constant dense<0.000000e+00> : vector<8xf32>
    %168 = vector.multi_reduction <add>, %163, %cst_95 [1] : vector<8x32xf32> to vector<8xf32>
    %169 = vector.shape_cast %168 : vector<8xf32> to vector<8x1xf32>
    %cst_96 = arith.constant 3.200000e+01 : f32
    %170 = vector.broadcast %cst_96 : f32 to vector<8x1xf32>
    %171 = arith.divf %169, %170 : vector<8x1xf32>
    %172 = vector.broadcast %171 : vector<8x1xf32> to vector<8x32xf32>
    %173 = arith.subf %163, %172 : vector<8x32xf32>
    %174 = arith.mulf %173, %173 : vector<8x32xf32>
    %cst_97 = arith.constant dense<0.000000e+00> : vector<8xf32>
    %175 = vector.multi_reduction <add>, %174, %cst_97 [1] : vector<8x32xf32> to vector<8xf32>
    %176 = vector.shape_cast %175 : vector<8xf32> to vector<8x1xf32>
    %cst_98 = arith.constant 3.200000e+01 : f32
    %177 = vector.broadcast %cst_98 : f32 to vector<8x1xf32>
    %178 = arith.divf %176, %177 : vector<8x1xf32>
    %cst_99 = arith.constant 9.99999974E-6 : f32
    %179 = vector.broadcast %cst_99 : f32 to vector<8x1xf32>
    %180 = arith.addf %178, %179 : vector<8x1xf32>
    %181 = math.rsqrt %180 : vector<8x1xf32>
    %182 = vector.broadcast %181 : vector<8x1xf32> to vector<8x32xf32>
    %183 = arith.mulf %173, %182 : vector<8x32xf32>
    %184 = vector.broadcast %165 : vector<1x32xf32> to vector<8x32xf32>
    %185 = arith.mulf %183, %184 : vector<8x32xf32>
    %186 = vector.broadcast %167 : vector<1x32xf32> to vector<8x32xf32>
    %187 = arith.addf %185, %186 : vector<8x32xf32>
    %c0_100 = arith.constant 0 : index
    %c0_101 = arith.constant 0 : index
    %188 = vector.load %arg17[%c0_100, %c0_101] : memref<8x32xf32, #tpu.memory_space<vmem>>, vector<8x32xf32>
    tpu.vector_store %arg17[%c0_100, %c0_101], %187 {strides = array<i32>} : memref<8x32xf32, #tpu.memory_space<vmem>>, vector<8x32xf32>,
    %c1_i32 = arith.constant 1 : i32
    %189 = arith.cmpi eq, %arg1, %c1_i32 : i32
    %190 = arith.extui %189 : i1 to i32
    %c0_i32_102 = arith.constant 0 : i32
    %191 = arith.cmpi ne, %190, %c0_i32_102 : i32
    scf.if %191 {
      %c0_103 = arith.constant 0 : index
      %c0_104 = arith.constant 0 : index
      %c0_105 = arith.constant 0 : index
      %192 = vector.load %arg16[%c0_103, %c0_104, %c0_105] : memref<1x8x32xf32, #tpu.memory_space<vmem>>, vector<1x8x32xf32>
      %193 = vector.shape_cast %192 : vector<1x8x32xf32> to vector<8x32xf32>
      %194 = vector.shape_cast %187 : vector<8x32xf32> to vector<1x8x32xf32>
      tpu.vector_store %arg16[%c0_103, %c0_104, %c0_105], %194 {strides = array<i32>} : memref<1x8x32xf32, #tpu.memory_space<vmem>>, vector<1x8x32xf32>,
    } else {
    }
    return
  }
  func.func @transform_0(%arg0: i32, %arg1: i32) -> (i32, i32, i32) {
    %c0_i32 = arith.constant 0 : i32
    %c0_i32_0 = arith.constant 0 : i32
    %c0_i32_1 = arith.constant 0 : i32
    return %arg0, %c0_i32, %c0_i32_0 : i32, i32, i32
  }
  func.func @transform_1(%arg0: i32, %arg1: i32) -> (i32, i32, i32) {
    %c0_i32 = arith.constant 0 : i32
    %c0_i32_0 = arith.constant 0 : i32
    %c0_i32_1 = arith.constant 0 : i32
    return %arg0, %c0_i32, %c0_i32_0 : i32, i32, i32
  }
  func.func @transform_2(%arg0: i32, %arg1: i32) -> (i32, i32, i32) {
    %c0_i32 = arith.constant 0 : i32
    %c0_i32_0 = arith.constant 0 : i32
    %c0_i32_1 = arith.constant 0 : i32
    return %arg1, %c0_i32, %c0_i32_0 : i32, i32, i32
  }
  func.func @transform_3(%arg0: i32, %arg1: i32) -> (i32, i32, i32) {
    %c0_i32 = arith.constant 0 : i32
    %c0_i32_0 = arith.constant 0 : i32
    %c0_i32_1 = arith.constant 0 : i32
    return %arg1, %c0_i32, %c0_i32_0 : i32, i32, i32
  }
  func.func @transform_4(%arg0: i32, %arg1: i32) -> (i32, i32, i32) {
    %c0_i32 = arith.constant 0 : i32
    %c0_i32_0 = arith.constant 0 : i32
    %c0_i32_1 = arith.constant 0 : i32
    return %arg1, %c0_i32, %c0_i32_0 : i32, i32, i32
  }
  func.func @transform_5(%arg0: i32, %arg1: i32) -> (i32, i32, i32) {
    %c0_i32 = arith.constant 0 : i32
    %c0_i32_0 = arith.constant 0 : i32
    %c0_i32_1 = arith.constant 0 : i32
    return %arg1, %c0_i32, %c0_i32_0 : i32, i32, i32
  }
  func.func @transform_6(%arg0: i32, %arg1: i32) -> (i32, i32, i32) {
    %c0_i32 = arith.constant 0 : i32
    %c0_i32_0 = arith.constant 0 : i32
    %c0_i32_1 = arith.constant 0 : i32
    return %arg1, %c0_i32, %c0_i32_0 : i32, i32, i32
  }
  func.func @transform_7(%arg0: i32, %arg1: i32) -> (i32, i32, i32) {
    %c0_i32 = arith.constant 0 : i32
    %c0_i32_0 = arith.constant 0 : i32
    %c0_i32_1 = arith.constant 0 : i32
    return %arg1, %c0_i32, %c0_i32_0 : i32, i32, i32
  }
  func.func @transform_8(%arg0: i32, %arg1: i32) -> (i32, i32, i32) {
    %c0_i32 = arith.constant 0 : i32
    %c0_i32_0 = arith.constant 0 : i32
    %c0_i32_1 = arith.constant 0 : i32
    return %arg1, %c0_i32, %c0_i32_0 : i32, i32, i32
  }
  func.func @transform_9(%arg0: i32, %arg1: i32) -> (i32, i32, i32) {
    %c0_i32 = arith.constant 0 : i32
    %c0_i32_0 = arith.constant 0 : i32
    %c0_i32_1 = arith.constant 0 : i32
    return %arg1, %c0_i32, %c0_i32_0 : i32, i32, i32
  }
  func.func @transform_10(%arg0: i32, %arg1: i32) -> (i32, i32, i32) {
    %c0_i32 = arith.constant 0 : i32
    %c0_i32_0 = arith.constant 0 : i32
    %c0_i32_1 = arith.constant 0 : i32
    return %arg1, %c0_i32, %c0_i32_0 : i32, i32, i32
  }
  func.func @transform_11(%arg0: i32, %arg1: i32) -> (i32, i32, i32) {
    %c0_i32 = arith.constant 0 : i32
    %c0_i32_0 = arith.constant 0 : i32
    %c0_i32_1 = arith.constant 0 : i32
    return %arg1, %c0_i32, %c0_i32_0 : i32, i32, i32
  }
  func.func @transform_12(%arg0: i32, %arg1: i32) -> (i32, i32, i32) {
    %c0_i32 = arith.constant 0 : i32
    %c0_i32_0 = arith.constant 0 : i32
    %c0_i32_1 = arith.constant 0 : i32
    return %arg1, %c0_i32, %c0_i32_0 : i32, i32, i32
  }
  func.func @transform_13(%arg0: i32, %arg1: i32) -> (i32, i32, i32) {
    %c0_i32 = arith.constant 0 : i32
    %c0_i32_0 = arith.constant 0 : i32
    %c0_i32_1 = arith.constant 0 : i32
    return %arg1, %c0_i32, %c0_i32_0 : i32, i32, i32
  }
  func.func @transform_14(%arg0: i32, %arg1: i32) -> (i32, i32, i32) {
    %c0_i32 = arith.constant 0 : i32
    %c0_i32_0 = arith.constant 0 : i32
    %c0_i32_1 = arith.constant 0 : i32
    return %arg0, %c0_i32, %c0_i32_0 : i32, i32, i32
  }
}

module attributes {stable_mosaic.version = 11 : i64} {
  func.func @_decoder_kernel(%arg0: i32, %arg1: i32, %arg2: memref<1x7x32xf32, #tpu.memory_space<vmem>>, %arg3: memref<1x8x32xf32, #tpu.memory_space<vmem>>, %arg4: memref<1x1x7xf32, #tpu.memory_space<vmem>>, %arg5: memref<1x1x8xf32, #tpu.memory_space<vmem>>, %arg6: memref<1x32x96xbf16, #tpu.memory_space<vmem>>, %arg7: memref<1x1x96xf32, #tpu.memory_space<vmem>>, %arg8: memref<1x32x32xbf16, #tpu.memory_space<vmem>>, %arg9: memref<1x1x32xf32, #tpu.memory_space<vmem>>, %arg10: memref<1x1x32xf32, #tpu.memory_space<vmem>>, %arg11: memref<1x1x32xf32, #tpu.memory_space<vmem>>, %arg12: memref<1x32x32xbf16, #tpu.memory_space<vmem>>, %arg13: memref<1x1x32xf32, #tpu.memory_space<vmem>>, %arg14: memref<1x32x64xbf16, #tpu.memory_space<vmem>>, %arg15: memref<1x1x64xf32, #tpu.memory_space<vmem>>, %arg16: memref<1x32x32xbf16, #tpu.memory_space<vmem>>, %arg17: memref<1x1x32xf32, #tpu.memory_space<vmem>>, %arg18: memref<1x1x32xf32, #tpu.memory_space<vmem>>, %arg19: memref<1x1x32xf32, #tpu.memory_space<vmem>>, %arg20: memref<1x32x64xbf16, #tpu.memory_space<vmem>>, %arg21: memref<1x1x64xf32, #tpu.memory_space<vmem>>, %arg22: memref<1x64x32xbf16, #tpu.memory_space<vmem>>, %arg23: memref<1x1x32xf32, #tpu.memory_space<vmem>>, %arg24: memref<1x1x32xf32, #tpu.memory_space<vmem>>, %arg25: memref<1x1x32xf32, #tpu.memory_space<vmem>>, %arg26: memref<32x32xbf16, #tpu.memory_space<vmem>>, %arg27: memref<1x32xf32, #tpu.memory_space<vmem>>, %arg28: memref<1x7x32xf32, #tpu.memory_space<vmem>>, %arg29: memref<7x32xf32, #tpu.memory_space<vmem>>, %arg30: memref<7x96xf32, #tpu.memory_space<vmem>>, %arg31: memref<8x64xf32, #tpu.memory_space<vmem>>, %arg32: memref<7x32xf32, #tpu.memory_space<vmem>>) attributes {dimension_semantics = [#tpu.dimension_semantics<parallel>, #tpu.dimension_semantics<arbitrary>], iteration_bounds = array<i64: 2, 2>, scalar_prefetch = 0 : i64, scratch_operands = 4 : i64, tpu.core_type = #tpu.core_type<tc>, window_params = [{transform_indices = @transform_0, window_bounds = array<i64: 1, 7, 32>}, {transform_indices = @transform_1, window_bounds = array<i64: 1, 8, 32>}, {transform_indices = @transform_2, window_bounds = array<i64: 1, 1, 7>}, {transform_indices = @transform_3, window_bounds = array<i64: 1, 1, 8>}, {transform_indices = @transform_4, window_bounds = array<i64: 1, 32, 96>}, {transform_indices = @transform_5, window_bounds = array<i64: 1, 1, 96>}, {transform_indices = @transform_6, window_bounds = array<i64: 1, 32, 32>}, {transform_indices = @transform_7, window_bounds = array<i64: 1, 1, 32>}, {transform_indices = @transform_8, window_bounds = array<i64: 1, 1, 32>}, {transform_indices = @transform_9, window_bounds = array<i64: 1, 1, 32>}, {transform_indices = @transform_10, window_bounds = array<i64: 1, 32, 32>}, {transform_indices = @transform_11, window_bounds = array<i64: 1, 1, 32>}, {transform_indices = @transform_12, window_bounds = array<i64: 1, 32, 64>}, {transform_indices = @transform_13, window_bounds = array<i64: 1, 1, 64>}, {transform_indices = @transform_14, window_bounds = array<i64: 1, 32, 32>}, {transform_indices = @transform_15, window_bounds = array<i64: 1, 1, 32>}, {transform_indices = @transform_16, window_bounds = array<i64: 1, 1, 32>}, {transform_indices = @transform_17, window_bounds = array<i64: 1, 1, 32>}, {transform_indices = @transform_18, window_bounds = array<i64: 1, 32, 64>}, {transform_indices = @transform_19, window_bounds = array<i64: 1, 1, 64>}, {transform_indices = @transform_20, window_bounds = array<i64: 1, 64, 32>}, {transform_indices = @transform_21, window_bounds = array<i64: 1, 1, 32>}, {transform_indices = @transform_22, window_bounds = array<i64: 1, 1, 32>}, {transform_indices = @transform_23, window_bounds = array<i64: 1, 1, 32>}, {pipeline_mode = #tpu.pipeline_mode<synchronous>, transform_indices = @transform_24, window_bounds = array<i64: 32, 32>}, {pipeline_mode = #tpu.pipeline_mode<synchronous>, transform_indices = @transform_25, window_bounds = array<i64: 1, 32>}, {transform_indices = @transform_26, window_bounds = array<i64: 1, 7, 32>}]} {
    %c0_i32 = arith.constant 0 : i32
    %0 = arith.cmpi eq, %arg1, %c0_i32 : i32
    %1 = arith.extui %0 : i1 to i32
    %c0_i32_0 = arith.constant 0 : i32
    %2 = arith.cmpi ne, %1, %c0_i32_0 : i32
    scf.if %2 {
      %c0_201 = arith.constant 0 : index
      %c0_202 = arith.constant 0 : index
      %c0_203 = arith.constant 0 : index
      %348 = vector.load %arg2[%c0_201, %c0_202, %c0_203] : memref<1x7x32xf32, #tpu.memory_space<vmem>>, vector<1x7x32xf32>
      %349 = vector.shape_cast %348 : vector<1x7x32xf32> to vector<7x32xf32>
      %c0_204 = arith.constant 0 : index
      %c0_205 = arith.constant 0 : index
      %350 = vector.load %arg29[%c0_204, %c0_205] : memref<7x32xf32, #tpu.memory_space<vmem>>, vector<7x32xf32>
      tpu.vector_store %arg29[%c0_204, %c0_205], %349 {strides = array<i32>} : memref<7x32xf32, #tpu.memory_space<vmem>>, vector<7x32xf32>,
    } else {
    }
    %c0 = arith.constant 0 : index
    %c0_1 = arith.constant 0 : index
    %3 = vector.load %arg29[%c0, %c0_1] : memref<7x32xf32, #tpu.memory_space<vmem>>, vector<7x32xf32>
    %4 = tpu.iota {dimensions = array<i32: 0>} : vector<7x7xi32>
    %5 = tpu.iota {dimensions = array<i32: 1>} : vector<7x7xi32>
    %6 = arith.cmpi sgt, %5, %4 : vector<7x7xi32>
    %cst = arith.constant -1.000000e+09 : f32
    %cst_2 = arith.constant 0.000000e+00 : f32
    %7 = vector.broadcast %cst : f32 to vector<7x7xf32>
    %8 = vector.broadcast %cst_2 : f32 to vector<7x7xf32>
    %9 = arith.select %6, %7, %8 : vector<7x7xi1>, vector<7x7xf32>
    %c0_3 = arith.constant 0 : index
    %c0_4 = arith.constant 0 : index
    %c0_5 = arith.constant 0 : index
    %10 = vector.load %arg4[%c0_3, %c0_4, %c0_5] : memref<1x1x7xf32, #tpu.memory_space<vmem>>, vector<1x1x7xf32>
    %11 = vector.shape_cast %10 : vector<1x1x7xf32> to vector<1x7xf32>
    %12 = vector.broadcast %11 : vector<1x7xf32> to vector<7x7xf32>
    %13 = arith.addf %9, %12 : vector<7x7xf32>
    %c0_6 = arith.constant 0 : index
    %c0_7 = arith.constant 0 : index
    %c0_8 = arith.constant 0 : index
    %14 = vector.load %arg5[%c0_6, %c0_7, %c0_8] : memref<1x1x8xf32, #tpu.memory_space<vmem>>, vector<1x1x8xf32>
    %15 = vector.shape_cast %14 : vector<1x1x8xf32> to vector<1x8xf32>
    %16 = arith.truncf %3 : vector<7x32xf32> to vector<7x32xbf16>
    %c0_9 = arith.constant 0 : index
    %c0_10 = arith.constant 0 : index
    %c0_11 = arith.constant 0 : index
    %17 = vector.load %arg6[%c0_9, %c0_10, %c0_11] : memref<1x32x96xbf16, #tpu.memory_space<vmem>>, vector<1x32x96xbf16>
    %18 = vector.shape_cast %17 : vector<1x32x96xbf16> to vector<32x96xbf16>
    %cst_12 = arith.constant dense<0.000000e+00> : vector<7x96xf32>
    %19 = tpu.matmul %16, %18, %cst_12 {dimension_numbers = #tpu.dot_dimension_numbers<[1], [0], [0], [1], [0, 0, 1, 1], [], []>} : vector<7x32xbf16>, vector<32x96xbf16>, vector<7x96xf32> -> vector<7x96xf32>
    %c0_13 = arith.constant 0 : index
    %c0_14 = arith.constant 0 : index
    %c0_15 = arith.constant 0 : index
    %20 = vector.load %arg7[%c0_13, %c0_14, %c0_15] : memref<1x1x96xf32, #tpu.memory_space<vmem>>, vector<1x1x96xf32>
    %21 = vector.shape_cast %20 : vector<1x1x96xf32> to vector<1x96xf32>
    %22 = vector.broadcast %21 : vector<1x96xf32> to vector<7x96xf32>
    %23 = arith.addf %19, %22 : vector<7x96xf32>
    %c0_16 = arith.constant 0 : index
    %c0_17 = arith.constant 0 : index
    %24 = vector.load %arg30[%c0_16, %c0_17] : memref<7x96xf32, #tpu.memory_space<vmem>>, vector<7x96xf32>
    tpu.vector_store %arg30[%c0_16, %c0_17], %23 {strides = array<i32>} : memref<7x96xf32, #tpu.memory_space<vmem>>, vector<7x96xf32>,
    %c0_18 = arith.constant 0 : index
    %c0_19 = arith.constant 0 : index
    %25 = vector.load %arg30[%c0_18, %c0_19] : memref<7x96xf32, #tpu.memory_space<vmem>>, vector<7x8xf32>
    %c0_20 = arith.constant 0 : index
    %c32 = arith.constant 32 : index
    %26 = vector.load %arg30[%c0_20, %c32] : memref<7x96xf32, #tpu.memory_space<vmem>>, vector<7x8xf32>
    %c0_21 = arith.constant 0 : index
    %c64 = arith.constant 64 : index
    %27 = vector.load %arg30[%c0_21, %c64] : memref<7x96xf32, #tpu.memory_space<vmem>>, vector<7x8xf32>
    %28 = arith.truncf %25 : vector<7x8xf32> to vector<7x8xbf16>
    %29 = arith.truncf %26 : vector<7x8xf32> to vector<7x8xbf16>
    %cst_22 = arith.constant dense<0.000000e+00> : vector<7x7xf32>
    %30 = tpu.matmul %28, %29, %cst_22 {dimension_numbers = #tpu.dot_dimension_numbers<[1], [1], [0], [0], [0, 0, 1, 0], [], []>} : vector<7x8xbf16>, vector<7x8xbf16>, vector<7x7xf32> -> vector<7x7xf32>
    %cst_23 = arith.constant 0.353553385 : f32
    %31 = vector.broadcast %cst_23 : f32 to vector<7x7xf32>
    %32 = arith.mulf %30, %31 : vector<7x7xf32>
    %33 = arith.addf %32, %13 : vector<7x7xf32>
    %cst_24 = arith.constant dense<0xFF800000> : vector<7xf32>
    %34 = vector.multi_reduction <maximumf>, %33, %cst_24 [1] : vector<7x7xf32> to vector<7xf32>
    %35 = vector.shape_cast %34 : vector<7xf32> to vector<7x1xf32>
    %36 = vector.broadcast %35 : vector<7x1xf32> to vector<7x7xf32>
    %37 = arith.subf %33, %36 : vector<7x7xf32>
    %38 = math.exp %37 : vector<7x7xf32>
    %cst_25 = arith.constant dense<0.000000e+00> : vector<7xf32>
    %39 = vector.multi_reduction <add>, %38, %cst_25 [1] : vector<7x7xf32> to vector<7xf32>
    %40 = vector.shape_cast %39 : vector<7xf32> to vector<7x1xf32>
    %41 = tpu.reciprocal %40 {approx = true} : vector<7x1xf32> -> vector<7x1xf32>
    %42 = vector.broadcast %41 : vector<7x1xf32> to vector<7x7xf32>
    %43 = arith.mulf %38, %42 : vector<7x7xf32>
    %44 = arith.truncf %43 : vector<7x7xf32> to vector<7x7xbf16>
    %45 = arith.truncf %27 : vector<7x8xf32> to vector<7x8xbf16>
    %cst_26 = arith.constant dense<0.000000e+00> : vector<7x8xf32>
    %46 = tpu.matmul %44, %45, %cst_26 {dimension_numbers = #tpu.dot_dimension_numbers<[1], [0], [0], [1], [0, 0, 1, 1], [], []>} : vector<7x7xbf16>, vector<7x8xbf16>, vector<7x8xf32> -> vector<7x8xf32>
    %c0_27 = arith.constant 0 : index
    %c0_28 = arith.constant 0 : index
    %47 = vector.load %arg32[%c0_27, %c0_28] : memref<7x32xf32, #tpu.memory_space<vmem>>, vector<7x8xf32>
    tpu.vector_store %arg32[%c0_27, %c0_28], %46 {strides = array<i32>} : memref<7x32xf32, #tpu.memory_space<vmem>>, vector<7x8xf32>,
    %c0_29 = arith.constant 0 : index
    %c8 = arith.constant 8 : index
    %48 = vector.load %arg30[%c0_29, %c8] : memref<7x96xf32, #tpu.memory_space<vmem>>, vector<7x8xf32>
    %c0_30 = arith.constant 0 : index
    %c40 = arith.constant 40 : index
    %49 = vector.load %arg30[%c0_30, %c40] : memref<7x96xf32, #tpu.memory_space<vmem>>, vector<7x8xf32>
    %c0_31 = arith.constant 0 : index
    %c72 = arith.constant 72 : index
    %50 = vector.load %arg30[%c0_31, %c72] : memref<7x96xf32, #tpu.memory_space<vmem>>, vector<7x8xf32>
    %51 = arith.truncf %48 : vector<7x8xf32> to vector<7x8xbf16>
    %52 = arith.truncf %49 : vector<7x8xf32> to vector<7x8xbf16>
    %cst_32 = arith.constant dense<0.000000e+00> : vector<7x7xf32>
    %53 = tpu.matmul %51, %52, %cst_32 {dimension_numbers = #tpu.dot_dimension_numbers<[1], [1], [0], [0], [0, 0, 1, 0], [], []>} : vector<7x8xbf16>, vector<7x8xbf16>, vector<7x7xf32> -> vector<7x7xf32>
    %cst_33 = arith.constant 0.353553385 : f32
    %54 = vector.broadcast %cst_33 : f32 to vector<7x7xf32>
    %55 = arith.mulf %53, %54 : vector<7x7xf32>
    %56 = arith.addf %55, %13 : vector<7x7xf32>
    %cst_34 = arith.constant dense<0xFF800000> : vector<7xf32>
    %57 = vector.multi_reduction <maximumf>, %56, %cst_34 [1] : vector<7x7xf32> to vector<7xf32>
    %58 = vector.shape_cast %57 : vector<7xf32> to vector<7x1xf32>
    %59 = vector.broadcast %58 : vector<7x1xf32> to vector<7x7xf32>
    %60 = arith.subf %56, %59 : vector<7x7xf32>
    %61 = math.exp %60 : vector<7x7xf32>
    %cst_35 = arith.constant dense<0.000000e+00> : vector<7xf32>
    %62 = vector.multi_reduction <add>, %61, %cst_35 [1] : vector<7x7xf32> to vector<7xf32>
    %63 = vector.shape_cast %62 : vector<7xf32> to vector<7x1xf32>
    %64 = tpu.reciprocal %63 {approx = true} : vector<7x1xf32> -> vector<7x1xf32>
    %65 = vector.broadcast %64 : vector<7x1xf32> to vector<7x7xf32>
    %66 = arith.mulf %61, %65 : vector<7x7xf32>
    %67 = arith.truncf %66 : vector<7x7xf32> to vector<7x7xbf16>
    %68 = arith.truncf %50 : vector<7x8xf32> to vector<7x8xbf16>
    %cst_36 = arith.constant dense<0.000000e+00> : vector<7x8xf32>
    %69 = tpu.matmul %67, %68, %cst_36 {dimension_numbers = #tpu.dot_dimension_numbers<[1], [0], [0], [1], [0, 0, 1, 1], [], []>} : vector<7x7xbf16>, vector<7x8xbf16>, vector<7x8xf32> -> vector<7x8xf32>
    %c0_37 = arith.constant 0 : index
    %c8_38 = arith.constant 8 : index
    %70 = vector.load %arg32[%c0_37, %c8_38] : memref<7x32xf32, #tpu.memory_space<vmem>>, vector<7x8xf32>
    tpu.vector_store %arg32[%c0_37, %c8_38], %69 {strides = array<i32>} : memref<7x32xf32, #tpu.memory_space<vmem>>, vector<7x8xf32>,
    %c0_39 = arith.constant 0 : index
    %c16 = arith.constant 16 : index
    %71 = vector.load %arg30[%c0_39, %c16] : memref<7x96xf32, #tpu.memory_space<vmem>>, vector<7x8xf32>
    %c0_40 = arith.constant 0 : index
    %c48 = arith.constant 48 : index
    %72 = vector.load %arg30[%c0_40, %c48] : memref<7x96xf32, #tpu.memory_space<vmem>>, vector<7x8xf32>
    %c0_41 = arith.constant 0 : index
    %c80 = arith.constant 80 : index
    %73 = vector.load %arg30[%c0_41, %c80] : memref<7x96xf32, #tpu.memory_space<vmem>>, vector<7x8xf32>
    %74 = arith.truncf %71 : vector<7x8xf32> to vector<7x8xbf16>
    %75 = arith.truncf %72 : vector<7x8xf32> to vector<7x8xbf16>
    %cst_42 = arith.constant dense<0.000000e+00> : vector<7x7xf32>
    %76 = tpu.matmul %74, %75, %cst_42 {dimension_numbers = #tpu.dot_dimension_numbers<[1], [1], [0], [0], [0, 0, 1, 0], [], []>} : vector<7x8xbf16>, vector<7x8xbf16>, vector<7x7xf32> -> vector<7x7xf32>
    %cst_43 = arith.constant 0.353553385 : f32
    %77 = vector.broadcast %cst_43 : f32 to vector<7x7xf32>
    %78 = arith.mulf %76, %77 : vector<7x7xf32>
    %79 = arith.addf %78, %13 : vector<7x7xf32>
    %cst_44 = arith.constant dense<0xFF800000> : vector<7xf32>
    %80 = vector.multi_reduction <maximumf>, %79, %cst_44 [1] : vector<7x7xf32> to vector<7xf32>
    %81 = vector.shape_cast %80 : vector<7xf32> to vector<7x1xf32>
    %82 = vector.broadcast %81 : vector<7x1xf32> to vector<7x7xf32>
    %83 = arith.subf %79, %82 : vector<7x7xf32>
    %84 = math.exp %83 : vector<7x7xf32>
    %cst_45 = arith.constant dense<0.000000e+00> : vector<7xf32>
    %85 = vector.multi_reduction <add>, %84, %cst_45 [1] : vector<7x7xf32> to vector<7xf32>
    %86 = vector.shape_cast %85 : vector<7xf32> to vector<7x1xf32>
    %87 = tpu.reciprocal %86 {approx = true} : vector<7x1xf32> -> vector<7x1xf32>
    %88 = vector.broadcast %87 : vector<7x1xf32> to vector<7x7xf32>
    %89 = arith.mulf %84, %88 : vector<7x7xf32>
    %90 = arith.truncf %89 : vector<7x7xf32> to vector<7x7xbf16>
    %91 = arith.truncf %73 : vector<7x8xf32> to vector<7x8xbf16>
    %cst_46 = arith.constant dense<0.000000e+00> : vector<7x8xf32>
    %92 = tpu.matmul %90, %91, %cst_46 {dimension_numbers = #tpu.dot_dimension_numbers<[1], [0], [0], [1], [0, 0, 1, 1], [], []>} : vector<7x7xbf16>, vector<7x8xbf16>, vector<7x8xf32> -> vector<7x8xf32>
    %c0_47 = arith.constant 0 : index
    %c16_48 = arith.constant 16 : index
    %93 = vector.load %arg32[%c0_47, %c16_48] : memref<7x32xf32, #tpu.memory_space<vmem>>, vector<7x8xf32>
    tpu.vector_store %arg32[%c0_47, %c16_48], %92 {strides = array<i32>} : memref<7x32xf32, #tpu.memory_space<vmem>>, vector<7x8xf32>,
    %c0_49 = arith.constant 0 : index
    %c24 = arith.constant 24 : index
    %94 = vector.load %arg30[%c0_49, %c24] : memref<7x96xf32, #tpu.memory_space<vmem>>, vector<7x8xf32>
    %c0_50 = arith.constant 0 : index
    %c56 = arith.constant 56 : index
    %95 = vector.load %arg30[%c0_50, %c56] : memref<7x96xf32, #tpu.memory_space<vmem>>, vector<7x8xf32>
    %c0_51 = arith.constant 0 : index
    %c88 = arith.constant 88 : index
    %96 = vector.load %arg30[%c0_51, %c88] : memref<7x96xf32, #tpu.memory_space<vmem>>, vector<7x8xf32>
    %97 = arith.truncf %94 : vector<7x8xf32> to vector<7x8xbf16>
    %98 = arith.truncf %95 : vector<7x8xf32> to vector<7x8xbf16>
    %cst_52 = arith.constant dense<0.000000e+00> : vector<7x7xf32>
    %99 = tpu.matmul %97, %98, %cst_52 {dimension_numbers = #tpu.dot_dimension_numbers<[1], [1], [0], [0], [0, 0, 1, 0], [], []>} : vector<7x8xbf16>, vector<7x8xbf16>, vector<7x7xf32> -> vector<7x7xf32>
    %cst_53 = arith.constant 0.353553385 : f32
    %100 = vector.broadcast %cst_53 : f32 to vector<7x7xf32>
    %101 = arith.mulf %99, %100 : vector<7x7xf32>
    %102 = arith.addf %101, %13 : vector<7x7xf32>
    %cst_54 = arith.constant dense<0xFF800000> : vector<7xf32>
    %103 = vector.multi_reduction <maximumf>, %102, %cst_54 [1] : vector<7x7xf32> to vector<7xf32>
    %104 = vector.shape_cast %103 : vector<7xf32> to vector<7x1xf32>
    %105 = vector.broadcast %104 : vector<7x1xf32> to vector<7x7xf32>
    %106 = arith.subf %102, %105 : vector<7x7xf32>
    %107 = math.exp %106 : vector<7x7xf32>
    %cst_55 = arith.constant dense<0.000000e+00> : vector<7xf32>
    %108 = vector.multi_reduction <add>, %107, %cst_55 [1] : vector<7x7xf32> to vector<7xf32>
    %109 = vector.shape_cast %108 : vector<7xf32> to vector<7x1xf32>
    %110 = tpu.reciprocal %109 {approx = true} : vector<7x1xf32> -> vector<7x1xf32>
    %111 = vector.broadcast %110 : vector<7x1xf32> to vector<7x7xf32>
    %112 = arith.mulf %107, %111 : vector<7x7xf32>
    %113 = arith.truncf %112 : vector<7x7xf32> to vector<7x7xbf16>
    %114 = arith.truncf %96 : vector<7x8xf32> to vector<7x8xbf16>
    %cst_56 = arith.constant dense<0.000000e+00> : vector<7x8xf32>
    %115 = tpu.matmul %113, %114, %cst_56 {dimension_numbers = #tpu.dot_dimension_numbers<[1], [0], [0], [1], [0, 0, 1, 1], [], []>} : vector<7x7xbf16>, vector<7x8xbf16>, vector<7x8xf32> -> vector<7x8xf32>
    %c0_57 = arith.constant 0 : index
    %c24_58 = arith.constant 24 : index
    %116 = vector.load %arg32[%c0_57, %c24_58] : memref<7x32xf32, #tpu.memory_space<vmem>>, vector<7x8xf32>
    tpu.vector_store %arg32[%c0_57, %c24_58], %115 {strides = array<i32>} : memref<7x32xf32, #tpu.memory_space<vmem>>, vector<7x8xf32>,
    %c0_59 = arith.constant 0 : index
    %c0_60 = arith.constant 0 : index
    %117 = vector.load %arg32[%c0_59, %c0_60] : memref<7x32xf32, #tpu.memory_space<vmem>>, vector<7x32xf32>
    %118 = arith.truncf %117 : vector<7x32xf32> to vector<7x32xbf16>
    %c0_61 = arith.constant 0 : index
    %c0_62 = arith.constant 0 : index
    %c0_63 = arith.constant 0 : index
    %119 = vector.load %arg8[%c0_61, %c0_62, %c0_63] : memref<1x32x32xbf16, #tpu.memory_space<vmem>>, vector<1x32x32xbf16>
    %120 = vector.shape_cast %119 : vector<1x32x32xbf16> to vector<32x32xbf16>
    %cst_64 = arith.constant dense<0.000000e+00> : vector<7x32xf32>
    %121 = tpu.matmul %118, %120, %cst_64 {dimension_numbers = #tpu.dot_dimension_numbers<[1], [0], [0], [1], [0, 0, 1, 1], [], []>} : vector<7x32xbf16>, vector<32x32xbf16>, vector<7x32xf32> -> vector<7x32xf32>
    %c0_65 = arith.constant 0 : index
    %c0_66 = arith.constant 0 : index
    %c0_67 = arith.constant 0 : index
    %122 = vector.load %arg9[%c0_65, %c0_66, %c0_67] : memref<1x1x32xf32, #tpu.memory_space<vmem>>, vector<1x1x32xf32>
    %123 = vector.shape_cast %122 : vector<1x1x32xf32> to vector<1x32xf32>
    %124 = vector.broadcast %123 : vector<1x32xf32> to vector<7x32xf32>
    %125 = arith.addf %121, %124 : vector<7x32xf32>
    %126 = arith.addf %3, %125 : vector<7x32xf32>
    %c0_68 = arith.constant 0 : index
    %c0_69 = arith.constant 0 : index
    %c0_70 = arith.constant 0 : index
    %127 = vector.load %arg10[%c0_68, %c0_69, %c0_70] : memref<1x1x32xf32, #tpu.memory_space<vmem>>, vector<1x1x32xf32>
    %128 = vector.shape_cast %127 : vector<1x1x32xf32> to vector<1x32xf32>
    %c0_71 = arith.constant 0 : index
    %c0_72 = arith.constant 0 : index
    %c0_73 = arith.constant 0 : index
    %129 = vector.load %arg11[%c0_71, %c0_72, %c0_73] : memref<1x1x32xf32, #tpu.memory_space<vmem>>, vector<1x1x32xf32>
    %130 = vector.shape_cast %129 : vector<1x1x32xf32> to vector<1x32xf32>
    %cst_74 = arith.constant dense<0.000000e+00> : vector<7xf32>
    %131 = vector.multi_reduction <add>, %126, %cst_74 [1] : vector<7x32xf32> to vector<7xf32>
    %132 = vector.shape_cast %131 : vector<7xf32> to vector<7x1xf32>
    %cst_75 = arith.constant 3.200000e+01 : f32
    %133 = vector.broadcast %cst_75 : f32 to vector<7x1xf32>
    %134 = arith.divf %132, %133 : vector<7x1xf32>
    %135 = vector.broadcast %134 : vector<7x1xf32> to vector<7x32xf32>
    %136 = arith.subf %126, %135 : vector<7x32xf32>
    %137 = arith.mulf %136, %136 : vector<7x32xf32>
    %cst_76 = arith.constant dense<0.000000e+00> : vector<7xf32>
    %138 = vector.multi_reduction <add>, %137, %cst_76 [1] : vector<7x32xf32> to vector<7xf32>
    %139 = vector.shape_cast %138 : vector<7xf32> to vector<7x1xf32>
    %cst_77 = arith.constant 3.200000e+01 : f32
    %140 = vector.broadcast %cst_77 : f32 to vector<7x1xf32>
    %141 = arith.divf %139, %140 : vector<7x1xf32>
    %cst_78 = arith.constant 9.99999974E-6 : f32
    %142 = vector.broadcast %cst_78 : f32 to vector<7x1xf32>
    %143 = arith.addf %141, %142 : vector<7x1xf32>
    %144 = math.rsqrt %143 : vector<7x1xf32>
    %145 = vector.broadcast %144 : vector<7x1xf32> to vector<7x32xf32>
    %146 = arith.mulf %136, %145 : vector<7x32xf32>
    %147 = vector.broadcast %128 : vector<1x32xf32> to vector<7x32xf32>
    %148 = arith.mulf %146, %147 : vector<7x32xf32>
    %149 = vector.broadcast %130 : vector<1x32xf32> to vector<7x32xf32>
    %150 = arith.addf %148, %149 : vector<7x32xf32>
    %151 = arith.truncf %150 : vector<7x32xf32> to vector<7x32xbf16>
    %c0_79 = arith.constant 0 : index
    %c0_80 = arith.constant 0 : index
    %c0_81 = arith.constant 0 : index
    %152 = vector.load %arg12[%c0_79, %c0_80, %c0_81] : memref<1x32x32xbf16, #tpu.memory_space<vmem>>, vector<1x32x32xbf16>
    %153 = vector.shape_cast %152 : vector<1x32x32xbf16> to vector<32x32xbf16>
    %cst_82 = arith.constant dense<0.000000e+00> : vector<7x32xf32>
    %154 = tpu.matmul %151, %153, %cst_82 {dimension_numbers = #tpu.dot_dimension_numbers<[1], [0], [0], [1], [0, 0, 1, 1], [], []>} : vector<7x32xbf16>, vector<32x32xbf16>, vector<7x32xf32> -> vector<7x32xf32>
    %c0_83 = arith.constant 0 : index
    %c0_84 = arith.constant 0 : index
    %c0_85 = arith.constant 0 : index
    %155 = vector.load %arg13[%c0_83, %c0_84, %c0_85] : memref<1x1x32xf32, #tpu.memory_space<vmem>>, vector<1x1x32xf32>
    %156 = vector.shape_cast %155 : vector<1x1x32xf32> to vector<1x32xf32>
    %157 = vector.broadcast %156 : vector<1x32xf32> to vector<7x32xf32>
    %158 = arith.addf %154, %157 : vector<7x32xf32>
    %c0_86 = arith.constant 0 : index
    %c0_87 = arith.constant 0 : index
    %159 = vector.load %arg30[%c0_86, %c0_87] : memref<7x96xf32, #tpu.memory_space<vmem>>, vector<7x32xf32>
    tpu.vector_store %arg30[%c0_86, %c0_87], %158 {strides = array<i32>} : memref<7x96xf32, #tpu.memory_space<vmem>>, vector<7x32xf32>,
    %c0_88 = arith.constant 0 : index
    %c0_89 = arith.constant 0 : index
    %c0_90 = arith.constant 0 : index
    %160 = vector.load %arg3[%c0_88, %c0_89, %c0_90] : memref<1x8x32xf32, #tpu.memory_space<vmem>>, vector<1x8x32xf32>
    %161 = vector.shape_cast %160 : vector<1x8x32xf32> to vector<8x32xf32>
    %162 = arith.truncf %161 : vector<8x32xf32> to vector<8x32xbf16>
    %c0_91 = arith.constant 0 : index
    %c0_92 = arith.constant 0 : index
    %c0_93 = arith.constant 0 : index
    %163 = vector.load %arg14[%c0_91, %c0_92, %c0_93] : memref<1x32x64xbf16, #tpu.memory_space<vmem>>, vector<1x32x64xbf16>
    %164 = vector.shape_cast %163 : vector<1x32x64xbf16> to vector<32x64xbf16>
    %cst_94 = arith.constant dense<0.000000e+00> : vector<8x64xf32>
    %165 = tpu.matmul %162, %164, %cst_94 {dimension_numbers = #tpu.dot_dimension_numbers<[1], [0], [0], [1], [0, 0, 1, 1], [], []>} : vector<8x32xbf16>, vector<32x64xbf16>, vector<8x64xf32> -> vector<8x64xf32>
    %c0_95 = arith.constant 0 : index
    %c0_96 = arith.constant 0 : index
    %c0_97 = arith.constant 0 : index
    %166 = vector.load %arg15[%c0_95, %c0_96, %c0_97] : memref<1x1x64xf32, #tpu.memory_space<vmem>>, vector<1x1x64xf32>
    %167 = vector.shape_cast %166 : vector<1x1x64xf32> to vector<1x64xf32>
    %168 = vector.broadcast %167 : vector<1x64xf32> to vector<8x64xf32>
    %169 = arith.addf %165, %168 : vector<8x64xf32>
    %c0_98 = arith.constant 0 : index
    %c0_99 = arith.constant 0 : index
    %170 = vector.load %arg31[%c0_98, %c0_99] : memref<8x64xf32, #tpu.memory_space<vmem>>, vector<8x64xf32>
    tpu.vector_store %arg31[%c0_98, %c0_99], %169 {strides = array<i32>} : memref<8x64xf32, #tpu.memory_space<vmem>>, vector<8x64xf32>,
    %c0_100 = arith.constant 0 : index
    %c0_101 = arith.constant 0 : index
    %171 = vector.load %arg30[%c0_100, %c0_101] : memref<7x96xf32, #tpu.memory_space<vmem>>, vector<7x8xf32>
    %c0_102 = arith.constant 0 : index
    %c0_103 = arith.constant 0 : index
    %172 = vector.load %arg31[%c0_102, %c0_103] : memref<8x64xf32, #tpu.memory_space<vmem>>, vector<8x8xf32>
    %c0_104 = arith.constant 0 : index
    %c32_105 = arith.constant 32 : index
    %173 = vector.load %arg31[%c0_104, %c32_105] : memref<8x64xf32, #tpu.memory_space<vmem>>, vector<8x8xf32>
    %174 = arith.truncf %171 : vector<7x8xf32> to vector<7x8xbf16>
    %175 = arith.truncf %172 : vector<8x8xf32> to vector<8x8xbf16>
    %cst_106 = arith.constant dense<0.000000e+00> : vector<7x8xf32>
    %176 = tpu.matmul %174, %175, %cst_106 {dimension_numbers = #tpu.dot_dimension_numbers<[1], [1], [0], [0], [0, 0, 1, 0], [], []>} : vector<7x8xbf16>, vector<8x8xbf16>, vector<7x8xf32> -> vector<7x8xf32>
    %cst_107 = arith.constant 0.353553385 : f32
    %177 = vector.broadcast %cst_107 : f32 to vector<7x8xf32>
    %178 = arith.mulf %176, %177 : vector<7x8xf32>
    %179 = vector.broadcast %15 : vector<1x8xf32> to vector<7x8xf32>
    %180 = arith.addf %178, %179 : vector<7x8xf32>
    %cst_108 = arith.constant dense<0xFF800000> : vector<7xf32>
    %181 = vector.multi_reduction <maximumf>, %180, %cst_108 [1] : vector<7x8xf32> to vector<7xf32>
    %182 = vector.shape_cast %181 : vector<7xf32> to vector<7x1xf32>
    %183 = vector.broadcast %182 : vector<7x1xf32> to vector<7x8xf32>
    %184 = arith.subf %180, %183 : vector<7x8xf32>
    %185 = math.exp %184 : vector<7x8xf32>
    %cst_109 = arith.constant dense<0.000000e+00> : vector<7xf32>
    %186 = vector.multi_reduction <add>, %185, %cst_109 [1] : vector<7x8xf32> to vector<7xf32>
    %187 = vector.shape_cast %186 : vector<7xf32> to vector<7x1xf32>
    %188 = tpu.reciprocal %187 {approx = true} : vector<7x1xf32> -> vector<7x1xf32>
    %189 = vector.broadcast %188 : vector<7x1xf32> to vector<7x8xf32>
    %190 = arith.mulf %185, %189 : vector<7x8xf32>
    %191 = arith.truncf %190 : vector<7x8xf32> to vector<7x8xbf16>
    %192 = arith.truncf %173 : vector<8x8xf32> to vector<8x8xbf16>
    %cst_110 = arith.constant dense<0.000000e+00> : vector<7x8xf32>
    %193 = tpu.matmul %191, %192, %cst_110 {dimension_numbers = #tpu.dot_dimension_numbers<[1], [0], [0], [1], [0, 0, 1, 1], [], []>} : vector<7x8xbf16>, vector<8x8xbf16>, vector<7x8xf32> -> vector<7x8xf32>
    %c0_111 = arith.constant 0 : index
    %c0_112 = arith.constant 0 : index
    %194 = vector.load %arg32[%c0_111, %c0_112] : memref<7x32xf32, #tpu.memory_space<vmem>>, vector<7x8xf32>
    tpu.vector_store %arg32[%c0_111, %c0_112], %193 {strides = array<i32>} : memref<7x32xf32, #tpu.memory_space<vmem>>, vector<7x8xf32>,
    %c0_113 = arith.constant 0 : index
    %c8_114 = arith.constant 8 : index
    %195 = vector.load %arg30[%c0_113, %c8_114] : memref<7x96xf32, #tpu.memory_space<vmem>>, vector<7x8xf32>
    %c0_115 = arith.constant 0 : index
    %c8_116 = arith.constant 8 : index
    %196 = vector.load %arg31[%c0_115, %c8_116] : memref<8x64xf32, #tpu.memory_space<vmem>>, vector<8x8xf32>
    %c0_117 = arith.constant 0 : index
    %c40_118 = arith.constant 40 : index
    %197 = vector.load %arg31[%c0_117, %c40_118] : memref<8x64xf32, #tpu.memory_space<vmem>>, vector<8x8xf32>
    %198 = arith.truncf %195 : vector<7x8xf32> to vector<7x8xbf16>
    %199 = arith.truncf %196 : vector<8x8xf32> to vector<8x8xbf16>
    %cst_119 = arith.constant dense<0.000000e+00> : vector<7x8xf32>
    %200 = tpu.matmul %198, %199, %cst_119 {dimension_numbers = #tpu.dot_dimension_numbers<[1], [1], [0], [0], [0, 0, 1, 0], [], []>} : vector<7x8xbf16>, vector<8x8xbf16>, vector<7x8xf32> -> vector<7x8xf32>
    %cst_120 = arith.constant 0.353553385 : f32
    %201 = vector.broadcast %cst_120 : f32 to vector<7x8xf32>
    %202 = arith.mulf %200, %201 : vector<7x8xf32>
    %203 = vector.broadcast %15 : vector<1x8xf32> to vector<7x8xf32>
    %204 = arith.addf %202, %203 : vector<7x8xf32>
    %cst_121 = arith.constant dense<0xFF800000> : vector<7xf32>
    %205 = vector.multi_reduction <maximumf>, %204, %cst_121 [1] : vector<7x8xf32> to vector<7xf32>
    %206 = vector.shape_cast %205 : vector<7xf32> to vector<7x1xf32>
    %207 = vector.broadcast %206 : vector<7x1xf32> to vector<7x8xf32>
    %208 = arith.subf %204, %207 : vector<7x8xf32>
    %209 = math.exp %208 : vector<7x8xf32>
    %cst_122 = arith.constant dense<0.000000e+00> : vector<7xf32>
    %210 = vector.multi_reduction <add>, %209, %cst_122 [1] : vector<7x8xf32> to vector<7xf32>
    %211 = vector.shape_cast %210 : vector<7xf32> to vector<7x1xf32>
    %212 = tpu.reciprocal %211 {approx = true} : vector<7x1xf32> -> vector<7x1xf32>
    %213 = vector.broadcast %212 : vector<7x1xf32> to vector<7x8xf32>
    %214 = arith.mulf %209, %213 : vector<7x8xf32>
    %215 = arith.truncf %214 : vector<7x8xf32> to vector<7x8xbf16>
    %216 = arith.truncf %197 : vector<8x8xf32> to vector<8x8xbf16>
    %cst_123 = arith.constant dense<0.000000e+00> : vector<7x8xf32>
    %217 = tpu.matmul %215, %216, %cst_123 {dimension_numbers = #tpu.dot_dimension_numbers<[1], [0], [0], [1], [0, 0, 1, 1], [], []>} : vector<7x8xbf16>, vector<8x8xbf16>, vector<7x8xf32> -> vector<7x8xf32>
    %c0_124 = arith.constant 0 : index
    %c8_125 = arith.constant 8 : index
    %218 = vector.load %arg32[%c0_124, %c8_125] : memref<7x32xf32, #tpu.memory_space<vmem>>, vector<7x8xf32>
    tpu.vector_store %arg32[%c0_124, %c8_125], %217 {strides = array<i32>} : memref<7x32xf32, #tpu.memory_space<vmem>>, vector<7x8xf32>,
    %c0_126 = arith.constant 0 : index
    %c16_127 = arith.constant 16 : index
    %219 = vector.load %arg30[%c0_126, %c16_127] : memref<7x96xf32, #tpu.memory_space<vmem>>, vector<7x8xf32>
    %c0_128 = arith.constant 0 : index
    %c16_129 = arith.constant 16 : index
    %220 = vector.load %arg31[%c0_128, %c16_129] : memref<8x64xf32, #tpu.memory_space<vmem>>, vector<8x8xf32>
    %c0_130 = arith.constant 0 : index
    %c48_131 = arith.constant 48 : index
    %221 = vector.load %arg31[%c0_130, %c48_131] : memref<8x64xf32, #tpu.memory_space<vmem>>, vector<8x8xf32>
    %222 = arith.truncf %219 : vector<7x8xf32> to vector<7x8xbf16>
    %223 = arith.truncf %220 : vector<8x8xf32> to vector<8x8xbf16>
    %cst_132 = arith.constant dense<0.000000e+00> : vector<7x8xf32>
    %224 = tpu.matmul %222, %223, %cst_132 {dimension_numbers = #tpu.dot_dimension_numbers<[1], [1], [0], [0], [0, 0, 1, 0], [], []>} : vector<7x8xbf16>, vector<8x8xbf16>, vector<7x8xf32> -> vector<7x8xf32>
    %cst_133 = arith.constant 0.353553385 : f32
    %225 = vector.broadcast %cst_133 : f32 to vector<7x8xf32>
    %226 = arith.mulf %224, %225 : vector<7x8xf32>
    %227 = vector.broadcast %15 : vector<1x8xf32> to vector<7x8xf32>
    %228 = arith.addf %226, %227 : vector<7x8xf32>
    %cst_134 = arith.constant dense<0xFF800000> : vector<7xf32>
    %229 = vector.multi_reduction <maximumf>, %228, %cst_134 [1] : vector<7x8xf32> to vector<7xf32>
    %230 = vector.shape_cast %229 : vector<7xf32> to vector<7x1xf32>
    %231 = vector.broadcast %230 : vector<7x1xf32> to vector<7x8xf32>
    %232 = arith.subf %228, %231 : vector<7x8xf32>
    %233 = math.exp %232 : vector<7x8xf32>
    %cst_135 = arith.constant dense<0.000000e+00> : vector<7xf32>
    %234 = vector.multi_reduction <add>, %233, %cst_135 [1] : vector<7x8xf32> to vector<7xf32>
    %235 = vector.shape_cast %234 : vector<7xf32> to vector<7x1xf32>
    %236 = tpu.reciprocal %235 {approx = true} : vector<7x1xf32> -> vector<7x1xf32>
    %237 = vector.broadcast %236 : vector<7x1xf32> to vector<7x8xf32>
    %238 = arith.mulf %233, %237 : vector<7x8xf32>
    %239 = arith.truncf %238 : vector<7x8xf32> to vector<7x8xbf16>
    %240 = arith.truncf %221 : vector<8x8xf32> to vector<8x8xbf16>
    %cst_136 = arith.constant dense<0.000000e+00> : vector<7x8xf32>
    %241 = tpu.matmul %239, %240, %cst_136 {dimension_numbers = #tpu.dot_dimension_numbers<[1], [0], [0], [1], [0, 0, 1, 1], [], []>} : vector<7x8xbf16>, vector<8x8xbf16>, vector<7x8xf32> -> vector<7x8xf32>
    %c0_137 = arith.constant 0 : index
    %c16_138 = arith.constant 16 : index
    %242 = vector.load %arg32[%c0_137, %c16_138] : memref<7x32xf32, #tpu.memory_space<vmem>>, vector<7x8xf32>
    tpu.vector_store %arg32[%c0_137, %c16_138], %241 {strides = array<i32>} : memref<7x32xf32, #tpu.memory_space<vmem>>, vector<7x8xf32>,
    %c0_139 = arith.constant 0 : index
    %c24_140 = arith.constant 24 : index
    %243 = vector.load %arg30[%c0_139, %c24_140] : memref<7x96xf32, #tpu.memory_space<vmem>>, vector<7x8xf32>
    %c0_141 = arith.constant 0 : index
    %c24_142 = arith.constant 24 : index
    %244 = vector.load %arg31[%c0_141, %c24_142] : memref<8x64xf32, #tpu.memory_space<vmem>>, vector<8x8xf32>
    %c0_143 = arith.constant 0 : index
    %c56_144 = arith.constant 56 : index
    %245 = vector.load %arg31[%c0_143, %c56_144] : memref<8x64xf32, #tpu.memory_space<vmem>>, vector<8x8xf32>
    %246 = arith.truncf %243 : vector<7x8xf32> to vector<7x8xbf16>
    %247 = arith.truncf %244 : vector<8x8xf32> to vector<8x8xbf16>
    %cst_145 = arith.constant dense<0.000000e+00> : vector<7x8xf32>
    %248 = tpu.matmul %246, %247, %cst_145 {dimension_numbers = #tpu.dot_dimension_numbers<[1], [1], [0], [0], [0, 0, 1, 0], [], []>} : vector<7x8xbf16>, vector<8x8xbf16>, vector<7x8xf32> -> vector<7x8xf32>
    %cst_146 = arith.constant 0.353553385 : f32
    %249 = vector.broadcast %cst_146 : f32 to vector<7x8xf32>
    %250 = arith.mulf %248, %249 : vector<7x8xf32>
    %251 = vector.broadcast %15 : vector<1x8xf32> to vector<7x8xf32>
    %252 = arith.addf %250, %251 : vector<7x8xf32>
    %cst_147 = arith.constant dense<0xFF800000> : vector<7xf32>
    %253 = vector.multi_reduction <maximumf>, %252, %cst_147 [1] : vector<7x8xf32> to vector<7xf32>
    %254 = vector.shape_cast %253 : vector<7xf32> to vector<7x1xf32>
    %255 = vector.broadcast %254 : vector<7x1xf32> to vector<7x8xf32>
    %256 = arith.subf %252, %255 : vector<7x8xf32>
    %257 = math.exp %256 : vector<7x8xf32>
    %cst_148 = arith.constant dense<0.000000e+00> : vector<7xf32>
    %258 = vector.multi_reduction <add>, %257, %cst_148 [1] : vector<7x8xf32> to vector<7xf32>
    %259 = vector.shape_cast %258 : vector<7xf32> to vector<7x1xf32>
    %260 = tpu.reciprocal %259 {approx = true} : vector<7x1xf32> -> vector<7x1xf32>
    %261 = vector.broadcast %260 : vector<7x1xf32> to vector<7x8xf32>
    %262 = arith.mulf %257, %261 : vector<7x8xf32>
    %263 = arith.truncf %262 : vector<7x8xf32> to vector<7x8xbf16>
    %264 = arith.truncf %245 : vector<8x8xf32> to vector<8x8xbf16>
    %cst_149 = arith.constant dense<0.000000e+00> : vector<7x8xf32>
    %265 = tpu.matmul %263, %264, %cst_149 {dimension_numbers = #tpu.dot_dimension_numbers<[1], [0], [0], [1], [0, 0, 1, 1], [], []>} : vector<7x8xbf16>, vector<8x8xbf16>, vector<7x8xf32> -> vector<7x8xf32>
    %c0_150 = arith.constant 0 : index
    %c24_151 = arith.constant 24 : index
    %266 = vector.load %arg32[%c0_150, %c24_151] : memref<7x32xf32, #tpu.memory_space<vmem>>, vector<7x8xf32>
    tpu.vector_store %arg32[%c0_150, %c24_151], %265 {strides = array<i32>} : memref<7x32xf32, #tpu.memory_space<vmem>>, vector<7x8xf32>,
    %c0_152 = arith.constant 0 : index
    %c0_153 = arith.constant 0 : index
    %267 = vector.load %arg32[%c0_152, %c0_153] : memref<7x32xf32, #tpu.memory_space<vmem>>, vector<7x32xf32>
    %268 = arith.truncf %267 : vector<7x32xf32> to vector<7x32xbf16>
    %c0_154 = arith.constant 0 : index
    %c0_155 = arith.constant 0 : index
    %c0_156 = arith.constant 0 : index
    %269 = vector.load %arg16[%c0_154, %c0_155, %c0_156] : memref<1x32x32xbf16, #tpu.memory_space<vmem>>, vector<1x32x32xbf16>
    %270 = vector.shape_cast %269 : vector<1x32x32xbf16> to vector<32x32xbf16>
    %cst_157 = arith.constant dense<0.000000e+00> : vector<7x32xf32>
    %271 = tpu.matmul %268, %270, %cst_157 {dimension_numbers = #tpu.dot_dimension_numbers<[1], [0], [0], [1], [0, 0, 1, 1], [], []>} : vector<7x32xbf16>, vector<32x32xbf16>, vector<7x32xf32> -> vector<7x32xf32>
    %c0_158 = arith.constant 0 : index
    %c0_159 = arith.constant 0 : index
    %c0_160 = arith.constant 0 : index
    %272 = vector.load %arg17[%c0_158, %c0_159, %c0_160] : memref<1x1x32xf32, #tpu.memory_space<vmem>>, vector<1x1x32xf32>
    %273 = vector.shape_cast %272 : vector<1x1x32xf32> to vector<1x32xf32>
    %274 = vector.broadcast %273 : vector<1x32xf32> to vector<7x32xf32>
    %275 = arith.addf %271, %274 : vector<7x32xf32>
    %276 = arith.addf %150, %275 : vector<7x32xf32>
    %c0_161 = arith.constant 0 : index
    %c0_162 = arith.constant 0 : index
    %c0_163 = arith.constant 0 : index
    %277 = vector.load %arg18[%c0_161, %c0_162, %c0_163] : memref<1x1x32xf32, #tpu.memory_space<vmem>>, vector<1x1x32xf32>
    %278 = vector.shape_cast %277 : vector<1x1x32xf32> to vector<1x32xf32>
    %c0_164 = arith.constant 0 : index
    %c0_165 = arith.constant 0 : index
    %c0_166 = arith.constant 0 : index
    %279 = vector.load %arg19[%c0_164, %c0_165, %c0_166] : memref<1x1x32xf32, #tpu.memory_space<vmem>>, vector<1x1x32xf32>
    %280 = vector.shape_cast %279 : vector<1x1x32xf32> to vector<1x32xf32>
    %cst_167 = arith.constant dense<0.000000e+00> : vector<7xf32>
    %281 = vector.multi_reduction <add>, %276, %cst_167 [1] : vector<7x32xf32> to vector<7xf32>
    %282 = vector.shape_cast %281 : vector<7xf32> to vector<7x1xf32>
    %cst_168 = arith.constant 3.200000e+01 : f32
    %283 = vector.broadcast %cst_168 : f32 to vector<7x1xf32>
    %284 = arith.divf %282, %283 : vector<7x1xf32>
    %285 = vector.broadcast %284 : vector<7x1xf32> to vector<7x32xf32>
    %286 = arith.subf %276, %285 : vector<7x32xf32>
    %287 = arith.mulf %286, %286 : vector<7x32xf32>
    %cst_169 = arith.constant dense<0.000000e+00> : vector<7xf32>
    %288 = vector.multi_reduction <add>, %287, %cst_169 [1] : vector<7x32xf32> to vector<7xf32>
    %289 = vector.shape_cast %288 : vector<7xf32> to vector<7x1xf32>
    %cst_170 = arith.constant 3.200000e+01 : f32
    %290 = vector.broadcast %cst_170 : f32 to vector<7x1xf32>
    %291 = arith.divf %289, %290 : vector<7x1xf32>
    %cst_171 = arith.constant 9.99999974E-6 : f32
    %292 = vector.broadcast %cst_171 : f32 to vector<7x1xf32>
    %293 = arith.addf %291, %292 : vector<7x1xf32>
    %294 = math.rsqrt %293 : vector<7x1xf32>
    %295 = vector.broadcast %294 : vector<7x1xf32> to vector<7x32xf32>
    %296 = arith.mulf %286, %295 : vector<7x32xf32>
    %297 = vector.broadcast %278 : vector<1x32xf32> to vector<7x32xf32>
    %298 = arith.mulf %296, %297 : vector<7x32xf32>
    %299 = vector.broadcast %280 : vector<1x32xf32> to vector<7x32xf32>
    %300 = arith.addf %298, %299 : vector<7x32xf32>
    %301 = arith.truncf %300 : vector<7x32xf32> to vector<7x32xbf16>
    %c0_172 = arith.constant 0 : index
    %c0_173 = arith.constant 0 : index
    %c0_174 = arith.constant 0 : index
    %302 = vector.load %arg20[%c0_172, %c0_173, %c0_174] : memref<1x32x64xbf16, #tpu.memory_space<vmem>>, vector<1x32x64xbf16>
    %303 = vector.shape_cast %302 : vector<1x32x64xbf16> to vector<32x64xbf16>
    %cst_175 = arith.constant dense<0.000000e+00> : vector<7x64xf32>
    %304 = tpu.matmul %301, %303, %cst_175 {dimension_numbers = #tpu.dot_dimension_numbers<[1], [0], [0], [1], [0, 0, 1, 1], [], []>} : vector<7x32xbf16>, vector<32x64xbf16>, vector<7x64xf32> -> vector<7x64xf32>
    %c0_176 = arith.constant 0 : index
    %c0_177 = arith.constant 0 : index
    %c0_178 = arith.constant 0 : index
    %305 = vector.load %arg21[%c0_176, %c0_177, %c0_178] : memref<1x1x64xf32, #tpu.memory_space<vmem>>, vector<1x1x64xf32>
    %306 = vector.shape_cast %305 : vector<1x1x64xf32> to vector<1x64xf32>
    %307 = vector.broadcast %306 : vector<1x64xf32> to vector<7x64xf32>
    %308 = arith.addf %304, %307 : vector<7x64xf32>
    %cst_179 = arith.constant 0.000000e+00 : f32
    %309 = vector.broadcast %cst_179 : f32 to vector<7x64xf32>
    %310 = arith.maximumf %308, %309 : vector<7x64xf32>
    %311 = arith.truncf %310 : vector<7x64xf32> to vector<7x64xbf16>
    %c0_180 = arith.constant 0 : index
    %c0_181 = arith.constant 0 : index
    %c0_182 = arith.constant 0 : index
    %312 = vector.load %arg22[%c0_180, %c0_181, %c0_182] : memref<1x64x32xbf16, #tpu.memory_space<vmem>>, vector<1x64x32xbf16>
    %313 = vector.shape_cast %312 : vector<1x64x32xbf16> to vector<64x32xbf16>
    %cst_183 = arith.constant dense<0.000000e+00> : vector<7x32xf32>
    %314 = tpu.matmul %311, %313, %cst_183 {dimension_numbers = #tpu.dot_dimension_numbers<[1], [0], [0], [1], [0, 0, 1, 1], [], []>} : vector<7x64xbf16>, vector<64x32xbf16>, vector<7x32xf32> -> vector<7x32xf32>
    %c0_184 = arith.constant 0 : index
    %c0_185 = arith.constant 0 : index
    %c0_186 = arith.constant 0 : index
    %315 = vector.load %arg23[%c0_184, %c0_185, %c0_186] : memref<1x1x32xf32, #tpu.memory_space<vmem>>, vector<1x1x32xf32>
    %316 = vector.shape_cast %315 : vector<1x1x32xf32> to vector<1x32xf32>
    %317 = vector.broadcast %316 : vector<1x32xf32> to vector<7x32xf32>
    %318 = arith.addf %314, %317 : vector<7x32xf32>
    %319 = arith.addf %300, %318 : vector<7x32xf32>
    %c0_187 = arith.constant 0 : index
    %c0_188 = arith.constant 0 : index
    %c0_189 = arith.constant 0 : index
    %320 = vector.load %arg24[%c0_187, %c0_188, %c0_189] : memref<1x1x32xf32, #tpu.memory_space<vmem>>, vector<1x1x32xf32>
    %321 = vector.shape_cast %320 : vector<1x1x32xf32> to vector<1x32xf32>
    %c0_190 = arith.constant 0 : index
    %c0_191 = arith.constant 0 : index
    %c0_192 = arith.constant 0 : index
    %322 = vector.load %arg25[%c0_190, %c0_191, %c0_192] : memref<1x1x32xf32, #tpu.memory_space<vmem>>, vector<1x1x32xf32>
    %323 = vector.shape_cast %322 : vector<1x1x32xf32> to vector<1x32xf32>
    %cst_193 = arith.constant dense<0.000000e+00> : vector<7xf32>
    %324 = vector.multi_reduction <add>, %319, %cst_193 [1] : vector<7x32xf32> to vector<7xf32>
    %325 = vector.shape_cast %324 : vector<7xf32> to vector<7x1xf32>
    %cst_194 = arith.constant 3.200000e+01 : f32
    %326 = vector.broadcast %cst_194 : f32 to vector<7x1xf32>
    %327 = arith.divf %325, %326 : vector<7x1xf32>
    %328 = vector.broadcast %327 : vector<7x1xf32> to vector<7x32xf32>
    %329 = arith.subf %319, %328 : vector<7x32xf32>
    %330 = arith.mulf %329, %329 : vector<7x32xf32>
    %cst_195 = arith.constant dense<0.000000e+00> : vector<7xf32>
    %331 = vector.multi_reduction <add>, %330, %cst_195 [1] : vector<7x32xf32> to vector<7xf32>
    %332 = vector.shape_cast %331 : vector<7xf32> to vector<7x1xf32>
    %cst_196 = arith.constant 3.200000e+01 : f32
    %333 = vector.broadcast %cst_196 : f32 to vector<7x1xf32>
    %334 = arith.divf %332, %333 : vector<7x1xf32>
    %cst_197 = arith.constant 9.99999974E-6 : f32
    %335 = vector.broadcast %cst_197 : f32 to vector<7x1xf32>
    %336 = arith.addf %334, %335 : vector<7x1xf32>
    %337 = math.rsqrt %336 : vector<7x1xf32>
    %338 = vector.broadcast %337 : vector<7x1xf32> to vector<7x32xf32>
    %339 = arith.mulf %329, %338 : vector<7x32xf32>
    %340 = vector.broadcast %321 : vector<1x32xf32> to vector<7x32xf32>
    %341 = arith.mulf %339, %340 : vector<7x32xf32>
    %342 = vector.broadcast %323 : vector<1x32xf32> to vector<7x32xf32>
    %343 = arith.addf %341, %342 : vector<7x32xf32>
    %c0_198 = arith.constant 0 : index
    %c0_199 = arith.constant 0 : index
    %344 = vector.load %arg29[%c0_198, %c0_199] : memref<7x32xf32, #tpu.memory_space<vmem>>, vector<7x32xf32>
    tpu.vector_store %arg29[%c0_198, %c0_199], %343 {strides = array<i32>} : memref<7x32xf32, #tpu.memory_space<vmem>>, vector<7x32xf32>,
    %c1_i32 = arith.constant 1 : i32
    %345 = arith.cmpi eq, %arg1, %c1_i32 : i32
    %346 = arith.extui %345 : i1 to i32
    %c0_i32_200 = arith.constant 0 : i32
    %347 = arith.cmpi ne, %346, %c0_i32_200 : i32
    scf.if %347 {
      %348 = arith.truncf %343 : vector<7x32xf32> to vector<7x32xbf16>
      %c0_201 = arith.constant 0 : index
      %c0_202 = arith.constant 0 : index
      %349 = vector.load %arg26[%c0_201, %c0_202] : memref<32x32xbf16, #tpu.memory_space<vmem>>, vector<32x32xbf16>
      %cst_203 = arith.constant dense<0.000000e+00> : vector<7x32xf32>
      %350 = tpu.matmul %348, %349, %cst_203 {dimension_numbers = #tpu.dot_dimension_numbers<[1], [0], [0], [1], [0, 0, 1, 1], [], []>} : vector<7x32xbf16>, vector<32x32xbf16>, vector<7x32xf32> -> vector<7x32xf32>
      %c0_204 = arith.constant 0 : index
      %c0_205 = arith.constant 0 : index
      %351 = vector.load %arg27[%c0_204, %c0_205] : memref<1x32xf32, #tpu.memory_space<vmem>>, vector<1x32xf32>
      %352 = vector.broadcast %351 : vector<1x32xf32> to vector<7x32xf32>
      %353 = arith.addf %350, %352 : vector<7x32xf32>
      %c0_206 = arith.constant 0 : index
      %c0_207 = arith.constant 0 : index
      %c0_208 = arith.constant 0 : index
      %354 = vector.load %arg28[%c0_206, %c0_207, %c0_208] : memref<1x7x32xf32, #tpu.memory_space<vmem>>, vector<1x7x32xf32>
      %355 = vector.shape_cast %354 : vector<1x7x32xf32> to vector<7x32xf32>
      %356 = vector.shape_cast %353 : vector<7x32xf32> to vector<1x7x32xf32>
      tpu.vector_store %arg28[%c0_206, %c0_207, %c0_208], %356 {strides = array<i32>} : memref<1x7x32xf32, #tpu.memory_space<vmem>>, vector<1x7x32xf32>,
    } else {
    }
    return
  }
  func.func @transform_0(%arg0: i32, %arg1: i32) -> (i32, i32, i32) {
    %c0_i32 = arith.constant 0 : i32
    %c0_i32_0 = arith.constant 0 : i32
    %c0_i32_1 = arith.constant 0 : i32
    return %arg0, %c0_i32, %c0_i32_0 : i32, i32, i32
  }
  func.func @transform_1(%arg0: i32, %arg1: i32) -> (i32, i32, i32) {
    %c0_i32 = arith.constant 0 : i32
    %c0_i32_0 = arith.constant 0 : i32
    %c0_i32_1 = arith.constant 0 : i32
    return %arg0, %c0_i32, %c0_i32_0 : i32, i32, i32
  }
  func.func @transform_2(%arg0: i32, %arg1: i32) -> (i32, i32, i32) {
    %c0_i32 = arith.constant 0 : i32
    %c0_i32_0 = arith.constant 0 : i32
    %c0_i32_1 = arith.constant 0 : i32
    return %arg0, %c0_i32, %c0_i32_0 : i32, i32, i32
  }
  func.func @transform_3(%arg0: i32, %arg1: i32) -> (i32, i32, i32) {
    %c0_i32 = arith.constant 0 : i32
    %c0_i32_0 = arith.constant 0 : i32
    %c0_i32_1 = arith.constant 0 : i32
    return %arg0, %c0_i32, %c0_i32_0 : i32, i32, i32
  }
  func.func @transform_4(%arg0: i32, %arg1: i32) -> (i32, i32, i32) {
    %c0_i32 = arith.constant 0 : i32
    %c0_i32_0 = arith.constant 0 : i32
    %c0_i32_1 = arith.constant 0 : i32
    return %arg1, %c0_i32, %c0_i32_0 : i32, i32, i32
  }
  func.func @transform_5(%arg0: i32, %arg1: i32) -> (i32, i32, i32) {
    %c0_i32 = arith.constant 0 : i32
    %c0_i32_0 = arith.constant 0 : i32
    %c0_i32_1 = arith.constant 0 : i32
    return %arg1, %c0_i32, %c0_i32_0 : i32, i32, i32
  }
  func.func @transform_6(%arg0: i32, %arg1: i32) -> (i32, i32, i32) {
    %c0_i32 = arith.constant 0 : i32
    %c0_i32_0 = arith.constant 0 : i32
    %c0_i32_1 = arith.constant 0 : i32
    return %arg1, %c0_i32, %c0_i32_0 : i32, i32, i32
  }
  func.func @transform_7(%arg0: i32, %arg1: i32) -> (i32, i32, i32) {
    %c0_i32 = arith.constant 0 : i32
    %c0_i32_0 = arith.constant 0 : i32
    %c0_i32_1 = arith.constant 0 : i32
    return %arg1, %c0_i32, %c0_i32_0 : i32, i32, i32
  }
  func.func @transform_8(%arg0: i32, %arg1: i32) -> (i32, i32, i32) {
    %c0_i32 = arith.constant 0 : i32
    %c0_i32_0 = arith.constant 0 : i32
    %c0_i32_1 = arith.constant 0 : i32
    return %arg1, %c0_i32, %c0_i32_0 : i32, i32, i32
  }
  func.func @transform_9(%arg0: i32, %arg1: i32) -> (i32, i32, i32) {
    %c0_i32 = arith.constant 0 : i32
    %c0_i32_0 = arith.constant 0 : i32
    %c0_i32_1 = arith.constant 0 : i32
    return %arg1, %c0_i32, %c0_i32_0 : i32, i32, i32
  }
  func.func @transform_10(%arg0: i32, %arg1: i32) -> (i32, i32, i32) {
    %c0_i32 = arith.constant 0 : i32
    %c0_i32_0 = arith.constant 0 : i32
    %c0_i32_1 = arith.constant 0 : i32
    return %arg1, %c0_i32, %c0_i32_0 : i32, i32, i32
  }
  func.func @transform_11(%arg0: i32, %arg1: i32) -> (i32, i32, i32) {
    %c0_i32 = arith.constant 0 : i32
    %c0_i32_0 = arith.constant 0 : i32
    %c0_i32_1 = arith.constant 0 : i32
    return %arg1, %c0_i32, %c0_i32_0 : i32, i32, i32
  }
  func.func @transform_12(%arg0: i32, %arg1: i32) -> (i32, i32, i32) {
    %c0_i32 = arith.constant 0 : i32
    %c0_i32_0 = arith.constant 0 : i32
    %c0_i32_1 = arith.constant 0 : i32
    return %arg1, %c0_i32, %c0_i32_0 : i32, i32, i32
  }
  func.func @transform_13(%arg0: i32, %arg1: i32) -> (i32, i32, i32) {
    %c0_i32 = arith.constant 0 : i32
    %c0_i32_0 = arith.constant 0 : i32
    %c0_i32_1 = arith.constant 0 : i32
    return %arg1, %c0_i32, %c0_i32_0 : i32, i32, i32
  }
  func.func @transform_14(%arg0: i32, %arg1: i32) -> (i32, i32, i32) {
    %c0_i32 = arith.constant 0 : i32
    %c0_i32_0 = arith.constant 0 : i32
    %c0_i32_1 = arith.constant 0 : i32
    return %arg1, %c0_i32, %c0_i32_0 : i32, i32, i32
  }
  func.func @transform_15(%arg0: i32, %arg1: i32) -> (i32, i32, i32) {
    %c0_i32 = arith.constant 0 : i32
    %c0_i32_0 = arith.constant 0 : i32
    %c0_i32_1 = arith.constant 0 : i32
    return %arg1, %c0_i32, %c0_i32_0 : i32, i32, i32
  }
  func.func @transform_16(%arg0: i32, %arg1: i32) -> (i32, i32, i32) {
    %c0_i32 = arith.constant 0 : i32
    %c0_i32_0 = arith.constant 0 : i32
    %c0_i32_1 = arith.constant 0 : i32
    return %arg1, %c0_i32, %c0_i32_0 : i32, i32, i32
  }
  func.func @transform_17(%arg0: i32, %arg1: i32) -> (i32, i32, i32) {
    %c0_i32 = arith.constant 0 : i32
    %c0_i32_0 = arith.constant 0 : i32
    %c0_i32_1 = arith.constant 0 : i32
    return %arg1, %c0_i32, %c0_i32_0 : i32, i32, i32
  }
  func.func @transform_18(%arg0: i32, %arg1: i32) -> (i32, i32, i32) {
    %c0_i32 = arith.constant 0 : i32
    %c0_i32_0 = arith.constant 0 : i32
    %c0_i32_1 = arith.constant 0 : i32
    return %arg1, %c0_i32, %c0_i32_0 : i32, i32, i32
  }
  func.func @transform_19(%arg0: i32, %arg1: i32) -> (i32, i32, i32) {
    %c0_i32 = arith.constant 0 : i32
    %c0_i32_0 = arith.constant 0 : i32
    %c0_i32_1 = arith.constant 0 : i32
    return %arg1, %c0_i32, %c0_i32_0 : i32, i32, i32
  }
  func.func @transform_20(%arg0: i32, %arg1: i32) -> (i32, i32, i32) {
    %c0_i32 = arith.constant 0 : i32
    %c0_i32_0 = arith.constant 0 : i32
    %c0_i32_1 = arith.constant 0 : i32
    return %arg1, %c0_i32, %c0_i32_0 : i32, i32, i32
  }
  func.func @transform_21(%arg0: i32, %arg1: i32) -> (i32, i32, i32) {
    %c0_i32 = arith.constant 0 : i32
    %c0_i32_0 = arith.constant 0 : i32
    %c0_i32_1 = arith.constant 0 : i32
    return %arg1, %c0_i32, %c0_i32_0 : i32, i32, i32
  }
  func.func @transform_22(%arg0: i32, %arg1: i32) -> (i32, i32, i32) {
    %c0_i32 = arith.constant 0 : i32
    %c0_i32_0 = arith.constant 0 : i32
    %c0_i32_1 = arith.constant 0 : i32
    return %arg1, %c0_i32, %c0_i32_0 : i32, i32, i32
  }
  func.func @transform_23(%arg0: i32, %arg1: i32) -> (i32, i32, i32) {
    %c0_i32 = arith.constant 0 : i32
    %c0_i32_0 = arith.constant 0 : i32
    %c0_i32_1 = arith.constant 0 : i32
    return %arg1, %c0_i32, %c0_i32_0 : i32, i32, i32
  }
  func.func @transform_24(%arg0: i32, %arg1: i32) -> (i32, i32) {
    %c0_i32 = arith.constant 0 : i32
    %c0_i32_0 = arith.constant 0 : i32
    %c0_i32_1 = arith.constant 0 : i32
    return %c0_i32, %c0_i32_0 : i32, i32
  }
  func.func @transform_25(%arg0: i32, %arg1: i32) -> (i32, i32) {
    %c0_i32 = arith.constant 0 : i32
    %c0_i32_0 = arith.constant 0 : i32
    %c0_i32_1 = arith.constant 0 : i32
    return %c0_i32, %c0_i32_0 : i32, i32
  }
  func.func @transform_26(%arg0: i32, %arg1: i32) -> (i32, i32, i32) {
    %c0_i32 = arith.constant 0 : i32
    %c0_i32_0 = arith.constant 0 : i32
    %c0_i32_1 = arith.constant 0 : i32
    return %arg0, %c0_i32, %c0_i32_0 : i32, i32, i32
  }
}

</mosaic_0001>

<bundles_post_ra>
// kernel: transformer_forward.2
= control target key start
LH: loop header
LB: loop body
LE: loop exit
PB: predicated region body
PF: predicated region fallthrough
CT: control target
= control target key end

     0   :  { %s2111_s29 = smov 0   ;;  %s2113_s30 = smov 0   ;;  %s2380_s0 = inlined_call_operand.vmem [shape: f32[2,8,32], index: 0, kind: input, shape index: {}]   ;;  %s2381_s1 = inlined_call_operand.vmem [shape: f32[2,1,8], index: 1, kind: input, shape index: {}]   ;;  %s2382_s2 = inlined_call_operand.vmem [shape: bf16[2,32,96], index: 2, kind: input, shape index: {}]   ;;  %s2383_s3 = inlined_call_operand.vmem [shape: f32[2,1,96], index: 3, kind: input, shape index: {}]   ;;  %s2384_s4 = inlined_call_operand.vmem [shape: bf16[2,32,32], index: 4, kind: input, shape index: {}]   ;;  %s2385_s5 = inlined_call_operand.vmem [shape: f32[2,1,32], index: 5, kind: input, shape index: {}]   ;;  %s2386_s6 = inlined_call_operand.vmem [shape: f32[2,1,32], index: 6, kind: input, shape index: {}]   ;;  %s2387_s7 = inlined_call_operand.vmem [shape: f32[2,1,32], index: 7, kind: input, shape index: {}]   ;;  %s2388_s8 = inlined_call_operand.vmem [shape: bf16[2,32,64], index: 8, kind: input, shape index: {}]   ;;  %s2389_s9 = inlined_call_operand.vmem [shape: f32[2,1,64], index: 9, kind: input, shape index: {}]   ;;  %s2390_s10 = inlined_call_operand.vmem [shape: bf16[2,64,32], index: 10, kind: input, shape index: {}]   ;;  %s2391_s11 = inlined_call_operand.vmem [shape: f32[2,1,32], index: 11, kind: input, shape index: {}]   ;;  %s2392_s12 = inlined_call_operand.vmem [shape: f32[2,1,32], index: 12, kind: input, shape index: {}]   ;;  %s2393_s13 = inlined_call_operand.vmem [shape: f32[2,1,32], index: 13, kind: input, shape index: {}]   ;;  %s2394_s14 = inlined_call_operand.vmem [shape: f32[2,8,32], index: 14, kind: output, shape index: {}]  }
   0x1   :  { %2399 = sst [smem:[#allocation11_spill]] %s2380_s0  ;;  %s2115_s15 = smov 0  }
   0x2   :  { %2400 = sst [smem:[#allocation12_spill]] %s2381_s1  ;;  %s2117_s16 = smov 0  }
   0x3   :  { %2401 = sst [smem:[#allocation13_spill]] %s2382_s2  ;;  %s2119_s17 = smov 0  }
   0x4   :  { %2402 = sst [smem:[#allocation14_spill]] %s2384_s4 }
   0x5   :  { %2403 = sst [smem:[#allocation15_spill]] %s2387_s7 }
   0x6   :  { %2404 = sst [smem:[#allocation16_spill]] %s2388_s8 }
   0x7   :  { %2405 = sst [smem:[#allocation17_spill]] %s2389_s9 }
   0x8   :  { %2406 = sst [smem:[#allocation18_spill]] %s2392_s12 }
   0x9   :  { %2407 = sst [smem:[#allocation19_spill]] %s2393_s13 }
   0xa   :  { %2408 = sst [smem:[#allocation20_spill]] %s2394_s14 }
   0xb LB: > { %2409 = sst [smem:[#allocation5_spill]] %s2002_s29  ;;  %s33_s18 = sadd.s32 1, %s2010_s15  ;;  %s2018_s17 = sphi %s2119_s17, %s24_s17   ;;  %s2014_s16 = sphi %s2117_s16, %s2442_s16   ;;  %s2010_s15 = sphi %s2115_s15, %s2441_s15   ;;  %s2006_s30 = sphi %s2113_s30, %s2440_s30   ;;  %s2002_s29 = sphi %s2111_s29, %s2439_s29  }
   0xc   : > { %2410 = sst [smem:[#allocation6_spill]] %s2010_s15  ;;  %s36_s19 = sadd.s32 1, %s2014_s16 }
   0xd   : > { %2411 = sst [smem:[#allocation7_spill]] %s2014_s16  ;;  %p34_p0 = scmp.ge.s32.totalorder %s33_s18, 2 }
   0xe   : > { %2412 = sst [smem:[#allocation8_spill]] %s2018_s17  ;;  %p1730_p1 = scmp.ge.s32.totalorder %s2018_s17, 1 }
   0xf   : > { %p535_p2 = scmp.lt.s32.totalorder %s2018_s17, 5  ;;  %s2444_s18 = smov (%p34_p0, %s33_s18), 0 }
  0x10   : > { %2413 = sst [smem:[#allocation9_spill]] %s2444_s18  ;;  %s2446_s19 = smov (!%p34_p0, %s36_s19), %s2014_s16 }
  0x11   : > { %p536_p3 = pnand %p1730_p1, %p535_p2  ;;  %p38_p4 = scmp.ge.s32.totalorder %s2446_s19, 2 }
  0x12   : > { %p626_p5 = scmp.lt.s32.totalorder (!%p536_p3), %s2006_s30, 1  ;;  %p633_p6 = scmp.lt.s32.totalorder (!%p536_p3), %s2002_s29, 1 }
  0x13   : > { %s2448_s19 = smov (%p38_p4, %s2446_s19), 0  ;;  %539 = sbr.rel (%p536_p3) target bundleno = 2609 (0xa31), region = 76 }
  0x14   : > { %2414 = sst [smem:[#allocation10_spill]] %s2448_s19  ;;  %s2416_s0 = sld [smem:[#allocation11_spill]] (!%p536_p3) }
  0x15   : > { %s2417_s2 = sld [smem:[#allocation13_spill]] (!%p536_p3)  ;;  %s2418_s4 = sld [smem:[#allocation14_spill]] (!%p536_p3) }
  0x16   : > { %s2420_s8 = sld [smem:[#allocation16_spill]] (!%p536_p3)  ;;  %s2422_s19 = sld [smem:[#allocation18_spill]] (!%p536_p3) }
  0x17   : > { %s2425_s22 = sld [smem:[#allocation5_spill]] (!%p536_p3) }
  0x1a   : > { %s2450_s30 = smov (!%p626_p5, %s2006_s30), 1 }
  0x1b   : > { %s2147_s20 = scalar_select %p633_p6, %s2002_s29, 1 }
  0x1c   : > { %s1731_s21 = sshll.u32 %s2450_s30, 3  ;;  %s2424_s29 = sld [smem:[#allocation20_spill]] }
  0x1d   : > { %s629_s27 = scalar_lea.vmem %s2416_s0, %s1731_s21  ;;  %s1776_s28 = sshll.u32 %s2147_s20, 4 }
  0x1e   : > { %s637_s16 = scalar_lea.vmem %s2417_s2, %s1776_s28  ;;  %s2168_s12 = scalar_lea.vmem %s2418_s4, %s1776_s28 }
  0x1f   : > { %s2185_s17 = scalar_lea.vmem %s2420_s8, %s1776_s28  ;;  %s1779_s4 = sshll.u32 %s2147_s20, 5 }
  0x20   : > { %s670_s24 = scalar_lea.vmem %s2391_s11, %s2147_s20  ;;  %s2199_s0 = scalar_lea.vmem %s2390_s10, %s1779_s4 }
  0x21   : > { %s673_s2 = scalar_lea.vmem %s2422_s19, %s2147_s20  ;;  %s2423_s8 = sld [smem:[#allocation19_spill]] }
  0x22   : > { %s2212_s9 = scalar_lea.vmem %s2424_s29, %s1731_s21  ;;  %p1741_p7 = scmp.ne.s32.totalorder %s2425_s22, 0 }
  0x23   : > { %v686_v0 = vld [vmem:[%s629_s27] sm:$0xff] (!%p1741_p7)  ;;  %vm687_vm0 = vcmask (!%p1741_p7), 261120  }
  0x24   : > { %685 = sbr.rel (%p1741_p7) target bundleno = 43 (0x2b), region = 80  ;;  %688 = vst.msk [vmem:[#allocation2] sm:$0xff] (!%p1741_p7), %vm687_vm0, %v686_v0 }
  0x27   : > { %s676_s7 = scalar_lea.vmem %s2423_s8, %s2147_s20 }
  0x2b PF: > { %v1950_v1 = vld [vmem:[%s637_s16] sm:$0xff]   ;;  %v2020_v2 = vmov 0.0   ;;  %v1951_v3 = vld [vmem:[%s637_s16 + $0x8] sm:$0xff]   ;;  %vm2021_vm1 = vmmov 0   ;;  %vm715_vm2 = vcmask 261120   ;;  %s2426_s29 = scalar_lea.vmem %s2383_s3, %s2147_s20  ;;  %vm759_vm3 = vcmask 785408  }
  0x2c   : > { %1810 = vmatprep.subr.bf16.mxu0 %v2020_v2  ;;  %1818 = vmatprep.subr.bf16.mxu1 %v2020_v2  ;;  %v2219_v4 = vld [vmem:[#allocation2] sm:$0xff]  ;;  %s2022_s16 = smov 120   ;;  %s2023_s21 = smov 96   ;;  %vm766_vm4 = vcmask 64512   ;;  %vm838_vm5 = vcmask 1043456   ;;  %vm1002_vm6 = vcmask 130112  }
  0x2d   : > { %1811 = vmatpush3.bf16.msra.mxu0 %v1950_v1  ;;  %1814 = vmatprep.mubr.msk.bf16.mxu0 %vm2021_vm1, %v2020_v2  ;;  %v691_v5 = vpack.c.bf16 %v2219_v4, %v2219_v4  ;;  %v1742_v6 = vld [vmem:[%s2426_s29] ss:$0 sm:$0xff]  ;;  %s2024_s27 = smov 80   ;;  %s2025_s19 = smov 88   ;;  %vm1123_vm7 = vcmask 195712   ;;  %vm1244_vm8 = vcmask 261312  }
  0x2e   : > { %1812 = vmatprep.subr.bf16.mxu0 %v2020_v2  ;;  %1820 = vmatprep.mubr.msk.bf16.mxu1 %vm2021_vm1, %v2020_v2  ;;  %s2026_s23 = smov 72   ;;  %s2027_s25 = smov 112   ;;  %vm1453_vm9 = vcmask 523264  }
  0x2f   : > { %s2028_s26 = smov 104   ;;  %s2427_s28 = sld [smem:[#allocation12_spill]] }
  0x30   : > { %s2030_s13 = smov 64   ;;  %s2031_s14 = smov 40  }
  0x31   : > { %1813 = vmatpush3.bf16.msra.mxu0 %v1951_v3  ;;  %s2032_s22 = smov 48   ;;  %s2033_s4 = smov 8  }
  0x32   : > { %1824 = vmatprep.subr.bf16.mxu0 %v2020_v2  ;;  %s2034_s8 = smov 16   ;;  %s2035_s29 = smov 24  }
  0x34   : > { %1815 = vmatmul.mubr.msk.bf16.vlgmr.msra.gmra.mrb[0].mxu0 %vm715_vm2, %v691_v5 }
  0x35   : > { %1826 = vmatprep.mubr.msk.bf16.mxu0 %vm2021_vm1, %v2020_v2  ;;  %s2428_s15 = scalar_lea.vmem %s2427_s28, %s2450_s30  ;;  %s2029_s30 = smov 56  }
  0x36   : > { %v1747_v26 = vld [vmem:[%s2428_s15] ss:$0 sm:$0xff]  ;;  %s2433_s15 = sld [smem:[#allocation17_spill]] }
 0x107   : > { %v753_v7 = vpop.f32.mrb[0].mxu0 }
 0x108   : > { %v754_v8 = vadd.f32 %v1742_v6, %v753_v7  ;;  %v1816_v9 = vpop.f32.mrb[1].mxu0 }
 0x109   : > { %v756_v10 = vpop.f32.mrb[2].mxu0 }
 0x10a   : > { %760 = vst.msk [vmem:[#allocation3] sm:$0xff] %vm759_vm3, %v754_v8  ;;  %v1817_v11 = vpop.f32.mrb[3].mxu0 }
 0x111   : > { %v883_v12 = vld [vmem:[#allocation3] sm:$0xff] }
 0x112   : > { %v2235_v13 = vpack.c.bf16 %v883_v12, %v883_v12 }
 0x114   : > { %886 = vrot.lane.b32.xlu1 %v2235_v13, %s2022_s16  ;;  %764 = vrot.lane.b32.xlu0 %v2235_v13, %s2023_s21  ;;  %s2429_s21 = scalar_lea.vmem %s2385_s5, %s2147_s20 }
 0x118   : > { %1009 = vrot.lane.b32.xlu1 %v2235_v13, %s2024_s27  ;;  %888 = vrot.lane.b32.xlu0 %v2235_v13, %s2025_s19 }
 0x11c   : > { %1130 = vrot.lane.b32.xlu1 %v2235_v13, %s2026_s23  ;;  %1007 = vrot.lane.b32.xlu0 %v2235_v13, %s2027_s25 }
 0x120   : > { %1128 = vrot.lane.b32.xlu0 %v2235_v13, %s2028_s26  ;;  %s2431_s26 = sld [smem:[#allocation15_spill]] }
 0x126   : > { %s2432_s1 = scalar_lea.vmem %s2431_s26, %s2147_s20 }
 0x186   : > { %v765_v14 = vpop.permute.xlu0 %764  ;;  %v887_v17 = vpop.permute.xlu1 %886 }
 0x187   : > { %v771_v15 = vsel %vm766_vm4, %v765_v14, 0 }
 0x188   : > { %1819 = vmatpush3.bf16.xpose.msra.mxu1 %v771_v15 }
 0x189   : > { %1830 = vmatprep.subr.bf16.mxu1 %v2020_v2 }
 0x18a   : > { %v889_v16 = vpop.permute.xlu0 %888  ;;  %v1010_v19 = vpop.permute.xlu1 %1009 }
 0x18b   : > { %v894_v18 = vsel %vm766_vm4, %v889_v16, 0  ;;  %v1015_v20 = vsel %vm766_vm4, %v1010_v19, 0 }
 0x18e   : > { %v1131_v21 = vpop.permute.xlu1 %1130  ;;  %v1008_v22 = vpop.permute.xlu0 %1007 }
 0x18f   : > { %1821 = vmatmul.mubr.msk.bf16.vlgmr.msra.gmra.mrb[0].mxu1 %vm766_vm4, %v2235_v13  ;;  %v1136_v23 = vsel %vm766_vm4, %v1131_v21, 0 }
 0x190   : > { %1831 = vmatpush3.bf16.xpose.msra.mxu1 %v894_v18  ;;  %1832 = vmatprep.mubr.msk.bf16.mxu1 %vm2021_vm1, %v2020_v2 }
 0x191   : > { %1842 = vmatprep.subr.bf16.mxu1 %v2020_v2 }
 0x192   : > { %v1129_v24 = vpop.permute.xlu0 %1128 }
 0x197   : > { %1833 = vmatmul.mubr.msk.bf16.vlgmr.msra.gmra.mrb[4].mxu1 %vm766_vm4, %v887_v17 }
 0x198   : > { %1843 = vmatpush3.bf16.xpose.msra.mxu1 %v1015_v20  ;;  %1844 = vmatprep.mubr.msk.bf16.mxu1 %vm2021_vm1, %v2020_v2 }
 0x199   : > { %1854 = vmatprep.subr.bf16.mxu1 %v2020_v2 }
 0x19f   : > { %1845 = vmatmul.mubr.msk.bf16.vlgmr.msra.gmra.mrb[8].mxu1 %vm766_vm4, %v1008_v22 }
 0x1a0   : > { %1855 = vmatpush3.bf16.xpose.msra.mxu1 %v1136_v23  ;;  %1856 = vmatprep.mubr.msk.bf16.mxu1 %vm2021_vm1, %v2020_v2 }
 0x1a1   : > { %1866 = vmatprep.subr.bf16.mxu1 %v2020_v2 }
 0x1a7   : > { %1857 = vmatmul.mubr.msk.bf16.vlgmr.msra.gmra.mrb[12].mxu1 %vm766_vm4, %v1129_v24 }
 0x1a8   : > { %1870 = vmatprep.mubr.msk.bf16.mxu1 %vm2021_vm1, %v2020_v2 }
 0x262   : > { %v807_v25 = vpop.f32.mrb[0].mxu1 }
 0x263   : > { %v813_v27 = vmul.f32 0.35355338, %v807_v25  ;;  %v1822_v28 = vpop.f32.mrb[1].mxu1 }
 0x264   : > { %v810_v29 = vpop.f32.mrb[2].mxu1 }
 0x265   : > { %v1823_v30 = vpop.f32.mrb[3].mxu1  ;;  %v820_v31 = vadd.f32 %v1747_v26, %v813_v27 }
 0x267   : > { %v821_v32 = vsel %vm766_vm4, %v820_v31, -inf }
 0x268   : > { %822 = vmax.xlane.f32.xlu1 %v821_v32 }
 0x26a   : > { %v930_v33 = vpop.f32.mrb[4].mxu1 }
 0x26b   : > { %v936_v34 = vmul.f32 0.35355338, %v930_v33  ;;  %v1834_v35 = vpop.f32.mrb[5].mxu1 }
 0x26c   : > { %v933_v36 = vpop.f32.mrb[6].mxu1 }
 0x26d   : > { %v1835_v37 = vpop.f32.mrb[7].mxu1  ;;  %v937_v38 = vadd.f32 %v1747_v26, %v936_v34 }
 0x26f   : > { %v938_v39 = vsel %vm766_vm4, %v937_v38, -inf }
 0x270   : > { %939 = vmax.xlane.f32.xlu0 %v938_v39 }
 0x272   : > { %v1051_v40 = vpop.f32.mrb[8].mxu1 }
 0x273   : > { %v1057_v41 = vmul.f32 0.35355338, %v1051_v40  ;;  %v1846_v42 = vpop.f32.mrb[9].mxu1 }
 0x274   : > { %v1054_v43 = vpop.f32.mrb[10].mxu1 }
 0x275   : > { %v1847_v44 = vpop.f32.mrb[11].mxu1  ;;  %v1058_v45 = vadd.f32 %v1747_v26, %v1057_v41 }
 0x276   : > { %v1952_v44 = vld [vmem:[%s2168_s12] sm:$0xff]  }
 0x277   : > { %v1059_v46 = vsel %vm766_vm4, %v1058_v45, -inf  ;;  %1867 = vmatpush3.bf16.msra.mxu1 %v1952_v44 }
 0x278   : > { %1060 = vmax.xlane.f32.xlu0 %v1059_v46  ;;  %1868 = vmatprep.subr.bf16.mxu1 %v2020_v2 }
 0x27a   : > { %v1172_v47 = vpop.f32.mrb[12].mxu1 }
 0x27b   : > { %v1178_v48 = vmul.f32 0.35355338, %v1172_v47  ;;  %v1858_v49 = vpop.f32.mrb[13].mxu1 }
 0x27c   : > { %v1175_v50 = vpop.f32.mrb[14].mxu1 }
 0x27d   : > { %v1859_v51 = vpop.f32.mrb[15].mxu1  ;;  %v1179_v52 = vadd.f32 %v1747_v26, %v1178_v48 }
 0x27f   : > { %v1180_v53 = vsel %vm766_vm4, %v1179_v52, -inf }
 0x280   : > { %1181 = vmax.xlane.f32.xlu1 %v1180_v53 }
 0x2f5   : > { %v823_v54 = vpop.xlane.xlu1 %822 }
 0x2f6   : > { %v824_v55 = vsub.f32 %v820_v31, %v823_v54 }
 0x2f8   : > { %v825_v56 = vmul.f32 1.442695, %v824_v55 }
 0x2fa   : > { %1960 = vpow2.f32 %v825_v56 }
 0x2fd   : > { %v940_v57 = vpop.xlane.xlu0 %939 }
 0x2fe   : > { %v941_v58 = vsub.f32 %v937_v38, %v940_v57 }
 0x300   : > { %v942_v59 = vmul.f32 1.442695, %v941_v58 }
 0x302   : > { %1962 = vpow2.f32 %v942_v59  ;;  %v1755_v59 = vld [vmem:[%s2429_s21] ss:$0 sm:$0xff] }
 0x304   : > { %v1961_v60 = vpop.eup %1960 }
 0x305   : > { %v1061_v61 = vpop.xlane.xlu0 %1060  ;;  %v827_v62 = vsel %vm766_vm4, %v1961_v60, 0.0 }
 0x306   : > { %v1062_v63 = vsub.f32 %v1058_v45, %v1061_v61  ;;  %828 = vadd.xlane.f32.xlu0 %v827_v62  ;;  %v1953_v45 = vld [vmem:[%s2168_s12 + $0x8] sm:$0xff]   ;;  %s2437_s12 = sld [smem:[#allocation5_spill]] }
 0x307   : > { %1869 = vmatpush3.bf16.msra.mxu1 %v1953_v45 }
 0x308   : > { %v1063_v0 = vmul.f32 1.442695, %v1062_v63  ;;  %1882 = vmatprep.subr.bf16.mxu1 %v2020_v2 }
 0x30a   : > { %1964 = vpow2.f32 %v1063_v0 }
 0x30c   : > { %v1963_v1 = vpop.eup %1962  ;;  %p1773_p8 = scmp.ne.s32.totalorder %s2437_s12, 1 }
 0x30d   : > { %v944_v3 = vsel %vm766_vm4, %v1963_v1, 0.0  ;;  %v1182_v7 = vpop.xlane.xlu1 %1181 }
 0x30e   : > { %945 = vadd.xlane.f32.xlu1 %v944_v3  ;;  %v1183_v8 = vsub.f32 %v1179_v52, %v1182_v7 }
 0x310   : > { %v1184_v9 = vmul.f32 1.442695, %v1183_v8 }
 0x312   : > { %1966 = vpow2.f32 %v1184_v9 }
 0x314   : > { %v1965_v5 = vpop.eup %1964 }
 0x315   : > { %v1065_v6 = vsel %vm766_vm4, %v1965_v5, 0.0 }
 0x316   : > { %1066 = vadd.xlane.f32.xlu0 %v1065_v6 }
 0x31c   : > { %v1967_v10 = vpop.eup %1966 }
 0x31d   : > { %v1186_v11 = vsel %vm766_vm4, %v1967_v10, 0.0 }
 0x31f   : > { %950 = vrot.lane.b32.xlu1 %v2235_v13, %s2029_s30  ;;  %s2434_s30 = scalar_lea.vmem %s2433_s15, %s2147_s20 }
 0x32c   : > { %833 = vrot.lane.b32.xlu0 %v2235_v13, %s2030_s13 }
 0x330   : > { %1192 = vrot.lane.b32.xlu0 %v2235_v13, %s2031_s14 }
 0x343   : > { %1187 = vadd.xlane.f32.xlu1 %v1186_v11  ;;  %v1955_v11 = vld [vmem:[%s2185_s17 + $0x8] sm:$0xff]  }
 0x354   : > { %1071 = vrot.lane.b32.xlu1 %v2235_v13, %s2032_s22 }
 0x393   : > { %v829_v12 = vpop.xlane.xlu0 %828 }
 0x394   : > { %1968 = vrcp.f32 %v829_v12  ;;  %v1957_v12 = vld [vmem:[%s2199_s0 + $0x8] sm:$0xff]  }
 0x39b   : > { %v946_v14 = vpop.xlane.xlu1 %945 }
 0x39c   : > { %1970 = vrcp.f32 %v946_v14 }
 0x39e   : > { %v1969_v15 = vpop.eup %1968 }
 0x39f   : > { %v831_v17 = vmul.f32 %v1969_v15, %v1961_v60  ;;  %v951_v20 = vpop.permute.xlu1 %950 }
 0x3a0   : > { %v956_v23 = vsel %vm838_vm5, %v951_v20, 0  ;;  %v1760_v20 = vld [vmem:[%s2432_s1] ss:$0 sm:$0xff] }
 0x3a1   : > { %v832_v21 = vpack.c.bf16 %v831_v17, %v831_v17 }
 0x3a3   : > { %v1067_v16 = vpop.xlane.xlu0 %1066 }
 0x3a4   : > { %1972 = vrcp.f32 %v1067_v16 }
 0x3a6   : > { %v1971_v22 = vpop.eup %1970 }
 0x3a7   : > { %v834_v18 = vpop.permute.xlu0 %833  ;;  %v948_v13 = vmul.f32 %v1971_v22, %v1963_v1 }
 0x3a8   : > { %v840_v19 = vsel %vm838_vm5, %v834_v18, 0 }
 0x3a9   : > { %1825 = vmatpush3.bf16.msra.mxu0 %v840_v19  ;;  %v949_v24 = vpack.c.bf16 %v948_v13, %v948_v13  ;;  %v1958_v13 = vld [vmem:[%s2199_s0 + $0x10] sm:$0xff]  }
 0x3aa   : > { %1836 = vmatprep.subr.bf16.mxu0 %v2020_v2 }
 0x3ab   : > { %v1193_v30 = vpop.permute.xlu0 %1192 }
 0x3ac   : > { %1827 = vmatmul.mubr.msk.bf16.vlgmr.msra.gmra.mrb[4].mxu0 %vm766_vm4, %v832_v21  ;;  %v1198_v32 = vsel %vm838_vm5, %v1193_v30, 0 }
 0x3ad   : > { %1837 = vmatpush3.bf16.msra.mxu0 %v956_v23  ;;  %1838 = vmatprep.mubr.msk.bf16.mxu0 %vm2021_vm1, %v2020_v2 }
 0x3ae   : > { %1848 = vmatprep.subr.bf16.mxu0 %v2020_v2  ;;  %v1973_v25 = vpop.eup %1972 }
 0x3af   : > { %v1069_v27 = vmul.f32 %v1973_v25, %v1965_v5  ;;  %v1761_v25 = vld [vmem:[%s2434_s30] ss:$0 sm:$0xff] }
 0x3b1   : > { %v1070_v31 = vpack.c.bf16 %v1069_v27, %v1069_v27 }
 0x3b4   : > { %1839 = vmatmul.mubr.msk.bf16.vlgmr.msra.gmra.mrb[8].mxu0 %vm766_vm4, %v949_v24  ;;  %v1959_v24 = vld [vmem:[%s2199_s0 + $0x18] sm:$0xff]  }
 0x3b5   : > { %1850 = vmatprep.mubr.msk.bf16.mxu0 %vm2021_vm1, %v2020_v2 }
 0x3d0   : > { %v1188_v26 = vpop.xlane.xlu1 %1187 }
 0x3d1   : > { %1974 = vrcp.f32 %v1188_v26 }
 0x3d4   : > { %v1072_v28 = vpop.permute.xlu1 %1071 }
 0x3d5   : > { %v1077_v29 = vsel %vm838_vm5, %v1072_v28, 0 }
 0x3d6   : > { %1849 = vmatpush3.bf16.msra.mxu0 %v1077_v29 }
 0x3d7   : > { %1860 = vmatprep.subr.bf16.mxu0 %v2020_v2 }
 0x3d9   : > { %1851 = vmatmul.mubr.msk.bf16.vlgmr.msra.gmra.mrb[12].mxu0 %vm766_vm4, %v1070_v31 }
 0x3da   : > { %1861 = vmatpush3.bf16.msra.mxu0 %v1198_v32  ;;  %1862 = vmatprep.mubr.msk.bf16.mxu0 %vm2021_vm1, %v2020_v2 }
 0x3db   : > { %v1975_v33 = vpop.eup %1974  ;;  %1874 = vmatprep.subr.bf16.mxu0 %v2020_v2 }
 0x3dc   : > { %v1190_v34 = vmul.f32 %v1975_v33, %v1967_v10  ;;  %v1954_v10 = vld [vmem:[%s2185_s17] sm:$0xff]   ;;  %s2430_s17 = scalar_lea.vmem %s2386_s6, %s2147_s20 }
 0x3dd   : > { %v1759_v18 = vld [vmem:[%s2430_s17] ss:$0 sm:$0xff] }
 0x3de   : > { %v1191_v35 = vpack.c.bf16 %v1190_v34, %v1190_v34 }
 0x3e1   : > { %1863 = vmatmul.mubr.msk.bf16.vlgmr.msra.gmra.mrb[16].mxu0 %vm766_vm4, %v1191_v35 }
 0x3e2   : > { %1878 = vmatprep.mubr.msk.bf16.mxu0 %vm2021_vm1, %v2020_v2  ;;  %1875 = vmatpush3.bf16.msra.mxu0 %v1954_v10 }
 0x3e3   : > { %1876 = vmatprep.subr.bf16.mxu0 %v2020_v2 }
 0x3e6   : > { %1877 = vmatpush3.bf16.msra.mxu0 %v1955_v11 }
 0x47f   : > { %v876_v36 = vpop.f32.mrb[4].mxu0 }
 0x480   : > { %882 = vst.msk [vmem:[#allocation4] sm:$0xff] %vm766_vm4, %v876_v36  ;;  %v1828_v37 = vpop.f32.mrb[5].mxu0 }
 0x481   : > { %v879_v38 = vpop.f32.mrb[6].mxu0 }
 0x482   : > { %v1829_v39 = vpop.f32.mrb[7].mxu0 }
 0x487   : > { %v992_v40 = vpop.f32.mrb[8].mxu0 }
 0x488   : > { %999 = vrot.lane.b32.xlu1 %v992_v40, %s2033_s4  ;;  %v1840_v41 = vpop.f32.mrb[9].mxu0 }
 0x489   : > { %v995_v42 = vpop.f32.mrb[10].mxu0 }
 0x48a   : > { %v1841_v43 = vpop.f32.mrb[11].mxu0 }
 0x4ac   : > { %v1113_v46 = vpop.f32.mrb[12].mxu0 }
 0x4ad   : > { %1120 = vrot.lane.b32.xlu0 %v1113_v46, %s2034_s8  ;;  %v1852_v47 = vpop.f32.mrb[13].mxu0 }
 0x4ae   : > { %v1116_v48 = vpop.f32.mrb[14].mxu0 }
 0x4af   : > { %v1853_v49 = vpop.f32.mrb[15].mxu0 }
 0x4b0   : > { %v1771_v49 = vld [vmem:[%s673_s2] ss:$0 sm:$0xff] }
 0x4b4   : > { %v1234_v50 = vpop.f32.mrb[16].mxu0 }
 0x4b5   : > { %1241 = vrot.lane.b32.xlu1 %v1234_v50, %s2035_s29  ;;  %v1864_v51 = vpop.f32.mrb[17].mxu0 }
 0x4b6   : > { %v1237_v52 = vpop.f32.mrb[18].mxu0  ;;  %v1772_v51 = vld [vmem:[%s676_s7] ss:$0 sm:$0xff] }
 0x4b7   : > { %v1865_v53 = vpop.f32.mrb[19].mxu0 }
 0x4fa   : > { %v1000_v54 = vpop.permute.xlu1 %999 }
 0x4fb   : > { %1003 = vst.msk [vmem:[#allocation4] sm:$0xff] %vm1002_vm6, %v1000_v54 }
 0x51f   : > { %v1121_v55 = vpop.permute.xlu0 %1120 }
 0x520   : > { %1124 = vst.msk [vmem:[#allocation4] sm:$0xff] %vm1123_vm7, %v1121_v55 }
 0x527   : > { %v1242_v56 = vpop.permute.xlu1 %1241 }
 0x528   : > { %1245 = vst.msk [vmem:[#allocation4] sm:$0xff] %vm1244_vm8, %v1242_v56 }
 0x52f   : > { %v1246_v57 = vld [vmem:[#allocation4] sm:$0xff] }
 0x530   : > { %v1247_v58 = vpack.c.bf16 %v1246_v57, %v1246_v57 }
 0x532   : > { %1871 = vmatmul.mubr.msk.bf16.vlgmr.msra.gmra.mrb[16].mxu1 %vm715_vm2, %v1247_v58 }
 0x533   : > { %1890 = vmatprep.mubr.msk.bf16.mxu1 %vm2021_vm1, %v2020_v2 }
 0x605   : > { %v1308_v60 = vpop.f32.mrb[16].mxu1 }
 0x606   : > { %v1309_v61 = vadd.f32 %v1755_v59, %v1308_v60  ;;  %v1872_v62 = vpop.f32.mrb[17].mxu1 }
 0x607   : > { %v1311_v63 = vpop.f32.mrb[18].mxu1 }
 0x608   : > { %v1873_v0 = vpop.f32.mrb[19].mxu1  ;;  %v1314_v1 = vadd.f32 %v1309_v61, %v2219_v4  ;;  %v1956_v4 = vld [vmem:[%s2199_s0] sm:$0xff]  }
 0x609   : > { %1883 = vmatpush3.bf16.msra.mxu1 %v1956_v4 }
 0x60a   : > { %v1317_v3 = vsel %vm715_vm2, %v1314_v1, 0.0  ;;  %1884 = vmatprep.subr.bf16.mxu1 %v2020_v2 }
 0x60b   : > { %1318 = vadd.xlane.f32.xlu0 %v1317_v3 }
 0x60d   : > { %1885 = vmatpush3.bf16.msra.mxu1 %v1957_v12 }
 0x60e   : > { %1886 = vmatprep.subr.bf16.mxu1 %v2020_v2 }
 0x611   : > { %1887 = vmatpush3.bf16.msra.mxu1 %v1958_v13 }
 0x612   : > { %1888 = vmatprep.subr.bf16.mxu1 %v2020_v2  ;;  %v1765_v2 = vld [vmem:[%s670_s24] ss:$0 sm:$0xff] }
 0x615   : > { %1889 = vmatpush3.bf16.msra.mxu1 %v1959_v24 }
 0x698   : > { %v1319_v5 = vpop.xlane.xlu0 %1318 }
 0x699   : > { %v1321_v6 = vmul.f32 0.03125, %v1319_v5 }
 0x69b   : > { %v1322_v7 = vsub.f32 %v1314_v1, %v1321_v6 }
 0x69d   : > { %v1323_v8 = vmul.f32 %v1322_v7, %v1322_v7 }
 0x69f   : > { %v1324_v9 = vsel %vm715_vm2, %v1323_v8, 0.0 }
 0x6a0   : > { %1325 = vadd.xlane.f32.xlu1 %v1324_v9 }
 0x72d   : > { %v1326_v14 = vpop.xlane.xlu1 %1325 }
 0x72e   : > { %v1327_v15 = vmul.f32 0.03125, %v1326_v14 }
 0x730   : > { %v1328_v16 = vadd.f32 1e-05, %v1327_v15 }
 0x732   : > { %1976 = vrsqrt.f32 %v1328_v16 }
 0x73c   : > { %v1977_v17 = vpop.eup %1976 }
 0x73d   : > { %v1330_v19 = vmul.f32 %v1977_v17, %v1322_v7 }
 0x73f   : > { %v1337_v21 = vmul.f32 %v1759_v18, %v1330_v19 }
 0x741   : > { %v1344_v22 = vadd.f32 %v1760_v20, %v1337_v21 }
 0x743   : > { %v1345_v23 = vpack.c.bf16 %v1344_v22, %v1344_v22 }
 0x745   : > { %1879 = vmatmul.mubr.msk.bf16.vlgmr.msra.gmra.mrb[20].mxu0 %vm715_vm2, %v1345_v23 }
 0x818   : > { %v1406_v26 = vpop.f32.mrb[20].mxu0 }
 0x819   : > { %v1407_v27 = vadd.f32 %v1761_v25, %v1406_v26  ;;  %v1880_v28 = vpop.f32.mrb[21].mxu0 }
 0x81a   : > { %v1409_v29 = vpop.f32.mrb[22].mxu0 }
 0x81b   : > { %v1412_v30 = vmax.f32 %v1407_v27, 0.0  ;;  %v1881_v31 = vpop.f32.mrb[23].mxu0 }
 0x81d   : > { %v1413_v32 = vpack.c.bf16 %v1412_v30, %v1412_v30 }
 0x81f   : > { %1891 = vmatmul.mubr.msk.bf16.vlgmr.msra.gmra.mrb[20].mxu1 %vm1453_vm9, %v1413_v32 }
 0x8f2   : > { %v1491_v33 = vpop.f32.mrb[20].mxu1 }
 0x8f3   : > { %v1492_v34 = vadd.f32 %v1765_v2, %v1491_v33  ;;  %v1892_v35 = vpop.f32.mrb[21].mxu1 }
 0x8f4   : > { %v1494_v36 = vpop.f32.mrb[22].mxu1 }
 0x8f5   : > { %v1893_v37 = vpop.f32.mrb[23].mxu1  ;;  %v1497_v38 = vadd.f32 %v1492_v34, %v1344_v22 }
 0x8f7   : > { %v1500_v39 = vsel %vm715_vm2, %v1497_v38, 0.0 }
 0x8f8   : > { %1501 = vadd.xlane.f32.xlu0 %v1500_v39 }
 0x985   : > { %v1502_v40 = vpop.xlane.xlu0 %1501 }
 0x986   : > { %v1503_v41 = vmul.f32 0.03125, %v1502_v40 }
 0x988   : > { %v1504_v42 = vsub.f32 %v1497_v38, %v1503_v41 }
 0x98a   : > { %v1505_v43 = vmul.f32 %v1504_v42, %v1504_v42 }
 0x98c   : > { %v1506_v44 = vsel %vm715_vm2, %v1505_v43, 0.0 }
 0x98d   : > { %1507 = vadd.xlane.f32.xlu0 %v1506_v44 }
 0xa1a   : > { %v1508_v45 = vpop.xlane.xlu0 %1507 }
 0xa1b   : > { %v1509_v46 = vmul.f32 0.03125, %v1508_v45 }
 0xa1d   : > { %v1510_v47 = vadd.f32 1e-05, %v1509_v46 }
 0xa1f   : > { %1978 = vrsqrt.f32 %v1510_v47 }
 0xa29   : > { %v1979_v48 = vpop.eup %1978 }
 0xa2a   : > { %v1512_v50 = vmul.f32 %v1979_v48, %v1504_v42  ;;  %1531 = sbr.rel (%p1773_p8) target bundleno = 2609 (0xa31), region = 84 }
 0xa2c   : > { %v1519_v52 = vmul.f32 %v1771_v49, %v1512_v50 }
 0xa2e   : > { %v1526_v53 = vadd.f32 %v1772_v51, %v1519_v52 }
 0xa30   : > { %1527 = vst.msk [vmem:[#allocation2] sm:$0xff] %vm715_vm2, %v1526_v53  ;;  %1532 = vst.msk [vmem:[%s2212_s9] sm:$0xff] (!%p1773_p8), %vm715_vm2, %v1526_v53 }
 0xa31 PF: > { %s2438_s16 = sld [smem:[#allocation8_spill]]  ;;  %s2439_s29 = sld [smem:[#allocation6_spill]] }
 0xa32   : > { %s2440_s30 = sld [smem:[#allocation7_spill]]  ;;  %s2441_s15 = sld [smem:[#allocation9_spill]] }
 0xa37   : > { %s24_s17 = sadd.s32 1, %s2438_s16   ;;  %s2442_s16 = sld [smem:[#allocation10_spill]] }
 0xa38   : > { %p21_p9 = scmp.ge.s32.totalorder %s24_s17, 6  }
 0xa3a   :  { %23 = sbr.rel (!%p21_p9) target bundleno = 11 (0xb), region = 153 }

// kernel: transformer_forward.3
= control target key start
LH: loop header
LB: loop body
LE: loop exit
PB: predicated region body
PF: predicated region fallthrough
CT: control target
= control target key end

     0   :  { %s3741_s27 = smov 0   ;;  %s3747_s28 = smov 0   ;;  %s4231_s0 = inlined_call_operand.vmem [shape: f32[2,7,32], index: 0, kind: input, shape index: {}]   ;;  %s4232_s1 = inlined_call_operand.vmem [shape: f32[2,8,32], index: 1, kind: input, shape index: {}]   ;;  %s4233_s2 = inlined_call_operand.vmem [shape: f32[2,1,7], index: 2, kind: input, shape index: {}]   ;;  %s4234_s3 = inlined_call_operand.vmem [shape: f32[2,1,8], index: 3, kind: input, shape index: {}]   ;;  %s4235_s4 = inlined_call_operand.vmem [shape: bf16[2,32,96], index: 4, kind: input, shape index: {}]   ;;  %s4236_s5 = inlined_call_operand.vmem [shape: f32[2,1,96], index: 5, kind: input, shape index: {}]   ;;  %s4237_s6 = inlined_call_operand.vmem [shape: bf16[2,32,32], index: 6, kind: input, shape index: {}]   ;;  %s4238_s7 = inlined_call_operand.vmem [shape: f32[2,1,32], index: 7, kind: input, shape index: {}]   ;;  %s4239_s8 = inlined_call_operand.vmem [shape: f32[2,1,32], index: 8, kind: input, shape index: {}]   ;;  %s4240_s9 = inlined_call_operand.vmem [shape: f32[2,1,32], index: 9, kind: input, shape index: {}]   ;;  %s4241_s10 = inlined_call_operand.vmem [shape: bf16[2,32,32], index: 10, kind: input, shape index: {}]   ;;  %s4242_s11 = inlined_call_operand.vmem [shape: f32[2,1,32], index: 11, kind: input, shape index: {}]   ;;  %s4243_s12 = inlined_call_operand.vmem [shape: bf16[2,32,64], index: 12, kind: input, shape index: {}]   ;;  %s4244_s13 = inlined_call_operand.vmem [shape: f32[2,1,64], index: 13, kind: input, shape index: {}]   ;;  %s4245_s14 = inlined_call_operand.vmem [shape: bf16[2,32,32], index: 14, kind: input, shape index: {}]   ;;  %s4246_s15 = inlined_call_operand.vmem [shape: f32[2,1,32], index: 15, kind: input, shape index: {}]   ;;  %s4247_s16 = inlined_call_operand.vmem [shape: f32[2,1,32], index: 16, kind: input, shape index: {}]   ;;  %s4248_s17 = inlined_call_operand.vmem [shape: f32[2,1,32], index: 17, kind: input, shape index: {}]   ;;  %s4249_s18 = inlined_call_operand.vmem [shape: bf16[2,32,64], index: 18, kind: input, shape index: {}]   ;;  %s4250_s19 = inlined_call_operand.vmem [shape: f32[2,1,64], index: 19, kind: input, shape index: {}]   ;;  %s4251_s20 = inlined_call_operand.vmem [shape: bf16[2,64,32], index: 20, kind: input, shape index: {}]   ;;  %s4252_s21 = inlined_call_operand.vmem [shape: f32[2,1,32], index: 21, kind: input, shape index: {}]   ;;  %s4253_s22 = inlined_call_operand.vmem [shape: f32[2,1,32], index: 22, kind: input, shape index: {}]   ;;  %s4254_s23 = inlined_call_operand.vmem [shape: f32[2,1,32], index: 23, kind: input, shape index: {}]   ;;  %s4255_s24 = inlined_call_operand.vmem [shape: bf16[32,32], index: 24, kind: input, shape index: {}]   ;;  %s4256_s25 = inlined_call_operand.vmem [shape: f32[1,32], index: 25, kind: input, shape index: {}]   ;;  %s4257_s26 = inlined_call_operand.vmem [shape: f32[2,7,32], index: 26, kind: output, shape index: {}]  }
   0x1   :  { %4268 = sst [smem:[#allocation16_spill]] %s4231_s0 }
   0x2   :  { %4269 = sst [smem:[#allocation17_spill]] %s4232_s1 }
   0x3   :  { %4270 = sst [smem:[#allocation18_spill]] %s4233_s2 }
   0x4   :  { %4271 = sst [smem:[#allocation19_spill]] %s4234_s3  ;;  %s3743_s3 = smov 0  }
   0x5   :  { %4272 = sst [smem:[#allocation20_spill]] %s4235_s4 }
   0x6   :  { %4273 = sst [smem:[#allocation21_spill]] %s4236_s5 }
   0x7   :  { %4274 = sst [smem:[#allocation22_spill]] %s4237_s6 }
   0x8   :  { %4275 = sst [smem:[#allocation23_spill]] %s4238_s7  ;;  %s3745_s7 = smov 0  }
   0x9   :  { %4276 = sst [smem:[#allocation24_spill]] %s4239_s8  ;;  %s3749_s8 = smov 0  }
   0xa   :  { %4277 = sst [smem:[#allocation25_spill]] %s4240_s9 }
   0xb   :  { %4278 = sst [smem:[#allocation26_spill]] %s4241_s10 }
   0xc   :  { %4279 = sst [smem:[#allocation27_spill]] %s4243_s12 }
   0xd   :  { %4280 = sst [smem:[#allocation28_spill]] %s4245_s14 }
   0xe   :  { %4281 = sst [smem:[#allocation29_spill]] %s4247_s16 }
   0xf   :  { %4282 = sst [smem:[#allocation30_spill]] %s4248_s17 }
  0x10   :  { %4283 = sst [smem:[#allocation31_spill]] %s4249_s18 }
  0x11   :  { %4284 = sst [smem:[#allocation32_spill]] %s4250_s19 }
  0x12   :  { %4285 = sst [smem:[#allocation33_spill]] %s4251_s20 }
  0x13   :  { %4286 = sst [smem:[#allocation34_spill]] %s4252_s21 }
  0x14   :  { %4287 = sst [smem:[#allocation35_spill]] %s4253_s22 }
  0x15   :  { %4288 = sst [smem:[#allocation36_spill]] %s4254_s23 }
  0x16   :  { %4289 = sst [smem:[#allocation37_spill]] %s4255_s24 }
  0x17   :  { %4290 = sst [smem:[#allocation38_spill]] %s4256_s25 }
  0x18   :  { %4291 = sst [smem:[#allocation39_spill]] %s4257_s26 }
  0x19 LB: > { %4292 = sst [smem:[#allocation6_spill]] %s3569_s27  ;;  %s45_s4 = sadd.s32 1, %s3577_s7  ;;  %s3585_s8 = sphi %s3749_s8, %s36_s8   ;;  %s3581_s28 = sphi %s3747_s28, %s4363_s28   ;;  %s3577_s7 = sphi %s3745_s7, %s4362_s7   ;;  %s3573_s3 = sphi %s3743_s3, %s4361_s3   ;;  %s3569_s27 = sphi %s3741_s27, %s4360_s27  }
  0x1a   : > { %4293 = sst [smem:[#allocation7_spill]] %s3577_s7  ;;  %s48_s29 = sadd.s32 1, %s3581_s28 }
  0x1b   : > { %4294 = sst [smem:[#allocation8_spill]] %s3581_s28  ;;  %p46_p0 = scmp.ge.s32.totalorder %s45_s4, 2 }
  0x1c   : > { %4295 = sst [smem:[#allocation9_spill]] %s3585_s8  ;;  %p3123_p1 = scmp.ge.s32.totalorder %s3585_s8, 1 }
  0x1d   : > { %p922_p2 = scmp.lt.s32.totalorder %s3585_s8, 5  ;;  %s4365_s4 = smov (%p46_p0, %s45_s4), 0 }
  0x1e   : > { %4296 = sst [smem:[#allocation10_spill]] %s4365_s4  ;;  %s4367_s29 = smov (!%p46_p0, %s48_s29), %s3581_s28 }
  0x1f   : > { %p923_p3 = pnand %p3123_p1, %p922_p2  ;;  %p50_p4 = scmp.ge.s32.totalorder %s4367_s29, 2 }
  0x21   : > { %s4369_s29 = smov (%p50_p4, %s4367_s29), 0  ;;  %926 = sbr.rel (%p923_p3) target bundleno = 4596 (0x11f4), region = 124 }
  0x22   : > { %4297 = sst [smem:[#allocation11_spill]] %s4369_s29 }
  0x28   : > { %p1074_p5 = scmp.lt.s32.totalorder %s3573_s3, 1  ;;  %p1088_p6 = scmp.lt.s32.totalorder %s3569_s27, 1 }
  0x29   : > { %s4300_s29 = sld [smem:[#allocation16_spill]]  ;;  %s4303_s20 = sld [smem:[#allocation20_spill]] }
  0x2a   : > { %s4371_s3 = smov (!%p1074_p5, %s3573_s3), 1  ;;  %s4306_s8 = sld [smem:[#allocation22_spill]] }
  0x2b   : > { %4298 = sst [smem:[#allocation12_spill]] %s4371_s3  ;;  %s3780_s9 = sshll.u32 %s4371_s3, 3 }
  0x2c   : > { %s3777_s0 = scalar_select %p1088_p6, %s3569_s27, 1 }
  0x2d   : > { %s4311_s7 = sld [smem:[#allocation26_spill]]  ;;  %s4312_s12 = sld [smem:[#allocation27_spill]] }
  0x2e   : > { %s3203_s22 = sshll.u32 %s3777_s0, 4  ;;  %s4313_s14 = sld [smem:[#allocation28_spill]] }
  0x2f   : > { %s1077_s4 = scalar_lea.vmem %s4300_s29, %s3780_s9  ;;  %s3802_s5 = scalar_lea.vmem %s4303_s20, %s3203_s22 }
  0x30   : > { %4304 = sst [smem:[#allocation13_spill]] %s3802_s5  ;;  %s3811_s25 = scalar_lea.vmem %s4306_s8, %s3203_s22 }
  0x31   : > { %4307 = sst [smem:[#allocation14_spill]] %s3811_s25  ;;  %s4316_s18 = sld [smem:[#allocation31_spill]] }
  0x32   : > { %s4319_s1 = sld [smem:[#allocation34_spill]]  ;;  %s4320_s24 = sld [smem:[#allocation33_spill]] }
  0x33   : > { %s3828_s28 = scalar_lea.vmem %s4311_s7, %s3203_s22  ;;  %s3837_s3 = scalar_lea.vmem %s4312_s12, %s3203_s22 }
  0x34   : > { %s3846_s10 = scalar_lea.vmem %s4313_s14, %s3203_s22  ;;  %s3209_s12 = sshll.u32 %s3777_s0, 5 }
  0x35   : > { %s4321_s20 = sld [smem:[#allocation35_spill]]  ;;  %s4323_s21 = sld [smem:[#allocation39_spill]] }
  0x37   : > { %s3863_s2 = scalar_lea.vmem %s4316_s18, %s3203_s22  ;;  %s4322_s18 = sld [smem:[#allocation36_spill]] }
  0x38   : > { %4317 = sst [smem:[#allocation15_spill]] %s3863_s2  ;;  %s1155_s14 = scalar_lea.vmem %s4319_s1, %s3777_s0 }
  0x39   : > { %s3877_s16 = scalar_lea.vmem %s4320_s24, %s3209_s12  ;;  %s4324_s2 = sld [smem:[#allocation6_spill]] }
  0x3b   : > { %s1158_s23 = scalar_lea.vmem %s4321_s20, %s3777_s0  ;;  %s1165_s19 = scalar_lea.vmem %s4323_s21, %s3780_s9 }
  0x3d   : > { %s1161_s17 = scalar_lea.vmem %s4322_s18, %s3777_s0 }
  0x3f   : > { %p3141_p7 = scmp.ne.s32.totalorder %s4324_s2, 0 }
  0x40   : > { %v1171_v0 = vld [vmem:[%s1077_s4] sm:$0x7f] (!%p3141_p7)  ;;  %vm1172_vm0 = vcmask (!%p3141_p7), 260096  }
  0x41   : > { %1170 = sbr.rel (%p3141_p7) target bundleno = 72 (0x48), region = 128  ;;  %1173 = vst.msk [vmem:[#allocation2] sm:$0x7f] (!%p3141_p7), %vm1172_vm0, %v1171_v0 }
  0x48 PF: > { %s4325_s12 = sld [smem:[#allocation13_spill]]  ;;  %v3587_v2 = vmov 0.0   ;;  %vm3588_vm1 = vmmov 0   ;;  %v3898_v4 = vld [vmem:[#allocation2] sm:$0x7f]  ;;  %vm1214_vm2 = vcmask 261120   ;;  %v1175_v31 = vlaneseq }
  0x49   : > { %3268 = vmatprep.subr.bf16.mxu1 %v3587_v2  ;;  %3282 = vmatprep.subr.bf16.mxu0 %v3587_v2  ;;  %v1190_v5 = vpack.c.bf16 %v3898_v4, %v3898_v4  ;;  %s4326_s20 = sld [smem:[#allocation21_spill]]  ;;  %vm1258_vm3 = vcmask 784384   ;;  %s3589_s24 = smov 120   ;;  %vm1265_vm4 = vcmask 64512   ;;  %vm1314_vm6 = vcmask 55296  }
  0x4a   : > { %3272 = vmatprep.mubr.msk.bf16.mxu1 %vm3588_vm1, %v3587_v2  ;;  %3284 = vmatprep.mubr.msk.bf16.mxu0 %vm3588_vm1, %v3587_v2  ;;  %s3590_s21 = smov 96   ;;  %s3591_s2 = smov 80   ;;  %v1176_v32 = vshrl.u32 %v1175_v31, 7  ;;  %v1178_v33 = vand.u32 127, %v1175_v31  ;;  %vm1333_vm7 = vcmask 1042432   ;;  %vm1334_vm8 = vcmask 1043456  }
  0x4b   : > { %s3592_s29 = smov 88   ;;  %s3593_s7 = smov 72   ;;  %vm1329_vm9 = vcmask 56320   ;;  %vm1380_vm10 = vcmask 63488   ;;  %vm1501_vm11 = vcmask 129088   ;;  %vm1622_vm12 = vcmask 194688  }
  0x4c   : > { %s3594_s25 = smov 112   ;;  %s3595_s8 = smov 104   ;;  %vm1179_vm5 = vcmp.gt.s32.totalorder %v1178_v33, %v1176_v32  ;;  %vm1743_vm13 = vcmask 260288   ;;  %vm1816_vm14 = vcmask 260096   ;;  %vm1981_vm15 = vcmask 523264  }
  0x4d   : > { %s4328_s26 = sld [smem:[#allocation12_spill]]  ;;  %v1180_v34 = vsel %vm1179_vm5, -1e+09, %v3587_v2  ;;  %s4329_s30 = sld [smem:[#allocation18_spill]] }
  0x4e   : > { %v3491_v1 = vld [vmem:[%s4325_s12] sm:$0xff]   ;;  %v3492_v3 = vld [vmem:[%s4325_s12 + $0x8] sm:$0xff]   ;;  %s3596_s6 = smov 64   ;;  %s3598_s12 = smov 48  }
  0x4f   : > { %3269 = vmatpush3.bf16.msra.mxu1 %v3491_v1  ;;  %s4327_s1 = scalar_lea.vmem %s4326_s20, %s3777_s0  ;;  %s3599_s18 = smov 40  }
  0x50   : > { %3270 = vmatprep.subr.bf16.mxu1 %v3587_v2  ;;  %v3143_v6 = vld [vmem:[%s4327_s1] ss:$0 sm:$0xff]  ;;  %s3600_s4 = smov 56   ;;  %s4331_s20 = sld [smem:[#allocation14_spill]] }
  0x51   : > { %s3601_s1 = smov 8   ;;  %s3602_s27 = smov 16  }
  0x52   : > { %s3603_s22 = smov 24  }
  0x53   : > { %3271 = vmatpush3.bf16.msra.mxu1 %v3492_v3  ;;  %s4330_s5 = scalar_lea.vmem %s4329_s30, %s4328_s26 }
  0x54   : > { %3276 = vmatprep.subr.bf16.mxu1 %v3587_v2  ;;  %v3142_v35 = vld [vmem:[%s4330_s5] ss:$0 sm:$0xff]  ;;  %s4340_s5 = scalar_lea.vmem %s4244_s13, %s3777_s0 }
  0x55   : > { %v1188_v36 = vadd.f32 %v3142_v35, %v1180_v34 }
  0x56   : > { %3273 = vmatmul.mubr.msk.bf16.vlgmr.msra.gmra.mrb[0].mxu1 %vm1214_vm2, %v1190_v5 }
  0x57   : > { %3278 = vmatprep.mubr.msk.bf16.mxu1 %vm3588_vm1, %v3587_v2 }
 0x129   : > { %v1252_v7 = vpop.f32.mrb[0].mxu1 }
 0x12a   : > { %v1253_v8 = vadd.f32 %v3143_v6, %v1252_v7  ;;  %v3274_v9 = vpop.f32.mrb[1].mxu1 }
 0x12b   : > { %v1255_v10 = vpop.f32.mrb[2].mxu1 }
 0x12c   : > { %1259 = vst.msk [vmem:[#allocation3] sm:$0x7f] %vm1258_vm3, %v1253_v8  ;;  %v3275_v11 = vpop.f32.mrb[3].mxu1 }
 0x133   : > { %v1382_v12 = vld [vmem:[#allocation3] sm:$0x7f] }
 0x134   : > { %v1260_v13 = vld [vmem:[#allocation3] sm:$0x7f]  ;;  %v3914_v14 = vpack.c.bf16 %v1382_v12, %v1382_v12 }
 0x135   : > { %v3916_v15 = vpack.c.bf16 %v1260_v13, %v1260_v13  ;;  %v1503_v16 = vld [vmem:[#allocation3] sm:$0x7f] }
 0x136   : > { %1385 = vrot.lane.b32.xlu1 %v3914_v14, %s3589_s24  ;;  %v3922_v17 = vpack.c.bf16 %v1503_v16, %v1503_v16  ;;  %v1624_v18 = vld [vmem:[#allocation3] sm:$0x7f] }
 0x137   : > { %1263 = vrot.lane.b32.xlu0 %v3916_v15, %s3590_s21  ;;  %v3928_v19 = vpack.c.bf16 %v1624_v18, %v1624_v18 }
 0x13a   : > { %1508 = vrot.lane.b32.xlu1 %v3922_v17, %s3591_s2 }
 0x13b   : > { %1387 = vrot.lane.b32.xlu0 %v3914_v14, %s3592_s29 }
 0x13e   : > { %1629 = vrot.lane.b32.xlu1 %v3928_v19, %s3593_s7 }
 0x13f   : > { %1506 = vrot.lane.b32.xlu0 %v3922_v17, %s3594_s25 }
 0x143   : > { %1627 = vrot.lane.b32.xlu0 %v3928_v19, %s3595_s8 }
 0x1a8   : > { %v1386_v23 = vpop.permute.xlu1 %1385 }
 0x1a9   : > { %v1264_v20 = vpop.permute.xlu0 %1263 }
 0x1aa   : > { %v1270_v21 = vsel %vm1265_vm4, %v1264_v20, 0 }
 0x1ab   : > { %3277 = vmatpush3.bf16.xpose.msra.mxu1 %v1270_v21 }
 0x1ac   : > { %3288 = vmatprep.subr.bf16.mxu1 %v3587_v2  ;;  %v1509_v25 = vpop.permute.xlu1 %1508 }
 0x1ad   : > { %v1388_v22 = vpop.permute.xlu0 %1387  ;;  %v1514_v26 = vsel %vm1265_vm4, %v1509_v25, 0 }
 0x1ae   : > { %v1393_v24 = vsel %vm1265_vm4, %v1388_v22, 0 }
 0x1b0   : > { %v1630_v27 = vpop.permute.xlu1 %1629 }
 0x1b1   : > { %v1507_v28 = vpop.permute.xlu0 %1506  ;;  %v1635_v29 = vsel %vm1265_vm4, %v1630_v27, 0 }
 0x1b2   : > { %3279 = vmatmul.mubr.msk.bf16.vlgmr.msra.gmra.mrb[4].mxu1 %vm1265_vm4, %v3916_v15 }
 0x1b3   : > { %3289 = vmatpush3.bf16.xpose.msra.mxu1 %v1393_v24  ;;  %3290 = vmatprep.mubr.msk.bf16.mxu1 %vm3588_vm1, %v3587_v2 }
 0x1b4   : > { %3300 = vmatprep.subr.bf16.mxu1 %v3587_v2 }
 0x1b5   : > { %v1628_v30 = vpop.permute.xlu0 %1627 }
 0x1ba   : > { %3291 = vmatmul.mubr.msk.bf16.vlgmr.msra.gmra.mrb[8].mxu1 %vm1265_vm4, %v1386_v23 }
 0x1bb   : > { %3301 = vmatpush3.bf16.xpose.msra.mxu1 %v1514_v26  ;;  %3302 = vmatprep.mubr.msk.bf16.mxu1 %vm3588_vm1, %v3587_v2 }
 0x1bc   : > { %3312 = vmatprep.subr.bf16.mxu1 %v3587_v2 }
 0x1c2   : > { %3303 = vmatmul.mubr.msk.bf16.vlgmr.msra.gmra.mrb[12].mxu1 %vm1265_vm4, %v1507_v28 }
 0x1c3   : > { %3313 = vmatpush3.bf16.xpose.msra.mxu1 %v1635_v29  ;;  %3314 = vmatprep.mubr.msk.bf16.mxu1 %vm3588_vm1, %v3587_v2 }
 0x1c4   : > { %3324 = vmatprep.subr.bf16.mxu1 %v3587_v2 }
 0x1ca   : > { %3315 = vmatmul.mubr.msk.bf16.vlgmr.msra.gmra.mrb[16].mxu1 %vm1265_vm4, %v1628_v30 }
 0x1cb   : > { %3328 = vmatprep.mubr.msk.bf16.mxu1 %vm3588_vm1, %v3587_v2 }
 0x285   : > { %v1306_v37 = vpop.f32.mrb[4].mxu1 }
 0x286   : > { %v1312_v38 = vmul.f32 0.35355338, %v1306_v37  ;;  %v3280_v39 = vpop.f32.mrb[5].mxu1 }
 0x287   : > { %v1309_v40 = vpop.f32.mrb[6].mxu1 }
 0x288   : > { %v3281_v41 = vpop.f32.mrb[7].mxu1  ;;  %v1313_v42 = vadd.f32 %v1312_v38, %v1188_v36 }
 0x28a   : > { %v1315_v43 = vsel %vm1314_vm6, %v1313_v42, -inf }
 0x28b   : > { %1316 = vmax.xlane.f32.xlu1 %v1315_v43 }
 0x28d   : > { %v1429_v44 = vpop.f32.mrb[8].mxu1 }
 0x28e   : > { %v1435_v45 = vmul.f32 0.35355338, %v1429_v44  ;;  %v3292_v46 = vpop.f32.mrb[9].mxu1 }
 0x28f   : > { %v1432_v47 = vpop.f32.mrb[10].mxu1 }
 0x290   : > { %v3293_v48 = vpop.f32.mrb[11].mxu1  ;;  %v1436_v49 = vadd.f32 %v1435_v45, %v1188_v36 }
 0x292   : > { %v1437_v50 = vsel %vm1314_vm6, %v1436_v49, -inf }
 0x293   : > { %1438 = vmax.xlane.f32.xlu0 %v1437_v50 }
 0x295   : > { %v1550_v51 = vpop.f32.mrb[12].mxu1 }
 0x296   : > { %v1556_v52 = vmul.f32 0.35355338, %v1550_v51  ;;  %v3304_v53 = vpop.f32.mrb[13].mxu1 }
 0x297   : > { %v1553_v54 = vpop.f32.mrb[14].mxu1 }
 0x298   : > { %v3305_v55 = vpop.f32.mrb[15].mxu1  ;;  %v1557_v56 = vadd.f32 %v1556_v52, %v1188_v36 }
 0x29a   : > { %v1558_v57 = vsel %vm1314_vm6, %v1557_v56, -inf }
 0x29b   : > { %1559 = vmax.xlane.f32.xlu0 %v1558_v57 }
 0x29d   : > { %v1671_v58 = vpop.f32.mrb[16].mxu1 }
 0x29e   : > { %v1677_v59 = vmul.f32 0.35355338, %v1671_v58  ;;  %v3316_v60 = vpop.f32.mrb[17].mxu1  ;;  %v3493_v58 = vld [vmem:[%s4331_s20] sm:$0xff]  }
 0x29f   : > { %v1674_v61 = vpop.f32.mrb[18].mxu1  ;;  %3325 = vmatpush3.bf16.msra.mxu1 %v3493_v58 }
 0x2a0   : > { %v3317_v62 = vpop.f32.mrb[19].mxu1  ;;  %v1678_v63 = vadd.f32 %v1677_v59, %v1188_v36  ;;  %v3494_v59 = vld [vmem:[%s4331_s20 + $0x8] sm:$0xff]   ;;  %3326 = vmatprep.subr.bf16.mxu1 %v3587_v2  ;;  %s4334_s20 = sld [smem:[#allocation17_spill]] }
 0x2a2   : > { %v1679_v0 = vsel %vm1314_vm6, %v1678_v63, -inf }
 0x2a3   : > { %1680 = vmax.xlane.f32.xlu1 %v1679_v0  ;;  %3327 = vmatpush3.bf16.msra.mxu1 %v3494_v59 }
 0x2a4   : > { %3340 = vmatprep.subr.bf16.mxu1 %v3587_v2 }
 0x2a6   : > { %s4335_s30 = scalar_lea.vmem %s4334_s20, %s3780_s9 }
 0x2b4   : > { %1327 = vrot.lane.b32.xlu1 %v3916_v15, %s3596_s6  ;;  %v3597_v15 = vmov 65535   ;;  %s4332_s6 = sld [smem:[#allocation23_spill]] }
 0x2b5   : > { %v1335_v18 = vsel %vm1333_vm7, 4294967295, %v3597_v15 }
 0x2b6   : > { %v1336_v23 = vsel %vm1334_vm8, %v1335_v18, 0 }
 0x318   : > { %v1317_v1 = vpop.xlane.xlu1 %1316 }
 0x319   : > { %v1318_v3 = vsub.f32 %v1313_v42, %v1317_v1 }
 0x31b   : > { %v1319_v5 = vmul.f32 1.442695, %v1318_v3 }
 0x31d   : > { %3507 = vpow2.f32 %v1319_v5 }
 0x320   : > { %v1439_v6 = vpop.xlane.xlu0 %1438 }
 0x321   : > { %v1440_v7 = vsub.f32 %v1436_v49, %v1439_v6 }
 0x323   : > { %v1441_v8 = vmul.f32 1.442695, %v1440_v7 }
 0x325   : > { %3509 = vpow2.f32 %v1441_v8 }
 0x327   : > { %v3508_v9 = vpop.eup %3507 }
 0x328   : > { %v1560_v10 = vpop.xlane.xlu0 %1559  ;;  %v1321_v11 = vsel %vm1314_vm6, %v3508_v9, 0.0 }
 0x329   : > { %v1561_v12 = vsub.f32 %v1557_v56, %v1560_v10  ;;  %1322 = vadd.xlane.f32.xlu0 %v1321_v11 }
 0x32b   : > { %v1562_v13 = vmul.f32 1.442695, %v1561_v12 }
 0x32d   : > { %3511 = vpow2.f32 %v1562_v13 }
 0x32f   : > { %v3510_v16 = vpop.eup %3509 }
 0x330   : > { %v1681_v20 = vpop.xlane.xlu1 %1680  ;;  %v1443_v21 = vsel %vm1314_vm6, %v3510_v16, 0.0 }
 0x331   : > { %v1682_v22 = vsub.f32 %v1678_v63, %v1681_v20  ;;  %1444 = vadd.xlane.f32.xlu1 %v1443_v21 }
 0x333   : > { %v1683_v24 = vmul.f32 1.442695, %v1682_v22 }
 0x334   : > { %v1328_v25 = vpop.permute.xlu1 %1327 }
 0x335   : > { %3513 = vpow2.f32 %v1683_v24  ;;  %v1338_v26 = vand.u32 %v1336_v23, %v1328_v25 }
 0x337   : > { %v3512_v27 = vpop.eup %3511  ;;  %3283 = vmatpush3.bf16.msra.mxu0 %v1338_v26 }
 0x338   : > { %v1564_v28 = vsel %vm1314_vm6, %v3512_v27, 0.0  ;;  %3294 = vmatprep.subr.bf16.mxu0 %v3587_v2 }
 0x339   : > { %1565 = vadd.xlane.f32.xlu0 %v1564_v28  ;;  %v3496_v28 = vld [vmem:[%s3837_s3 + $0x8] sm:$0xff]  }
 0x33f   : > { %v3514_v29 = vpop.eup %3513 }
 0x340   : > { %v1685_v30 = vsel %vm1314_vm6, %v3514_v29, 0.0 }
 0x341   : > { %1686 = vadd.xlane.f32.xlu0 %v1685_v30  ;;  %v3497_v30 = vld [vmem:[%s3828_s28] sm:$0xff]  }
 0x342   : > { %1570 = vrot.lane.b32.xlu1 %v3922_v17, %s3598_s12  ;;  %s4333_s12 = scalar_lea.vmem %s4332_s6, %s3777_s0  ;;  %s4336_s6 = sld [smem:[#allocation24_spill]] }
 0x343   : > { %v3155_v11 = vld [vmem:[%s4333_s12] ss:$0 sm:$0xff] }
 0x346   : > { %1691 = vrot.lane.b32.xlu1 %v3928_v19, %s3599_s18  ;;  %s4341_s18 = scalar_lea.vmem %s4242_s11, %s3777_s0 }
 0x348   : > { %s4337_s12 = scalar_lea.vmem %s4336_s6, %s3777_s0  ;;  %s4350_s6 = sld [smem:[#allocation32_spill]] }
 0x357   : > { %1449 = vrot.lane.b32.xlu0 %v3914_v14, %s3600_s4 }
 0x3b6   : > { %v1323_v31 = vpop.xlane.xlu0 %1322 }
 0x3b7   : > { %3515 = vrcp.f32 %v1323_v31  ;;  %v3498_v31 = vld [vmem:[%s3828_s28 + $0x8] sm:$0xff]   ;;  %s4338_s28 = sld [smem:[#allocation25_spill]] }
 0x3bd   : > { %s4339_s20 = scalar_lea.vmem %s4338_s28, %s3777_s0 }
 0x3be   : > { %v1445_v33 = vpop.xlane.xlu1 %1444 }
 0x3bf   : > { %3517 = vrcp.f32 %v1445_v33 }
 0x3c1   : > { %v3516_v32 = vpop.eup %3515 }
 0x3c2   : > { %v1325_v34 = vmul.f32 %v3516_v32, %v3508_v9  ;;  %v1571_v39 = vpop.permute.xlu1 %1570 }
 0x3c3   : > { %v1576_v42 = vand.u32 %v1571_v39, %v1336_v23  ;;  %v3165_v39 = vld [vmem:[%s4340_s5] ss:$0 sm:$0xff] }
 0x3c4   : > { %v1326_v35 = vpack.c.bf16 %v1325_v34, %v1325_v34 }
 0x3c6   : > { %3285 = vmatmul.mubr.msk.bf16.vlgmr.msra.gmra.mrb[0].mxu0 %vm1329_vm9, %v1326_v35  ;;  %v1566_v17 = vpop.xlane.xlu0 %1565  ;;  %v1692_v44 = vpop.permute.xlu1 %1691 }
 0x3c7   : > { %3296 = vmatprep.mubr.msk.bf16.mxu0 %vm3588_vm1, %v3587_v2  ;;  %3519 = vrcp.f32 %v1566_v17  ;;  %v1697_v47 = vand.u32 %v1692_v44, %v1336_v23  ;;  %v3159_v17 = vld [vmem:[%s4337_s12] ss:$0 sm:$0xff]  ;;  %s4351_s12 = scalar_lea.vmem %s4350_s6, %s3777_s0 }
 0x3c9   : > { %v3518_v19 = vpop.eup %3517 }
 0x3ca   : > { %v1447_v37 = vmul.f32 %v3518_v19, %v3510_v16  ;;  %v3160_v19 = vld [vmem:[%s4339_s20] ss:$0 sm:$0xff]  ;;  %s4348_s20 = sld [smem:[#allocation30_spill]] }
 0x3cc   : > { %v1448_v40 = vpack.c.bf16 %v1447_v37, %v1447_v37 }
 0x3ce   : > { %v1687_v36 = vpop.xlane.xlu0 %1686 }
 0x3cf   : > { %3521 = vrcp.f32 %v1687_v36 }
 0x3d1   : > { %v3520_v41 = vpop.eup %3519 }
 0x3d2   : > { %v1450_v38 = vpop.permute.xlu0 %1449  ;;  %v1568_v43 = vmul.f32 %v3520_v41, %v3512_v27  ;;  %v3495_v27 = vld [vmem:[%s3837_s3] sm:$0xff]  }
 0x3d3   : > { %v1455_v14 = vand.u32 %v1450_v38, %v1336_v23 }
 0x3d4   : > { %v1569_v45 = vpack.c.bf16 %v1568_v43, %v1568_v43 }
 0x3d5   : > { %3295 = vmatpush3.bf16.msra.mxu0 %v1455_v14 }
 0x3d6   : > { %3306 = vmatprep.subr.bf16.mxu0 %v3587_v2 }
 0x3d8   : > { %3297 = vmatmul.mubr.msk.bf16.vlgmr.msra.gmra.mrb[4].mxu0 %vm1329_vm9, %v1448_v40 }
 0x3d9   : > { %3307 = vmatpush3.bf16.msra.mxu0 %v1576_v42  ;;  %3308 = vmatprep.mubr.msk.bf16.mxu0 %vm3588_vm1, %v3587_v2  ;;  %v3522_v46 = vpop.eup %3521 }
 0x3da   : > { %3318 = vmatprep.subr.bf16.mxu0 %v3587_v2  ;;  %v1689_v48 = vmul.f32 %v3522_v46, %v3514_v29 }
 0x3dc   : > { %v1690_v49 = vpack.c.bf16 %v1689_v48, %v1689_v48  ;;  %v3161_v48 = vld [vmem:[%s4341_s18] ss:$0 sm:$0xff] }
 0x3e0   : > { %3309 = vmatmul.mubr.msk.bf16.vlgmr.msra.gmra.mrb[8].mxu0 %vm1329_vm9, %v1569_v45 }
 0x3e1   : > { %3319 = vmatpush3.bf16.msra.mxu0 %v1697_v47  ;;  %3320 = vmatprep.mubr.msk.bf16.mxu0 %vm3588_vm1, %v3587_v2 }
 0x3e2   : > { %3332 = vmatprep.subr.bf16.mxu0 %v3587_v2 }
 0x3e8   : > { %3321 = vmatmul.mubr.msk.bf16.vlgmr.msra.gmra.mrb[12].mxu0 %vm1329_vm9, %v1690_v49 }
 0x3e9   : > { %3336 = vmatprep.mubr.msk.bf16.mxu0 %vm3588_vm1, %v3587_v2  ;;  %3333 = vmatpush3.bf16.msra.mxu0 %v3497_v30 }
 0x3ea   : > { %3334 = vmatprep.subr.bf16.mxu0 %v3587_v2 }
 0x3ed   : > { %3335 = vmatpush3.bf16.msra.mxu0 %v3498_v31 }
 0x3ee   : > { %3348 = vmatprep.subr.bf16.mxu0 %v3587_v2 }
 0x499   : > { %v1374_v50 = vpop.f32.mrb[0].mxu0 }
 0x49a   : > { %1381 = vst.msk [vmem:[#allocation5] sm:$0x7f] %vm1380_vm10, %v1374_v50  ;;  %v3286_v51 = vpop.f32.mrb[1].mxu0 }
 0x49b   : > { %v1377_v52 = vpop.f32.mrb[2].mxu0 }
 0x49c   : > { %v3287_v53 = vpop.f32.mrb[3].mxu0 }
 0x4ab   : > { %v1491_v54 = vpop.f32.mrb[4].mxu0 }
 0x4ac   : > { %1498 = vrot.lane.b32.xlu1 %v1491_v54, %s3601_s1  ;;  %v3298_v55 = vpop.f32.mrb[5].mxu0 }
 0x4ad   : > { %v1494_v56 = vpop.f32.mrb[6].mxu0 }
 0x4ae   : > { %v3299_v57 = vpop.f32.mrb[7].mxu0 }
 0x4b3   : > { %v1612_v60 = vpop.f32.mrb[8].mxu0 }
 0x4b4   : > { %1619 = vrot.lane.b32.xlu0 %v1612_v60, %s3602_s27  ;;  %v3310_v61 = vpop.f32.mrb[9].mxu0 }
 0x4b5   : > { %v1615_v62 = vpop.f32.mrb[10].mxu0 }
 0x4b6   : > { %v3311_v63 = vpop.f32.mrb[11].mxu0 }
 0x4bb   : > { %v1733_v0 = vpop.f32.mrb[12].mxu0 }
 0x4bc   : > { %1740 = vrot.lane.b32.xlu1 %v1733_v0, %s3603_s22  ;;  %v3322_v1 = vpop.f32.mrb[13].mxu0 }
 0x4bd   : > { %v1736_v3 = vpop.f32.mrb[14].mxu0 }
 0x4be   : > { %v3323_v5 = vpop.f32.mrb[15].mxu0 }
 0x51e   : > { %v1499_v6 = vpop.permute.xlu1 %1498 }
 0x51f   : > { %1502 = vst.msk [vmem:[#allocation5] sm:$0x7f] %vm1501_vm11, %v1499_v6 }
 0x526   : > { %v1620_v7 = vpop.permute.xlu0 %1619 }
 0x527   : > { %1623 = vst.msk [vmem:[#allocation5] sm:$0x7f] %vm1622_vm12, %v1620_v7 }
 0x52e   : > { %v1741_v8 = vpop.permute.xlu1 %1740 }
 0x52f   : > { %1744 = vst.msk [vmem:[#allocation5] sm:$0x7f] %vm1743_vm13, %v1741_v8 }
 0x536   : > { %v1745_v9 = vld [vmem:[#allocation5] sm:$0x7f] }
 0x537   : > { %v1746_v10 = vpack.c.bf16 %v1745_v9, %v1745_v9 }
 0x539   : > { %3329 = vmatmul.mubr.msk.bf16.vlgmr.msra.gmra.mrb[20].mxu1 %vm1214_vm2, %v1746_v10 }
 0x53a   : > { %3344 = vmatprep.mubr.msk.bf16.mxu1 %vm3588_vm1, %v3587_v2  ;;  %3341 = vmatpush3.bf16.msra.mxu1 %v3495_v27 }
 0x53b   : > { %3342 = vmatprep.subr.bf16.mxu1 %v3587_v2 }
 0x53e   : > { %3343 = vmatpush3.bf16.msra.mxu1 %v3496_v28 }
 0x53f   : > { %3354 = vmatprep.subr.bf16.mxu1 %v3587_v2 }
 0x60c   : > { %v1807_v12 = vpop.f32.mrb[20].mxu1 }
 0x60d   : > { %v1808_v13 = vadd.f32 %v3155_v11, %v1807_v12  ;;  %v3330_v16 = vpop.f32.mrb[21].mxu1 }
 0x60e   : > { %v1810_v15 = vpop.f32.mrb[22].mxu1 }
 0x60f   : > { %v3331_v18 = vpop.f32.mrb[23].mxu1  ;;  %v1813_v20 = vadd.f32 %v1808_v13, %v3898_v4  ;;  %v1913_v4 = vld [vmem:[%s4335_s30] sm:$0xff]  ;;  %s4349_s30 = scalar_lea.vmem %s4348_s20, %s3777_s0 }
 0x610   : > { %v1914_v29 = vpack.c.bf16 %v1913_v4, %v1913_v4 }
 0x611   : > { %v1817_v21 = vsel %vm1816_vm14, %v1813_v20, 0.0 }
 0x612   : > { %1818 = vadd.xlane.f32.xlu0 %v1817_v21  ;;  %3345 = vmatmul.mubr.msk.bf16.vlgmr.msra.gmra.mrb[24].mxu1 %vm1214_vm2, %v1914_v29 }
 0x613   : > { %3356 = vmatprep.mubr.msk.bf16.mxu1 %vm3588_vm1, %v3587_v2 }
 0x69f   : > { %v1819_v22 = vpop.xlane.xlu0 %1818 }
 0x6a0   : > { %v1821_v23 = vmul.f32 0.03125, %v1819_v22 }
 0x6a2   : > { %v1822_v24 = vsub.f32 %v1813_v20, %v1821_v23 }
 0x6a4   : > { %v1823_v25 = vmul.f32 %v1822_v24, %v1822_v24 }
 0x6a6   : > { %v1824_v26 = vsel %vm1816_vm14, %v1823_v25, 0.0 }
 0x6a7   : > { %1825 = vadd.xlane.f32.xlu1 %v1824_v26 }
 0x6e5   : > { %v1975_v40 = vpop.f32.mrb[24].mxu1 }
 0x6e6   : > { %v1976_v41 = vadd.f32 %v3165_v39, %v1975_v40  ;;  %v3346_v42 = vpop.f32.mrb[25].mxu1 }
 0x6e7   : > { %v1978_v43 = vpop.f32.mrb[26].mxu1 }
 0x6e8   : > { %1982 = vst.msk [vmem:[#allocation4] sm:$0xff] %vm1981_vm15, %v1976_v41  ;;  %v3347_v44 = vpop.f32.mrb[27].mxu1 }
 0x6ef   : > { %v2104_v45 = vld [vmem:[#allocation4] sm:$0xff] }
 0x6f0   : > { %v4053_v46 = vpack.c.bf16 %v2104_v45, %v2104_v45 }
 0x6f2   : > { %2111 = vrot.lane.b32.xlu0 %v4053_v46, %s3589_s24  ;;  %v1991_v47 = vsel %vm1265_vm4, %v4053_v46, 0 }
 0x6f6   : > { %2234 = vrot.lane.b32.xlu0 %v4053_v46, %s3594_s25 }
 0x6fa   : > { %2357 = vrot.lane.b32.xlu0 %v4053_v46, %s3595_s8 }
 0x734   : > { %v1826_v32 = vpop.xlane.xlu1 %1825 }
 0x735   : > { %v1827_v33 = vmul.f32 0.03125, %v1826_v32 }
 0x737   : > { %v1828_v34 = vadd.f32 1e-05, %v1827_v33 }
 0x739   : > { %3523 = vrsqrt.f32 %v1828_v34 }
 0x743   : > { %v3524_v35 = vpop.eup %3523 }
 0x744   : > { %v1830_v36 = vmul.f32 %v3524_v35, %v1822_v24 }
 0x746   : > { %v1837_v37 = vmul.f32 %v3159_v17, %v1830_v36 }
 0x748   : > { %v4040_v38 = vadd.f32 %v3160_v19, %v1837_v37 }
 0x74a   : > { %v1845_v14 = vpack.c.bf16 %v4040_v38, %v4040_v38 }
 0x74c   : > { %3337 = vmatmul.mubr.msk.bf16.vlgmr.msra.gmra.mrb[16].mxu0 %vm1214_vm2, %v1845_v14 }
 0x74d   : > { %3350 = vmatprep.mubr.msk.bf16.mxu0 %vm3588_vm1, %v3587_v2  ;;  %3349 = vmatpush3.bf16.xpose.msra.mxu0 %v1991_v47 }
 0x74e   : > { %3360 = vmatprep.subr.bf16.mxu0 %v3587_v2 }
 0x764   : > { %v2112_v56 = vpop.permute.xlu0 %2111 }
 0x765   : > { %v2117_v59 = vsel %vm1265_vm4, %v2112_v56, 0 }
 0x768   : > { %v2235_v0 = vpop.permute.xlu0 %2234 }
 0x769   : > { %v2240_v3 = vsel %vm1265_vm4, %v2235_v0, 0 }
 0x76c   : > { %v2358_v5 = vpop.permute.xlu0 %2357 }
 0x76d   : > { %v2363_v7 = vsel %vm1265_vm4, %v2358_v5, 0 }
 0x81f   : > { %v1906_v49 = vpop.f32.mrb[16].mxu0 }
 0x820   : > { %v1907_v50 = vadd.f32 %v3161_v48, %v1906_v49  ;;  %v3338_v51 = vpop.f32.mrb[17].mxu0 }
 0x821   : > { %v1909_v52 = vpop.f32.mrb[18].mxu0 }
 0x822   : > { %1912 = vst.msk [vmem:[#allocation3] sm:$0x7f] %vm1816_vm14, %v1907_v50  ;;  %v3339_v53 = vpop.f32.mrb[19].mxu0 }
 0x829   : > { %v2103_v54 = vld [vmem:[#allocation3] sm:$0x7f] }
 0x82a   : > { %v1983_v55 = vld [vmem:[#allocation3] sm:$0x7f]  ;;  %v2105_v57 = vpack.c.bf16 %v2103_v54, %v2103_v54 }
 0x82b   : > { %v1985_v58 = vpack.c.bf16 %v1983_v55, %v1983_v55  ;;  %v2226_v60 = vld [vmem:[#allocation3] sm:$0x7f] }
 0x82c   : > { %2108 = vrot.lane.b32.xlu1 %v2105_v57, %s3589_s24  ;;  %v2228_v61 = vpack.c.bf16 %v2226_v60, %v2226_v60  ;;  %v2349_v62 = vld [vmem:[#allocation3] sm:$0x7f] }
 0x82d   : > { %3351 = vmatmul.mubr.msk.bf16.vlgmr.msra.gmra.mrb[20].mxu0 %vm1265_vm4, %v1985_v58  ;;  %v2351_v63 = vpack.c.bf16 %v2349_v62, %v2349_v62 }
 0x82e   : > { %3361 = vmatpush3.bf16.xpose.msra.mxu0 %v2117_v59  ;;  %3362 = vmatprep.mubr.msk.bf16.mxu0 %vm3588_vm1, %v3587_v2 }
 0x82f   : > { %3372 = vmatprep.subr.bf16.mxu0 %v3587_v2 }
 0x830   : > { %2231 = vrot.lane.b32.xlu1 %v2228_v61, %s3594_s25 }
 0x834   : > { %2354 = vrot.lane.b32.xlu1 %v2351_v63, %s3595_s8  ;;  %s4342_s8 = sld [smem:[#allocation19_spill]] }
 0x83a   : > { %s4343_s4 = scalar_lea.vmem %s4342_s8, %s4328_s26 }
 0x83b   : > { %v3170_v10 = vld [vmem:[%s4343_s4] ss:$0 sm:$0xff] }
 0x89e   : > { %v2109_v1 = vpop.permute.xlu1 %2108 }
 0x89f   : > { %3363 = vmatmul.mubr.msk.bf16.vlgmr.msra.gmra.mrb[24].mxu0 %vm1265_vm4, %v2109_v1 }
 0x8a0   : > { %3373 = vmatpush3.bf16.xpose.msra.mxu0 %v2240_v3  ;;  %3374 = vmatprep.mubr.msk.bf16.mxu0 %vm3588_vm1, %v3587_v2 }
 0x8a1   : > { %3384 = vmatprep.subr.bf16.mxu0 %v3587_v2 }
 0x8a2   : > { %v2232_v6 = vpop.permute.xlu1 %2231 }
 0x8a6   : > { %v2355_v8 = vpop.permute.xlu1 %2354 }
 0x8a7   : > { %3375 = vmatmul.mubr.msk.bf16.vlgmr.msra.gmra.mrb[28].mxu0 %vm1265_vm4, %v2232_v6 }
 0x8a8   : > { %3385 = vmatpush3.bf16.xpose.msra.mxu0 %v2363_v7  ;;  %3386 = vmatprep.mubr.msk.bf16.mxu0 %vm3588_vm1, %v3587_v2 }
 0x8a9   : > { %3396 = vmatprep.subr.bf16.mxu0 %v3587_v2 }
 0x8af   : > { %3387 = vmatmul.mubr.msk.bf16.vlgmr.msra.gmra.mrb[32].mxu0 %vm1265_vm4, %v2355_v8 }
 0x8b0   : > { %3400 = vmatprep.mubr.msk.bf16.mxu0 %vm3588_vm1, %v3587_v2 }
 0x900   : > { %v2027_v9 = vpop.f32.mrb[20].mxu0 }
 0x901   : > { %v2033_v11 = vmul.f32 0.35355338, %v2027_v9  ;;  %v3352_v12 = vpop.f32.mrb[21].mxu0 }
 0x902   : > { %v2030_v13 = vpop.f32.mrb[22].mxu0 }
 0x903   : > { %v3353_v16 = vpop.f32.mrb[23].mxu0  ;;  %v2040_v15 = vadd.f32 %v3170_v10, %v2033_v11 }
 0x905   : > { %v2041_v18 = vsel %vm1380_vm10, %v2040_v15, -inf }
 0x906   : > { %2042 = vmax.xlane.f32.xlu0 %v2041_v18 }
 0x972   : > { %v2153_v20 = vpop.f32.mrb[24].mxu0 }
 0x973   : > { %v2159_v21 = vmul.f32 0.35355338, %v2153_v20  ;;  %v3364_v22 = vpop.f32.mrb[25].mxu0 }
 0x974   : > { %v2156_v23 = vpop.f32.mrb[26].mxu0 }
 0x975   : > { %v3365_v24 = vpop.f32.mrb[27].mxu0  ;;  %v2160_v25 = vadd.f32 %v3170_v10, %v2159_v21 }
 0x977   : > { %v2161_v26 = vsel %vm1380_vm10, %v2160_v25, -inf }
 0x978   : > { %2162 = vmax.xlane.f32.xlu1 %v2161_v26 }
 0x97a   : > { %v2276_v27 = vpop.f32.mrb[28].mxu0 }
 0x97b   : > { %v2282_v28 = vmul.f32 0.35355338, %v2276_v27  ;;  %v3376_v4 = vpop.f32.mrb[29].mxu0 }
 0x97c   : > { %v2279_v29 = vpop.f32.mrb[30].mxu0 }
 0x97d   : > { %v3377_v30 = vpop.f32.mrb[31].mxu0  ;;  %v2283_v31 = vadd.f32 %v3170_v10, %v2282_v28 }
 0x97e   : > { %v3499_v30 = vld [vmem:[%s3846_s10] sm:$0xff]  }
 0x97f   : > { %v2284_v32 = vsel %vm1380_vm10, %v2283_v31, -inf  ;;  %3397 = vmatpush3.bf16.msra.mxu0 %v3499_v30 }
 0x980   : > { %2285 = vmax.xlane.f32.xlu0 %v2284_v32  ;;  %3398 = vmatprep.subr.bf16.mxu0 %v3587_v2 }
 0x982   : > { %v2399_v33 = vpop.f32.mrb[32].mxu0 }
 0x983   : > { %v2405_v34 = vmul.f32 0.35355338, %v2399_v33  ;;  %v3388_v35 = vpop.f32.mrb[33].mxu0 }
 0x984   : > { %v2402_v17 = vpop.f32.mrb[34].mxu0 }
 0x985   : > { %v3389_v36 = vpop.f32.mrb[35].mxu0  ;;  %v2406_v19 = vadd.f32 %v3170_v10, %v2405_v34 }
 0x987   : > { %v2407_v37 = vsel %vm1380_vm10, %v2406_v19, -inf }
 0x988   : > { %2408 = vmax.xlane.f32.xlu0 %v2407_v37 }
 0x993   : > { %v2043_v14 = vpop.xlane.xlu0 %2042 }
 0x994   : > { %v2044_v39 = vsub.f32 %v2040_v15, %v2043_v14 }
 0x996   : > { %v2045_v40 = vmul.f32 1.442695, %v2044_v39 }
 0x998   : > { %3525 = vpow2.f32 %v2045_v40 }
 0x9a2   : > { %v3526_v41 = vpop.eup %3525 }
 0x9a3   : > { %v2047_v42 = vsel %vm1380_vm10, %v3526_v41, 0.0 }
 0x9a4   : > { %2048 = vadd.xlane.f32.xlu1 %v2047_v42 }
 0x9b5   : > { %2054 = vrot.lane.b32.xlu1 %v4053_v46, %s3590_s21 }
 0xa05   : > { %v2163_v43 = vpop.xlane.xlu1 %2162 }
 0xa06   : > { %v2164_v44 = vsub.f32 %v2160_v25, %v2163_v43 }
 0xa08   : > { %v2165_v45 = vmul.f32 1.442695, %v2164_v44 }
 0xa0a   : > { %3527 = vpow2.f32 %v2165_v45 }
 0xa0d   : > { %v2286_v47 = vpop.xlane.xlu0 %2285 }
 0xa0e   : > { %v2287_v48 = vsub.f32 %v2283_v31, %v2286_v47  ;;  %v3500_v31 = vld [vmem:[%s3846_s10 + $0x8] sm:$0xff]  }
 0xa0f   : > { %3399 = vmatpush3.bf16.msra.mxu0 %v3500_v31 }
 0xa10   : > { %v2288_v49 = vmul.f32 1.442695, %v2287_v48  ;;  %3412 = vmatprep.subr.bf16.mxu0 %v3587_v2 }
 0xa12   : > { %3529 = vpow2.f32 %v2288_v49 }
 0xa14   : > { %v3528_v50 = vpop.eup %3527 }
 0xa15   : > { %v2409_v51 = vpop.xlane.xlu0 %2408  ;;  %v2167_v52 = vsel %vm1380_vm10, %v3528_v50, 0.0 }
 0xa16   : > { %v2410_v53 = vsub.f32 %v2406_v19, %v2409_v51  ;;  %2168 = vadd.xlane.f32.xlu0 %v2167_v52 }
 0xa18   : > { %v2411_v54 = vmul.f32 1.442695, %v2410_v53 }
 0xa1a   : > { %3531 = vpow2.f32 %v2411_v54 }
 0xa1c   : > { %v3530_v55 = vpop.eup %3529 }
 0xa1d   : > { %v2290_v56 = vsel %vm1380_vm10, %v3530_v55, 0.0 }
 0xa1e   : > { %2291 = vadd.xlane.f32.xlu1 %v2290_v56 }
 0xa24   : > { %v3532_v57 = vpop.eup %3531 }
 0xa25   : > { %v2413_v58 = vsel %vm1380_vm10, %v3532_v57, 0.0 }
 0xa26   : > { %2414 = vadd.xlane.f32.xlu0 %v2413_v58 }
 0xa2f   : > { %2296 = vrot.lane.b32.xlu1 %v4053_v46, %s3591_s2  ;;  %s4344_s2 = scalar_lea.vmem %s4246_s15, %s3777_s0 }
 0xa30   : > { %v3178_v43 = vld [vmem:[%s4344_s2] ss:$0 sm:$0xff]  ;;  %s4355_s2 = sld [smem:[#allocation6_spill]] }
 0xa31   : > { %v2049_v59 = vpop.xlane.xlu1 %2048 }
 0xa32   : > { %3533 = vrcp.f32 %v2049_v59  ;;  %v3504_v59 = vld [vmem:[%s3877_s16 + $0x8] sm:$0xff]  }
 0xa33   : > { %2419 = vrot.lane.b32.xlu1 %v4053_v46, %s3593_s7 }
 0xa35   : > { %v2055_v60 = vpop.permute.xlu1 %2054 }
 0xa36   : > { %v2060_v61 = vsel %vm1334_vm8, %v2055_v60, 0  ;;  %p3196_p8 = scmp.ne.s32.totalorder %s4355_s2, 1 }
 0xa37   : > { %3355 = vmatpush3.bf16.msra.mxu1 %v2060_v61  ;;  %s4356_s26 = sld [smem:[#allocation37_spill]] (!%p3196_p8)  ;;  %vm3605_vm0 = vmmov (!%p3196_p8), 0  }
 0xa38   : > { %3366 = vmatprep.subr.bf16.mxu1 %v3587_v2 }
 0xa3c   : > { %v3534_v62 = vpop.eup %3533  ;;  %2173 = vrot.lane.b32.xlu0 %v4053_v46, %s3592_s29  ;;  %s4345_s29 = sld [smem:[#allocation15_spill]] }
 0xa3d   : > { %v2051_v63 = vmul.f32 %v3534_v62, %v3526_v41 }
 0xa3f   : > { %v2052_v0 = vpack.c.bf16 %v2051_v63, %v2051_v63 }
 0xa41   : > { %3357 = vmatmul.mubr.msk.bf16.vlgmr.msra.gmra.mrb[28].mxu1 %vm1265_vm4, %v2052_v0 }
 0xa42   : > { %3368 = vmatprep.mubr.msk.bf16.mxu1 %vm3588_vm1, %v3587_v2  ;;  %v3502_v58 = vld [vmem:[%s4345_s29 + $0x8] sm:$0xff]  }
 0xaa3   : > { %v2169_v1 = vpop.xlane.xlu0 %2168 }
 0xaa4   : > { %3535 = vrcp.f32 %v2169_v1 }
 0xaab   : > { %v2292_v3 = vpop.xlane.xlu1 %2291 }
 0xaac   : > { %3537 = vrcp.f32 %v2292_v3  ;;  %v3183_v3 = vld [vmem:[%s4349_s30] ss:$0 sm:$0xff] }
 0xaae   : > { %v3536_v5 = vpop.eup %3535 }
 0xaaf   : > { %v2171_v7 = vmul.f32 %v3536_v5, %v3528_v50  ;;  %v2297_v10 = vpop.permute.xlu1 %2296 }
 0xab0   : > { %v2302_v12 = vsel %vm1334_vm8, %v2297_v10, 0  ;;  %v3184_v10 = vld [vmem:[%s4351_s12] ss:$0 sm:$0xff] }
 0xab1   : > { %v2172_v46 = vpack.c.bf16 %v2171_v7, %v2171_v7 }
 0xab3   : > { %v2415_v6 = vpop.xlane.xlu0 %2414  ;;  %v2420_v16 = vpop.permute.xlu1 %2419 }
 0xab4   : > { %3539 = vrcp.f32 %v2415_v6  ;;  %v2425_v20 = vsel %vm1334_vm8, %v2420_v16, 0 }
 0xab6   : > { %v3538_v11 = vpop.eup %3537 }
 0xab7   : > { %v2174_v8 = vpop.permute.xlu0 %2173  ;;  %v2294_v13 = vmul.f32 %v3538_v11, %v3530_v55 }
 0xab8   : > { %v2179_v9 = vsel %vm1334_vm8, %v2174_v8, 0  ;;  %v3505_v8 = vld [vmem:[%s3877_s16 + $0x10] sm:$0xff]  }
 0xab9   : > { %3367 = vmatpush3.bf16.msra.mxu1 %v2179_v9  ;;  %v2295_v15 = vpack.c.bf16 %v2294_v13, %v2294_v13  ;;  %v3506_v9 = vld [vmem:[%s3877_s16 + $0x18] sm:$0xff]  }
 0xaba   : > { %3378 = vmatprep.subr.bf16.mxu1 %v3587_v2 }
 0xabc   : > { %3369 = vmatmul.mubr.msk.bf16.vlgmr.msra.gmra.mrb[32].mxu1 %vm1265_vm4, %v2172_v46 }
 0xabd   : > { %3379 = vmatpush3.bf16.msra.mxu1 %v2302_v12  ;;  %3380 = vmatprep.mubr.msk.bf16.mxu1 %vm3588_vm1, %v3587_v2 }
 0xabe   : > { %3390 = vmatprep.subr.bf16.mxu1 %v3587_v2  ;;  %v3540_v18 = vpop.eup %3539 }
 0xabf   : > { %v2417_v21 = vmul.f32 %v3540_v18, %v3532_v57  ;;  %v3501_v57 = vld [vmem:[%s4345_s29] sm:$0xff]  }
 0xac1   : > { %v2418_v22 = vpack.c.bf16 %v2417_v21, %v2417_v21 }
 0xac4   : > { %3381 = vmatmul.mubr.msk.bf16.vlgmr.msra.gmra.mrb[36].mxu1 %vm1265_vm4, %v2295_v15 }
 0xac5   : > { %3391 = vmatpush3.bf16.msra.mxu1 %v2425_v20  ;;  %3392 = vmatprep.mubr.msk.bf16.mxu1 %vm3588_vm1, %v3587_v2 }
 0xac6   : > { %3404 = vmatprep.subr.bf16.mxu1 %v3587_v2 }
 0xacc   : > { %3393 = vmatmul.mubr.msk.bf16.vlgmr.msra.gmra.mrb[40].mxu1 %vm1265_vm4, %v2418_v22 }
 0xacd   : > { %3408 = vmatprep.mubr.msk.bf16.mxu1 %vm3588_vm1, %v3587_v2  ;;  %3405 = vmatpush3.bf16.msra.mxu1 %v3501_v57 }
 0xace   : > { %3406 = vmatprep.subr.bf16.mxu1 %v3587_v2 }
 0xad1   : > { %3407 = vmatpush3.bf16.msra.mxu1 %v3502_v58 }
 0xb14   : > { %v2096_v23 = vpop.f32.mrb[28].mxu1 }
 0xb15   : > { %2102 = vst.msk [vmem:[#allocation5] sm:$0x7f] %vm1380_vm10, %v2096_v23  ;;  %v3358_v24 = vpop.f32.mrb[29].mxu1 }
 0xb16   : > { %v2099_v25 = vpop.f32.mrb[30].mxu1 }
 0xb17   : > { %v3359_v26 = vpop.f32.mrb[31].mxu1 }
 0xb8f   : > { %v2215_v27 = vpop.f32.mrb[32].mxu1 }
 0xb90   : > { %2222 = vrot.lane.b32.xlu0 %v2215_v27, %s3601_s1  ;;  %v3370_v28 = vpop.f32.mrb[33].mxu1  ;;  %s4346_s1 = sld [smem:[#allocation29_spill]] }
 0xb91   : > { %v2218_v4 = vpop.f32.mrb[34].mxu1 }
 0xb92   : > { %v3371_v29 = vpop.f32.mrb[35].mxu1 }
 0xb97   : > { %v2338_v32 = vpop.f32.mrb[36].mxu1 }
 0xb98   : > { %2345 = vrot.lane.b32.xlu1 %v2338_v32, %s3602_s27  ;;  %v3382_v33 = vpop.f32.mrb[37].mxu1  ;;  %s4347_s27 = scalar_lea.vmem %s4346_s1, %s3777_s0 }
 0xb99   : > { %v2341_v34 = vpop.f32.mrb[38].mxu1  ;;  %v3182_v0 = vld [vmem:[%s4347_s27] ss:$0 sm:$0xff]  ;;  %s4357_s27 = sld [smem:[#allocation38_spill]] (!%p3196_p8) }
 0xb9a   : > { %v3383_v35 = vpop.f32.mrb[39].mxu1 }
 0xb9b   : > { %v3194_v35 = vld [vmem:[%s1158_s23] ss:$0 sm:$0xff] }
 0xb9f   : > { %v2461_v17 = vpop.f32.mrb[40].mxu1 }
 0xba0   : > { %2468 = vrot.lane.b32.xlu0 %v2461_v17, %s3603_s22  ;;  %v3394_v36 = vpop.f32.mrb[41].mxu1 }
 0xba1   : > { %v2464_v19 = vpop.f32.mrb[42].mxu1  ;;  %v3195_v36 = vld [vmem:[%s1161_s17] ss:$0 sm:$0xff] }
 0xba2   : > { %v3395_v37 = vpop.f32.mrb[43].mxu1 }
 0xc02   : > { %v2223_v14 = vpop.permute.xlu0 %2222 }
 0xc03   : > { %2225 = vst.msk [vmem:[#allocation5] sm:$0x7f] %vm1501_vm11, %v2223_v14  ;;  %v3545_v14 = vld [vmem:[%s4356_s26] sm:$0xff] (!%p3196_p8)  }
 0xc0a   : > { %v2346_v39 = vpop.permute.xlu1 %2345 }
 0xc0b   : > { %2348 = vst.msk [vmem:[#allocation5] sm:$0x7f] %vm1622_vm12, %v2346_v39  ;;  %v3604_v39 = vmov (!%p3196_p8), 0.0  }
 0xc12   : > { %v2469_v40 = vpop.permute.xlu0 %2468 }
 0xc13   : > { %2471 = vst.msk [vmem:[#allocation5] sm:$0x7f] %vm1743_vm13, %v2469_v40  ;;  %v3546_v40 = vld [vmem:[%s4356_s26 + $0x8] sm:$0xff] (!%p3196_p8)  }
 0xc1a   : > { %v2472_v41 = vld [vmem:[#allocation5] sm:$0x7f] }
 0xc1b   : > { %v2473_v42 = vpack.c.bf16 %v2472_v41, %v2472_v41 }
 0xc1d   : > { %3401 = vmatmul.mubr.msk.bf16.vlgmr.msra.gmra.mrb[36].mxu0 %vm1214_vm2, %v2473_v42  ;;  %v3197_v42 = vld [vmem:[%s4357_s27] ss:$0 sm:$0xff] (!%p3196_p8) }
 0xc1e   : > { %3420 = vmatprep.mubr.msk.bf16.mxu0 %vm3588_vm1, %v3587_v2 }
 0xcf0   : > { %v2534_v44 = vpop.f32.mrb[36].mxu0 }
 0xcf1   : > { %v2535_v45 = vadd.f32 %v3178_v43, %v2534_v44  ;;  %v3402_v47 = vpop.f32.mrb[37].mxu0 }
 0xcf2   : > { %v2537_v48 = vpop.f32.mrb[38].mxu0 }
 0xcf3   : > { %v3403_v49 = vpop.f32.mrb[39].mxu0  ;;  %v2540_v50 = vadd.f32 %v2535_v45, %v4040_v38  ;;  %v3503_v38 = vld [vmem:[%s3877_s16] sm:$0xff]  }
 0xcf4   : > { %3413 = vmatpush3.bf16.msra.mxu0 %v3503_v38 }
 0xcf5   : > { %v2543_v51 = vsel %vm1816_vm14, %v2540_v50, 0.0  ;;  %3414 = vmatprep.subr.bf16.mxu0 %v3587_v2 }
 0xcf6   : > { %2544 = vadd.xlane.f32.xlu1 %v2543_v51 }
 0xcf8   : > { %3415 = vmatpush3.bf16.msra.mxu0 %v3504_v59 }
 0xcf9   : > { %3416 = vmatprep.subr.bf16.mxu0 %v3587_v2 }
 0xcfc   : > { %3417 = vmatpush3.bf16.msra.mxu0 %v3505_v8 }
 0xcfd   : > { %3418 = vmatprep.subr.bf16.mxu0 %v3587_v2  ;;  %v3188_v2 = vld [vmem:[%s1155_s14] ss:$0 sm:$0xff] }
 0xd00   : > { %3419 = vmatpush3.bf16.msra.mxu0 %v3506_v9 }
 0xd01   : > { %3424 = vmatprep.subr.bf16.mxu0 (!%p3196_p8), %v3604_v39 }
 0xd83   : > { %v2545_v52 = vpop.xlane.xlu1 %2544 }
 0xd84   : > { %v2546_v53 = vmul.f32 0.03125, %v2545_v52 }
 0xd86   : > { %v2547_v54 = vsub.f32 %v2540_v50, %v2546_v53 }
 0xd88   : > { %v2548_v55 = vmul.f32 %v2547_v54, %v2547_v54 }
 0xd8a   : > { %v2549_v56 = vsel %vm1816_vm14, %v2548_v55, 0.0 }
 0xd8b   : > { %2550 = vadd.xlane.f32.xlu0 %v2549_v56 }
 0xe18   : > { %v2551_v60 = vpop.xlane.xlu0 %2550 }
 0xe19   : > { %v2552_v61 = vmul.f32 0.03125, %v2551_v60 }
 0xe1b   : > { %v2553_v62 = vadd.f32 1e-05, %v2552_v61 }
 0xe1d   : > { %3541 = vrsqrt.f32 %v2553_v62 }
 0xe27   : > { %v3542_v63 = vpop.eup %3541 }
 0xe28   : > { %v2555_v1 = vmul.f32 %v3542_v63, %v2547_v54 }
 0xe2a   : > { %v2562_v5 = vmul.f32 %v3182_v0, %v2555_v1 }
 0xe2c   : > { %v2569_v6 = vadd.f32 %v3183_v3, %v2562_v5 }
 0xe2e   : > { %v2570_v7 = vpack.c.bf16 %v2569_v6, %v2569_v6 }
 0xe30   : > { %3409 = vmatmul.mubr.msk.bf16.vlgmr.msra.gmra.mrb[44].mxu1 %vm1214_vm2, %v2570_v7 }
 0xf03   : > { %v2631_v46 = vpop.f32.mrb[44].mxu1 }
 0xf04   : > { %v2632_v11 = vadd.f32 %v3184_v10, %v2631_v46  ;;  %v3410_v12 = vpop.f32.mrb[45].mxu1 }
 0xf05   : > { %v2634_v13 = vpop.f32.mrb[46].mxu1 }
 0xf06   : > { %v2637_v16 = vmax.f32 %v2632_v11, 0.0  ;;  %v3411_v15 = vpop.f32.mrb[47].mxu1 }
 0xf08   : > { %v2638_v18 = vpack.c.bf16 %v2637_v16, %v2637_v16 }
 0xf0a   : > { %3421 = vmatmul.mubr.msk.bf16.vlgmr.msra.gmra.mrb[40].mxu0 %vm1981_vm15, %v2638_v18 }
 0xf0b   : > { %3425 = vmatpush3.bf16.msra.mxu0 (!%p3196_p8), %v3545_v14  ;;  %3428 = vmatprep.mubr.msk.bf16.mxu0 (!%p3196_p8), %vm3605_vm0, %v3604_v39 }
 0xf0c   : > { %3426 = vmatprep.subr.bf16.mxu0 (!%p3196_p8), %v3604_v39 }
 0xf0f   : > { %3427 = vmatpush3.bf16.msra.mxu0 (!%p3196_p8), %v3546_v40 }
 0xfdd   : > { %v2715_v20 = vpop.f32.mrb[40].mxu0 }
 0xfde   : > { %v2716_v21 = vadd.f32 %v3188_v2, %v2715_v20  ;;  %v3422_v22 = vpop.f32.mrb[41].mxu0 }
 0xfdf   : > { %v2718_v23 = vpop.f32.mrb[42].mxu0 }
 0xfe0   : > { %v3423_v24 = vpop.f32.mrb[43].mxu0  ;;  %v2721_v25 = vadd.f32 %v2716_v21, %v2569_v6 }
 0xfe2   : > { %v2724_v26 = vsel %vm1816_vm14, %v2721_v25, 0.0 }
 0xfe3   : > { %2725 = vadd.xlane.f32.xlu0 %v2724_v26 }
0x1070   : > { %v2726_v27 = vpop.xlane.xlu0 %2725 }
0x1071   : > { %v2727_v28 = vmul.f32 0.03125, %v2726_v27 }
0x1073   : > { %v2728_v4 = vsub.f32 %v2721_v25, %v2727_v28 }
0x1075   : > { %v2729_v29 = vmul.f32 %v2728_v4, %v2728_v4 }
0x1077   : > { %v2730_v30 = vsel %vm1816_vm14, %v2729_v29, 0.0 }
0x1078   : > { %2731 = vadd.xlane.f32.xlu1 %v2730_v30 }
0x1105   : > { %v2732_v31 = vpop.xlane.xlu1 %2731 }
0x1106   : > { %v2733_v32 = vmul.f32 0.03125, %v2732_v31 }
0x1108   : > { %v2734_v33 = vadd.f32 1e-05, %v2733_v32 }
0x110a   : > { %3543 = vrsqrt.f32 %v2734_v33 }
0x1114   : > { %v3544_v34 = vpop.eup %3543 }
0x1115   : > { %v2736_v17 = vmul.f32 %v3544_v34, %v2728_v4  ;;  %2755 = sbr.rel (%p3196_p8) target bundleno = 4596 (0x11f4), region = 132 }
0x1117   : > { %v2743_v19 = vmul.f32 %v3194_v35, %v2736_v17 }
0x1119   : > { %v2750_v37 = vadd.f32 %v3195_v36, %v2743_v19 }
0x111b   : > { %2751 = vst.msk [vmem:[#allocation2] sm:$0x7f] %vm1816_vm14, %v2750_v37  ;;  %v2756_v41 = vpack.c.bf16 (!%p3196_p8), %v2750_v37, %v2750_v37 }
0x111d   : > { %3429 = vmatmul.mubr.msk.bf16.vlgmr.msra.gmra.mrb[0].mxu0 %vm1214_vm2, %v2756_v41 }
0x11f0   : > { %v2817_v43 = vpop.f32.mrb[0].mxu0 }
0x11f1   : > { %v2818_v44 = vadd.f32 %v3197_v42, %v2817_v43  ;;  %v3430_v45 = vpop.f32.mrb[1].mxu0 }
0x11f2   : > { %v2820_v47 = vpop.f32.mrb[2].mxu0 }
0x11f3   : > { %2823 = vst.msk [vmem:[%s1165_s19] sm:$0x7f] %vm1816_vm14, %v2818_v44  ;;  %v3431_v48 = vpop.f32.mrb[3].mxu0 }
0x11f4 PF: > { %s4359_s30 = sld [smem:[#allocation9_spill]]  ;;  %s4360_s27 = sld [smem:[#allocation7_spill]] }
0x11f5   : > { %s4361_s3 = sld [smem:[#allocation8_spill]]  ;;  %s4362_s7 = sld [smem:[#allocation10_spill]] }
0x11f6   : > { %s4363_s28 = sld [smem:[#allocation11_spill]] }
0x11fa   : > { %s36_s8 = sadd.s32 1, %s4359_s30  }
0x11fb   : > { %p33_p9 = scmp.ge.s32.totalorder %s36_s8, 6  }
0x11fd   :  { %35 = sbr.rel (!%p33_p9) target bundleno = 25 (0x19), region = 231 }

</bundles_post_ra>
